<compile_context>
chip_gen: v7x
topology: tpu7x:2x2x1
jax: 0.10.0
libtpu: 0.0.40
codegen_flags: <defaults>
</compile_context>

<pallas_src>
import functools

import jax
import jax.numpy as jnp
from jax.experimental import pallas as pl
from jax.experimental.pallas import tpu as pltpu

_CDT = jnp.bfloat16          # matmul operand dtype for the network (f32 accumulate)


@functools.lru_cache(maxsize=1)
def _vmem_limit():
    """Generation-aware scoped-VMEM limit (tighter on 64-MiB/TC v7x parts)."""
    cap = 128 * 1024 * 1024
    try:
        info = pltpu.get_tpu_info()
        cap = int(getattr(info, "vmem_capacity_bytes", cap))
    except Exception:
        pass
    if cap <= 64 * 1024 * 1024:
        return 40 * 1024 * 1024
    return 48 * 1024 * 1024


def _fold_bn(bn, eps=1e-5):
    s = bn["gamma"] / jnp.sqrt(bn["var"] + eps)
    t = bn["beta"] - bn["mean"] * s
    return s, t


def _cin_pad(c):
    # keep in-kernel sublane concatenation aligned for bf16 (16-row packing);
    # a no-op for production channel counts (multiples of g=32).
    return -(-c // 16) * 16


# --------------------------------------------------------------------------
# Kernel 1: generic conv over (B, T, C, F) — one output time-row per grid step,
#   single MXU dot with K = k_t*k_f*Cin, folded-BN shift + ReLU epilogue.
#   The k_t time shifts arrive as k_t shifted views of the same HBM array.
# --------------------------------------------------------------------------
def _conv_kernel(*refs, k_t, k_f, f_out, relu):
    x_refs = refs[:k_t]
    w_ref, sh_ref, o_ref = refs[k_t:]
    cols = []
    for dt in range(k_t):
        row = x_refs[dt][0, 0]                        # (Cin, Fin)
        for dj in range(k_f):
            cols.append(row[:, dj:dj + f_out])
    X = cols[0] if len(cols) == 1 else jnp.concatenate(cols, axis=0)
    y = jnp.dot(w_ref[...], X, preferred_element_type=jnp.float32) + sh_ref[...]
    if relu:
        y = jnp.maximum(y, 0.0)
    o_ref[0, 0] = y.astype(o_ref.dtype)


def _conv_call(x, w_flat, shift, *, k_t, k_f, stride_t, relu, out_dtype=_CDT):
    """x: (B, Tin, Cin, Fin) already padded; w_flat: (Cout, k_t*k_f*Cin), BN scale folded."""
    B, Tin, Cin, Fin = x.shape
    Cout, Kdim = w_flat.shape
    assert Kdim == k_t * k_f * Cin
    To = (Tin - k_t) // stride_t + 1
    Fo = Fin - k_f + 1

    xc = x.astype(_CDT)
    wc = w_flat.astype(_CDT)
    sh2 = shift.reshape(Cout, 1).astype(jnp.float32)

    x_specs = [
        pl.BlockSpec((1, 1, Cin, Fin),
                     lambda b, t, dt=dt: (b, t * stride_t + dt, 0, 0))
        for dt in range(k_t)
    ]
    kern = functools.partial(_conv_kernel, k_t=k_t, k_f=k_f, f_out=Fo, relu=relu)
    return pl.pallas_call(
        kern,
        out_shape=jax.ShapeDtypeStruct((B, To, Cout, Fo), out_dtype),
        grid_spec=pltpu.PrefetchScalarGridSpec(
            num_scalar_prefetch=0,
            grid=(B, To),
            in_specs=x_specs + [
                pl.BlockSpec((Cout, Kdim), lambda b, t: (0, 0)),
                pl.BlockSpec((Cout, 1), lambda b, t: (0, 0)),
            ],
            out_specs=pl.BlockSpec((1, 1, Cout, Fo), lambda b, t: (b, t, 0, 0)),
        ),
        compiler_params=pltpu.CompilerParams(
            dimension_semantics=("parallel", "parallel"),
            vmem_limit_bytes=_vmem_limit()),
    )(*([xc] * k_t), wc, sh2)


def _flatten_conv_w(w, scale, cin_pad):
    # w: (Cout, Cin, k_t, k_f) torch layout (spatial = (T, F) post-transpose).
    Cout, Cin, k_t, k_f = w.shape
    if cin_pad != Cin:
        w = jnp.pad(w, ((0, 0), (0, cin_pad - Cin), (0, 0), (0, 0)))
    wf = jnp.transpose(w, (0, 2, 3, 1)).reshape(Cout, k_t * k_f * cin_pad)
    return wf * scale.reshape(Cout, 1)


def conv1x1(x, p, *, relu, with_bn, out_dtype=_CDT):
    w = p["w"]                                        # (Cout, Cin, 1, 1)
    Cout, Cin = w.shape[:2]
    if with_bn:
        s, t = _fold_bn(p["bn"])
        scale, shift = s, p["b"] * s + t
    else:
        scale, shift = jnp.ones((Cout,), jnp.float32), p["b"]
    wf = _flatten_conv_w(w, scale, Cin)
    return _conv_call(x, wf, shift, k_t=1, k_f=1, stride_t=1, relu=relu,
                      out_dtype=out_dtype)


def conv_same_bn_relu(x, p, k):
    w = p["w"]                                        # (Cout, Cin, k, k)
    Cout, Cin = w.shape[:2]
    s, t = _fold_bn(p["bn"])
    shift = p["b"] * s + t
    pd = k // 2
    cp = _cin_pad(Cin) if k > 1 else Cin
    xp = jnp.pad(x, ((0, 0), (pd, pd), (0, cp - Cin), (pd, pd)))
    wf = _flatten_conv_w(w, s, cp)
    return _conv_call(xp, wf, shift, k_t=k, k_f=k, stride_t=1, relu=True)


def down_conv_bn_relu(x, p, scale_hw):
    sh, sw = scale_hw
    B, T, C, F = x.shape
    Fo = F // sw
    # TODO(synk): F de-interleave is an XLA reshape/transpose (extra HBM pass).
    xd = x.reshape(B, T, C, Fo, sw).transpose(0, 1, 4, 2, 3).reshape(B, T, sw * C, Fo)
    w = p["w"]                                        # (Cout, Cin, sh, sw)
    Cout = w.shape[0]
    s, t = _fold_bn(p["bn"])
    shift = p["b"] * s + t
    Cd = sw * C
    cp = _cin_pad(Cd) if sh > 1 else Cd
    if cp != Cd:
        xd = jnp.pad(xd, ((0, 0), (0, 0), (0, cp - Cd), (0, 0)))
    wf = jnp.transpose(w, (0, 2, 3, 1)).reshape(Cout, sh, sw * C)
    if cp != Cd:
        wf = jnp.pad(wf, ((0, 0), (0, 0), (0, cp - Cd)))
    wf = wf.reshape(Cout, sh * cp) * s.reshape(Cout, 1)
    return _conv_call(xd, wf, shift, k_t=sh, k_f=1, stride_t=sh, relu=True)


# --------------------------------------------------------------------------
# Kernel 2: transposed up-conv (kernel = stride): ONE stacked dot per (b, t),
#   BN + ReLU + fused skip-multiply in the epilogue, de-interleaved store.
# --------------------------------------------------------------------------
def _upconv_kernel(x_ref, w_ref, sh_ref, skip_ref, o_ref):
    y = jnp.dot(w_ref[...], x_ref[0, 0], preferred_element_type=jnp.float32)
    y = jnp.maximum(y + sh_ref[...], 0.0)
    y = y * skip_ref[0, 0].astype(jnp.float32)
    o_ref[0, 0] = y.astype(o_ref.dtype)


def up_convT_bn_relu_skip(x, p, skip, scale_hw, out_dtype=_CDT):
    sh, sw = scale_hw
    B, T, Cin, F = x.shape
    w = p["w"]                                        # torch layout (Cin, Cout, sh, sw)
    Cout = w.shape[1]
    s, t = _fold_bn(p["bn"])
    shift = p["b"] * s + t
    M = sh * sw * Cout
    wst = jnp.transpose(w, (2, 3, 1, 0)).reshape(M, Cin) * jnp.tile(s, sh * sw)[:, None]
    shst = jnp.tile(shift, sh * sw).reshape(M, 1)
    # TODO(synk): skip de-interleave / output re-interleave are XLA transposes.
    skip_de = skip.reshape(B, T, sh, Cout, F, sw).transpose(0, 1, 2, 5, 3, 4)
    skip_de = skip_de.reshape(B, T, M, F)

    out_de = pl.pallas_call(
        _upconv_kernel,
        out_shape=jax.ShapeDtypeStruct((B, T, M, F), out_dtype),
        grid_spec=pltpu.PrefetchScalarGridSpec(
            num_scalar_prefetch=0,
            grid=(B, T),
            in_specs=[
                pl.BlockSpec((1, 1, Cin, F), lambda b, t_: (b, t_, 0, 0)),
                pl.BlockSpec((M, Cin), lambda b, t_: (0, 0)),
                pl.BlockSpec((M, 1), lambda b, t_: (0, 0)),
                pl.BlockSpec((1, 1, M, F), lambda b, t_: (b, t_, 0, 0)),
            ],
            out_specs=pl.BlockSpec((1, 1, M, F), lambda b, t_: (b, t_, 0, 0)),
        ),
        compiler_params=pltpu.CompilerParams(
            dimension_semantics=("parallel", "parallel"),
            vmem_limit_bytes=_vmem_limit()),
    )(x.astype(_CDT), wst.astype(_CDT), shst.astype(jnp.float32),
      skip_de.astype(_CDT))

    y = out_de.reshape(B, T, sh, sw, Cout, F).transpose(0, 1, 2, 4, 5, 3)
    return y.reshape(B, T * sh, Cout, F * sw)


# --------------------------------------------------------------------------
# Kernel 3: fused TDF bottleneck.  Groups flattened into M = B*T*C; both
#   linears + per-channel BN + ReLU + residual in one pass (hidden never
#   leaves VMEM; shared weights DMA'd once).
# --------------------------------------------------------------------------
def _tdf_kernel(x_ref, w1_ref, w2_ref, b1_ref, b2_ref,
                s1_ref, t1_ref, s2_ref, t2_ref, o_ref):
    x = x_ref[...]                                    # (tm, F) bf16
    h = jnp.dot(x, w1_ref[...], preferred_element_type=jnp.float32)
    h = jnp.maximum((h + b1_ref[...]) * s1_ref[...] + t1_ref[...], 0.0)
    y = jnp.dot(h.astype(x.dtype), w2_ref[...], preferred_element_type=jnp.float32)
    y = jnp.maximum((y + b2_ref[...]) * s2_ref[...] + t2_ref[...], 0.0)
    o_ref[...] = (y + x.astype(jnp.float32)).astype(o_ref.dtype)


def fused_tdf(x, tdf_p, use_bias, out_dtype=_CDT, tm=256):
    B, T, C, F = x.shape
    w1 = tdf_p["w1"]                                  # (hid, F)  torch Linear(F->hid)
    w2 = tdf_p["w2"]                                  # (F, hid)  torch Linear(hid->F)
    hid = w1.shape[0]
    s1, t1 = _fold_bn(tdf_p["bn1"])
    s2, t2 = _fold_bn(tdf_p["bn2"])
    b1 = tdf_p["b1"] if use_bias else None
    b2 = tdf_p["b2"] if use_bias else None

    M = B * T * C
    Mp8 = -(-M // 8) * 8
    if Mp8 <= tm:
        tm_, Mp = Mp8, Mp8
    else:
        tm_, Mp = tm, -(-M // tm) * tm

    xm = x.reshape(M, F).astype(_CDT)
    if Mp != M:
        xm = jnp.pad(xm, ((0, Mp - M), (0, 0)))

    def rows(v):
        r = jnp.tile(v.astype(jnp.float32), B * T)
        if Mp != M:
            r = jnp.pad(r, (0, Mp - M))
        return r.reshape(Mp, 1)

    s1r, t1r, s2r, t2r = rows(s1), rows(t1), rows(s2), rows(t2)
    b1c = (jnp.zeros((1, hid), jnp.float32) if b1 is None
           else b1.reshape(1, hid).astype(jnp.float32))
    b2c = (jnp.zeros((1, F), jnp.float32) if b2 is None
           else b2.reshape(1, F).astype(jnp.float32))
    w1c = w1.T.astype(_CDT)                           # (F, hid)
    w2c = w2.T.astype(_CDT)                           # (hid, F)

    grid = (Mp // tm_,)
    cost = pl.CostEstimate(
        flops=int(4 * Mp * hid * F), transcendentals=0,
        bytes_accessed=int(2 * xm.size * 2 + (w1c.size + w2c.size) * 2))

    out = pl.pallas_call(
        _tdf_kernel,
        out_shape=jax.ShapeDtypeStruct((Mp, F), out_dtype),
        grid_spec=pltpu.PrefetchScalarGridSpec(
            num_scalar_prefetch=0,
            grid=grid,
            in_specs=[
                pl.BlockSpec((tm_, F), lambda i: (i, 0)),
                pl.BlockSpec((F, hid), lambda i: (0, 0)),
                pl.BlockSpec((hid, F), lambda i: (0, 0)),
                pl.BlockSpec((1, hid), lambda i: (0, 0)),
                pl.BlockSpec((1, F), lambda i: (0, 0)),
                pl.BlockSpec((tm_, 1), lambda i: (i, 0)),
                pl.BlockSpec((tm_, 1), lambda i: (i, 0)),
                pl.BlockSpec((tm_, 1), lambda i: (i, 0)),
                pl.BlockSpec((tm_, 1), lambda i: (i, 0)),
            ],
            out_specs=pl.BlockSpec((tm_, F), lambda i: (i, 0)),
        ),
        compiler_params=pltpu.CompilerParams(
            dimension_semantics=("parallel",),
            vmem_limit_bytes=_vmem_limit()),
        cost_estimate=cost,
    )(xm, w1c, w2c, b1c, b2c, s1r, t1r, s2r, t2r)
    if Mp != M:
        out = out[:M]
    return out.reshape(B, T, C, F)


def tfc_tdf_forward(x, p, k, use_bias):
    for blk in p["tfc"]:
        x = conv_same_bn_relu(x, blk, k)
    return fused_tdf(x, p["tdf"], use_bias)


# --------------------------------------------------------------------------
# Kernel 4: plain tiled matmul (f32) for the STFT / ISTFT DFTs.
# --------------------------------------------------------------------------
def _mm_kernel(a_ref, b_ref, o_ref, acc_ref, *, nk):
    kk = pl.program_id(2)

    @pl.when(kk == 0)
    def _():
        acc_ref[...] = jnp.zeros_like(acc_ref)

    acc_ref[...] += jnp.dot(a_ref[...], b_ref[...], preferred_element_type=jnp.float32)

    @pl.when(kk == nk - 1)
    def _():
        o_ref[...] = acc_ref[...].astype(o_ref.dtype)


def _tile(dim, target, align):
    if dim <= target:
        return dim, dim
    t = max(align, (target // align) * align)
    return t, -(-dim // t) * t


def matmul(a, b, *, out_dtype=jnp.float32, compute_dtype=jnp.float32,
           tm=256, tn=512, tk=512):
    M, K = a.shape
    K2, N = b.shape
    assert K2 == K
    tm_, Mp = _tile(M, tm, 8)
    tn_, Np = _tile(N, tn, 128)
    tk_, Kp = _tile(K, tk, 128)
    a_ = a.astype(compute_dtype)
    b_ = b.astype(compute_dtype)
    if (Mp, Kp) != (M, K):
        a_ = jnp.pad(a_, ((0, Mp - M), (0, Kp - K)))
    if (Kp, Np) != (K, N):
        b_ = jnp.pad(b_, ((0, Kp - K), (0, Np - N)))
    grid = (Mp // tm_, Np // tn_, Kp // tk_)
    nk = grid[2]
    cost = pl.CostEstimate(
        flops=int(2 * Mp * Np * Kp), transcendentals=0,
        bytes_accessed=int(a_.size * a_.dtype.itemsize + b_.size * b_.dtype.itemsize
                           + Mp * Np * jnp.dtype(out_dtype).itemsize))
    out = pl.pallas_call(
        functools.partial(_mm_kernel, nk=nk),
        out_shape=jax.ShapeDtypeStruct((Mp, Np), out_dtype),
        grid_spec=pltpu.PrefetchScalarGridSpec(
            num_scalar_prefetch=0,
            grid=grid,
            in_specs=[pl.BlockSpec((tm_, tk_), lambda i, j, kk: (i, kk)),
                      pl.BlockSpec((tk_, tn_), lambda i, j, kk: (kk, j))],
            out_specs=pl.BlockSpec((tm_, tn_), lambda i, j, kk: (i, j)),
            scratch_shapes=[pltpu.VMEM((tm_, tn_), jnp.float32)]),
        compiler_params=pltpu.CompilerParams(
            dimension_semantics=("parallel", "parallel", "arbitrary"),
            vmem_limit_bytes=_vmem_limit()),
        cost_estimate=cost,
    )(a_, b_)
    if (Mp, Np) != (M, N):
        out = out[:M, :N]
    return out


# ------------------------------- STFT / ISTFT -------------------------------

def _hann_periodic(n):
    i = jnp.arange(n, dtype=jnp.float32)
    return 0.5 - 0.5 * jnp.cos(2.0 * jnp.pi * i / n)


def stft(audio, cfg):
    n_fft, hop = cfg["n_fft"], cfg["hop_length"]
    dim_t, dim_f, chunk = cfg["dim_t"], cfg["dim_f"], cfg["chunk_size"]
    n_bins = n_fft // 2 + 1
    B, C, L = audio.shape
    factor = L // chunk
    win = _hann_periodic(n_fft)
    nn = jnp.arange(n_fft, dtype=jnp.float32)[:, None]
    kf = jnp.arange(n_bins, dtype=jnp.float32)[None, :]
    ang = 2.0 * jnp.pi * nn * kf / n_fft
    wdft = jnp.concatenate([win[:, None] * jnp.cos(ang),
                            -win[:, None] * jnp.sin(ang)], axis=1)   # (n_fft, 2*n_bins)

    x = audio.astype(jnp.float32).reshape(B * C, factor, chunk)
    xp = jnp.pad(x, ((0, 0), (0, 0), (n_fft // 2, n_fft // 2)), mode="reflect")
    if n_fft % hop == 0:
        # gather-free framing via static hop-segment slices
        r = n_fft // hop
        segs = xp.reshape(B * C, factor, dim_t + r - 1, hop)
        frames = jnp.concatenate([segs[:, :, j:j + dim_t] for j in range(r)], axis=-1)
    else:
        idx = (jnp.arange(dim_t) * hop)[:, None] + jnp.arange(n_fft)[None, :]
        frames = xp[:, :, idx]
    M = B * C * factor * dim_t
    # DFT kept in f32 for reconstruction accuracy (bf16 split left as future work)
    sp = matmul(frames.reshape(M, n_fft), wdft,
                out_dtype=jnp.float32, compute_dtype=jnp.float32)
    sp = sp.reshape(B * C, factor * dim_t, 2, n_bins)[..., :dim_f]
    return sp                                         # (B*C, T_total, dim_c=2, dim_f)


def istft(spec, cfg):
    n_fft, hop = cfg["n_fft"], cfg["hop_length"]
    dim_t, dim_f = cfg["dim_t"], cfg["dim_f"]
    n_bins = n_fft // 2 + 1
    Bs, T_tot = spec.shape[0], spec.shape[1]
    factor = T_tot // dim_t
    win = _hann_periodic(n_fft)
    kf = jnp.arange(n_bins, dtype=jnp.float32)[:, None]
    nn = jnp.arange(n_fft, dtype=jnp.float32)[None, :]
    ang = 2.0 * jnp.pi * kf * nn / n_fft
    wk = jnp.where((jnp.arange(n_bins) == 0) | (jnp.arange(n_bins) == n_fft // 2),
                   1.0, 2.0).astype(jnp.float32)[:, None]
    widft = jnp.concatenate([wk * jnp.cos(ang) / n_fft,
                             -wk * jnp.sin(ang) / n_fft], axis=0)    # (2*n_bins, n_fft)
    widft = widft * win[None, :]                      # synthesis window folded in

    X = jnp.pad(spec.astype(jnp.float32), ((0, 0), (0, 0), (0, 0), (0, n_bins - dim_f)))
    X = X.reshape(Bs * T_tot, 2 * n_bins)
    frames = matmul(X, widft, out_dtype=jnp.float32, compute_dtype=jnp.float32)
    frames = frames.reshape(Bs * factor, dim_t, n_fft)

    ola_len = n_fft + hop * (dim_t - 1)
    w2 = win * win
    if n_fft % hop == 0:
        # scatter-free overlap-add: r static padded adds
        r = n_fft // hop
        segs = frames.reshape(Bs * factor, dim_t, r, hop)
        ola = sum(jnp.pad(segs[:, :, j], ((0, 0), (j, r - 1 - j), (0, 0)))
                  for j in range(r)).reshape(Bs * factor, ola_len)
        wsegs = jnp.broadcast_to(w2, (dim_t, n_fft)).reshape(dim_t, r, hop)
        env = sum(jnp.pad(wsegs[:, j], ((j, r - 1 - j), (0, 0)))
                  for j in range(r)).reshape(ola_len)
    else:
        idx = (jnp.arange(dim_t) * hop)[:, None] + jnp.arange(n_fft)[None, :]
        ola = jnp.zeros((Bs * factor, ola_len), jnp.float32).at[:, idx].add(frames)
        env = jnp.zeros((ola_len,), jnp.float32).at[idx].add(
            jnp.broadcast_to(w2, (dim_t, n_fft)))
    start = n_fft // 2
    out_len = hop * (dim_t - 1)
    env_c = env[start:start + out_len]
    env_c = jnp.where(env_c > 1e-11, env_c, 1.0)
    out = ola[:, start:start + out_len] / env_c[None, :]
    return out.reshape(Bs, 1, factor * out_len)


# ------------------------------- full forward -------------------------------

def conv_tdf_net_forward(params, audio, cfg):
    n = cfg["num_blocks"] // 2
    k, use_bias, scale = cfg["k"], cfg["bias"], cfg["scale"]

    spec = stft(audio, cfg)                                         # (Bs, T, 2, dim_f)
    x = conv1x1(spec, params["first_conv"], relu=True, with_bn=True)
    # (torch's transpose(-1,-2) is absorbed by the carried (B, T, C, F) layout)

    ds_outputs = []
    for i in range(n):
        x = tfc_tdf_forward(x, params["enc"][i], k, use_bias)
        ds_outputs.append(x)
        x = down_conv_bn_relu(x, params["ds"][i], scale)

    x = tfc_tdf_forward(x, params["bottleneck"], k, use_bias)

    for i in range(n):
        x = up_convT_bn_relu_skip(x, params["us"][i], ds_outputs[-i - 1], scale)
        x = tfc_tdf_forward(x, params["dec"][i], k, use_bias)

    spec_out = conv1x1(x, params["final_conv"], relu=False, with_bn=False,
                       out_dtype=jnp.float32)                       # (Bs, T, 2, dim_f)
    return istft(spec_out, cfg)


# --------------------------- deterministic params ---------------------------

def init_params(key, cfg):
    keys = iter(jax.random.split(key, 256))

    def nrm(shape, s=0.1):
        return s * jax.random.normal(next(keys), shape, dtype=jnp.float32)

    def bn_p(c):
        return {"gamma": 1.0 + nrm((c,)), "beta": nrm((c,)),
                "mean": nrm((c,)), "var": 1.0 + jnp.abs(nrm((c,)))}

    def conv_p(cout, cin, kh, kw):
        return {"w": nrm((cout, cin, kh, kw)), "b": nrm((cout,))}

    def tfc_tdf_p(c, l, f, k, bnf, use_bias):
        tfc = []
        for _ in range(l):
            cp = conv_p(c, c, k, k)
            cp["bn"] = bn_p(c)
            tfc.append(cp)
        hid = f // bnf
        tdf = {"w1": nrm((hid, f)), "b1": nrm((hid,)) if use_bias else None,
               "bn1": bn_p(c),
               "w2": nrm((f, hid)), "b2": nrm((f,)) if use_bias else None,
               "bn2": bn_p(c)}
        return {"tfc": tfc, "tdf": tdf}

    n = cfg["num_blocks"] // 2
    g, k, l, bnf, use_bias = cfg["g"], cfg["k"], cfg["l"], cfg["bn"], cfg["bias"]
    sh, sw = cfg["scale"]
    params = {}
    fc = conv_p(g, cfg["dim_c"], 1, 1)
    fc["bn"] = bn_p(g)
    params["first_conv"] = fc
    f, c = cfg["dim_f"], g
    enc, ds = [], []
    for _ in range(n):
        enc.append(tfc_tdf_p(c, l, f, k, bnf, use_bias))
        d = conv_p(c + g, c, sh, sw)
        d["bn"] = bn_p(c + g)
        ds.append(d)
        f //= 2
        c += g
    params["enc"], params["ds"] = enc, ds
    params["bottleneck"] = tfc_tdf_p(c, l, f, k, bnf, use_bias)
    us, dec = [], []
    for _ in range(n):
        u = {"w": nrm((c, c - g, sh, sw)), "b": nrm((c - g,)), "bn": bn_p(c - g)}
        us.append(u)
        f *= 2
        c -= g
        dec.append(tfc_tdf_p(c, l, f, k, bnf, use_bias))
    params["us"], params["dec"] = us, dec
    params["final_conv"] = conv_p(cfg["dim_c"], c, 1, 1)
    return params


if __name__ == "__main__":
    cfg = dict(hop_length=8, num_blocks=4, dim_t=8, n_fft=32, dim_c=2, dim_f=16,
               g=4, k=3, l=1, bn=4, bias=False, scale=(2, 2))
    cfg["chunk_size"] = cfg["hop_length"] * (cfg["dim_t"] - 1)   # 56

    key = jax.random.PRNGKey(0)
    k_param, k_audio = jax.random.split(key)
    params = init_params(k_param, cfg)

    B, C, L = 2, 1, cfg["chunk_size"]            # one chunk -> spec time = dim_t = 8
    audio = jax.random.normal(k_audio, (B, C, L), dtype=jnp.float32)

    fwd = jax.jit(functools.partial(conv_tdf_net_forward, cfg=cfg))
    out = fwd(params, audio)
    jax.block_until_ready(out)
    assert out.shape == (B * C, 1, L), out.shape
    print("KERNEL_OK")
</pallas_src>

<mosaic_0001>
module attributes {stable_mosaic.version = 11 : i64} {
  func.func @_mm_kernel(%arg0: i32, %arg1: i32, %arg2: i32, %arg3: memref<16x32xf32, #tpu.memory_space<vmem>>, %arg4: memref<32x34xf32, #tpu.memory_space<vmem>>, %arg5: memref<16x34xf32, #tpu.memory_space<vmem>>, %arg6: memref<16x34xf32, #tpu.memory_space<vmem>>) attributes {dimension_semantics = [#tpu.dimension_semantics<parallel>, #tpu.dimension_semantics<parallel>, #tpu.dimension_semantics<arbitrary>], iteration_bounds = array<i64: 1, 1, 1>, scalar_prefetch = 0 : i64, scratch_operands = 1 : i64, tpu.core_type = #tpu.core_type<tc>, window_params = [{transform_indices = @transform_0, window_bounds = array<i64: 16, 32>}, {transform_indices = @transform_1, window_bounds = array<i64: 32, 34>}, {transform_indices = @transform_2, window_bounds = array<i64: 16, 34>}]} {
    %c0_i32 = arith.constant 0 : i32
    %0 = arith.cmpi eq, %arg2, %c0_i32 : i32
    %1 = arith.extui %0 : i1 to i32
    %c0_i32_0 = arith.constant 0 : i32
    %2 = arith.cmpi ne, %1, %c0_i32_0 : i32
    scf.if %2 {
      %cst_10 = arith.constant 0.000000e+00 : f32
      %12 = vector.broadcast %cst_10 : f32 to vector<16x34xf32>
      %c0_11 = arith.constant 0 : index
      %c0_12 = arith.constant 0 : index
      %13 = vector.load %arg6[%c0_11, %c0_12] : memref<16x34xf32, #tpu.memory_space<vmem>>, vector<16x34xf32>
      tpu.vector_store %arg6[%c0_11, %c0_12], %12 {strides = array<i32>} : memref<16x34xf32, #tpu.memory_space<vmem>>, vector<16x34xf32>,
    } else {
    }
    %c0 = arith.constant 0 : index
    %c0_1 = arith.constant 0 : index
    %3 = vector.load %arg6[%c0, %c0_1] : memref<16x34xf32, #tpu.memory_space<vmem>>, vector<16x34xf32>
    %c0_2 = arith.constant 0 : index
    %c0_3 = arith.constant 0 : index
    %4 = vector.load %arg3[%c0_2, %c0_3] : memref<16x32xf32, #tpu.memory_space<vmem>>, vector<16x32xf32>
    %c0_4 = arith.constant 0 : index
    %c0_5 = arith.constant 0 : index
    %5 = vector.load %arg4[%c0_4, %c0_5] : memref<32x34xf32, #tpu.memory_space<vmem>>, vector<32x34xf32>
    %cst = arith.constant dense<0.000000e+00> : vector<16x34xf32>
    %6 = tpu.matmul %4, %5, %cst {dimension_numbers = #tpu.dot_dimension_numbers<[1], [0], [0], [1], [0, 0, 1, 1], [], []>} : vector<16x32xf32>, vector<32x34xf32>, vector<16x34xf32> -> vector<16x34xf32>
    %7 = arith.addf %3, %6 : vector<16x34xf32>
    %c0_6 = arith.constant 0 : index
    %c0_7 = arith.constant 0 : index
    %8 = vector.load %arg6[%c0_6, %c0_7] : memref<16x34xf32, #tpu.memory_space<vmem>>, vector<16x34xf32>
    tpu.vector_store %arg6[%c0_6, %c0_7], %7 {strides = array<i32>} : memref<16x34xf32, #tpu.memory_space<vmem>>, vector<16x34xf32>,
    %c0_i32_8 = arith.constant 0 : i32
    %9 = arith.cmpi eq, %arg2, %c0_i32_8 : i32
    %10 = arith.extui %9 : i1 to i32
    %c0_i32_9 = arith.constant 0 : i32
    %11 = arith.cmpi ne, %10, %c0_i32_9 : i32
    scf.if %11 {
      %c0_10 = arith.constant 0 : index
      %c0_11 = arith.constant 0 : index
      %12 = vector.load %arg6[%c0_10, %c0_11] : memref<16x34xf32, #tpu.memory_space<vmem>>, vector<16x34xf32>
      %c0_12 = arith.constant 0 : index
      %c0_13 = arith.constant 0 : index
      %13 = vector.load %arg5[%c0_12, %c0_13] : memref<16x34xf32, #tpu.memory_space<vmem>>, vector<16x34xf32>
      tpu.vector_store %arg5[%c0_12, %c0_13], %12 {strides = array<i32>} : memref<16x34xf32, #tpu.memory_space<vmem>>, vector<16x34xf32>,
    } else {
    }
    return
  }
  func.func @transform_0(%arg0: i32, %arg1: i32, %arg2: i32) -> (i32, i32) {
    %c0_i32 = arith.constant 0 : i32
    return %arg0, %arg2 : i32, i32
  }
  func.func @transform_1(%arg0: i32, %arg1: i32, %arg2: i32) -> (i32, i32) {
    %c0_i32 = arith.constant 0 : i32
    return %arg2, %arg1 : i32, i32
  }
  func.func @transform_2(%arg0: i32, %arg1: i32, %arg2: i32) -> (i32, i32) {
    %c0_i32 = arith.constant 0 : i32
    return %arg0, %arg1 : i32, i32
  }
}

module attributes {stable_mosaic.version = 11 : i64} {
  func.func @_conv_kernel(%arg0: i32, %arg1: i32, %arg2: memref<1x1x2x16xbf16, #tpu.memory_space<vmem>>, %arg3: memref<4x2xbf16, #tpu.memory_space<vmem>>, %arg4: memref<4x1xf32, #tpu.memory_space<vmem>>, %arg5: memref<1x1x4x16xbf16, #tpu.memory_space<vmem>>) attributes {dimension_semantics = [#tpu.dimension_semantics<parallel>, #tpu.dimension_semantics<parallel>], iteration_bounds = array<i64: 2, 8>, scalar_prefetch = 0 : i64, scratch_operands = 0 : i64, tpu.core_type = #tpu.core_type<tc>, window_params = [{transform_indices = @transform_0, window_bounds = array<i64: 1, 1, 2, 16>}, {pipeline_mode = #tpu.pipeline_mode<synchronous>, transform_indices = @transform_1, window_bounds = array<i64: 4, 2>}, {pipeline_mode = #tpu.pipeline_mode<synchronous>, transform_indices = @transform_2, window_bounds = array<i64: 4, 1>}, {transform_indices = @transform_3, window_bounds = array<i64: 1, 1, 4, 16>}]} {
    %c0 = arith.constant 0 : index
    %c0_0 = arith.constant 0 : index
    %c0_1 = arith.constant 0 : index
    %c0_2 = arith.constant 0 : index
    %0 = vector.load %arg2[%c0, %c0_0, %c0_1, %c0_2] : memref<1x1x2x16xbf16, #tpu.memory_space<vmem>>, vector<1x1x2x16xbf16>
    %1 = vector.shape_cast %0 : vector<1x1x2x16xbf16> to vector<2x16xbf16>
    %c0_3 = arith.constant 0 : index
    %c0_4 = arith.constant 0 : index
    %2 = vector.load %arg3[%c0_3, %c0_4] : memref<4x2xbf16, #tpu.memory_space<vmem>>, vector<4x2xbf16>
    %cst = arith.constant dense<0.000000e+00> : vector<4x16xf32>
    %3 = tpu.matmul %2, %1, %cst {dimension_numbers = #tpu.dot_dimension_numbers<[1], [0], [0], [1], [0, 0, 1, 1], [], []>} : vector<4x2xbf16>, vector<2x16xbf16>, vector<4x16xf32> -> vector<4x16xf32>
    %c0_5 = arith.constant 0 : index
    %c0_6 = arith.constant 0 : index
    %4 = vector.load %arg4[%c0_5, %c0_6] : memref<4x1xf32, #tpu.memory_space<vmem>>, vector<4x1xf32>
    %5 = vector.broadcast %4 : vector<4x1xf32> to vector<4x16xf32>
    %6 = arith.addf %3, %5 : vector<4x16xf32>
    %cst_7 = arith.constant 0.000000e+00 : f32
    %7 = vector.broadcast %cst_7 : f32 to vector<4x16xf32>
    %8 = arith.maximumf %6, %7 : vector<4x16xf32>
    %9 = arith.truncf %8 : vector<4x16xf32> to vector<4x16xbf16>
    %c0_8 = arith.constant 0 : index
    %c0_9 = arith.constant 0 : index
    %c0_10 = arith.constant 0 : index
    %c0_11 = arith.constant 0 : index
    %10 = vector.load %arg5[%c0_8, %c0_9, %c0_10, %c0_11] : memref<1x1x4x16xbf16, #tpu.memory_space<vmem>>, vector<1x1x4x16xbf16>
    %11 = vector.shape_cast %10 : vector<1x1x4x16xbf16> to vector<4x16xbf16>
    %12 = vector.shape_cast %9 : vector<4x16xbf16> to vector<1x1x4x16xbf16>
    tpu.vector_store %arg5[%c0_8, %c0_9, %c0_10, %c0_11], %12 {strides = array<i32>} : memref<1x1x4x16xbf16, #tpu.memory_space<vmem>>, vector<1x1x4x16xbf16>,
    return
  }
  func.func @transform_0(%arg0: i32, %arg1: i32) -> (i32, i32, i32, i32) {
    %c1_i32 = arith.constant 1 : i32
    %0 = arith.muli %arg1, %c1_i32 : i32
    %c0_i32 = arith.constant 0 : i32
    %1 = arith.addi %0, %c0_i32 : i32
    %c0_i32_0 = arith.constant 0 : i32
    %c0_i32_1 = arith.constant 0 : i32
    %c0_i32_2 = arith.constant 0 : i32
    return %arg0, %1, %c0_i32_0, %c0_i32_1 : i32, i32, i32, i32
  }
  func.func @transform_1(%arg0: i32, %arg1: i32) -> (i32, i32) {
    %c0_i32 = arith.constant 0 : i32
    %c0_i32_0 = arith.constant 0 : i32
    %c0_i32_1 = arith.constant 0 : i32
    return %c0_i32, %c0_i32_0 : i32, i32
  }
  func.func @transform_2(%arg0: i32, %arg1: i32) -> (i32, i32) {
    %c0_i32 = arith.constant 0 : i32
    %c0_i32_0 = arith.constant 0 : i32
    %c0_i32_1 = arith.constant 0 : i32
    return %c0_i32, %c0_i32_0 : i32, i32
  }
  func.func @transform_3(%arg0: i32, %arg1: i32) -> (i32, i32, i32, i32) {
    %c0_i32 = arith.constant 0 : i32
    %c0_i32_0 = arith.constant 0 : i32
    %c0_i32_1 = arith.constant 0 : i32
    return %arg0, %arg1, %c0_i32, %c0_i32_0 : i32, i32, i32, i32
  }
}

module attributes {stable_mosaic.version = 11 : i64} {
  func.func @_conv_kernel(%arg0: i32, %arg1: i32, %arg2: memref<1x1x16x18xbf16, #tpu.memory_space<vmem>>, %arg3: memref<1x1x16x18xbf16, #tpu.memory_space<vmem>>, %arg4: memref<1x1x16x18xbf16, #tpu.memory_space<vmem>>, %arg5: memref<4x144xbf16, #tpu.memory_space<vmem>>, %arg6: memref<4x1xf32, #tpu.memory_space<vmem>>, %arg7: memref<1x1x4x16xbf16, #tpu.memory_space<vmem>>) attributes {dimension_semantics = [#tpu.dimension_semantics<parallel>, #tpu.dimension_semantics<parallel>], iteration_bounds = array<i64: 2, 8>, scalar_prefetch = 0 : i64, scratch_operands = 0 : i64, tpu.core_type = #tpu.core_type<tc>, window_params = [{transform_indices = @transform_0, window_bounds = array<i64: 1, 1, 16, 18>}, {transform_indices = @transform_1, window_bounds = array<i64: 1, 1, 16, 18>}, {transform_indices = @transform_2, window_bounds = array<i64: 1, 1, 16, 18>}, {pipeline_mode = #tpu.pipeline_mode<synchronous>, transform_indices = @transform_3, window_bounds = array<i64: 4, 144>}, {pipeline_mode = #tpu.pipeline_mode<synchronous>, transform_indices = @transform_4, window_bounds = array<i64: 4, 1>}, {transform_indices = @transform_5, window_bounds = array<i64: 1, 1, 4, 16>}]} {
    %c0 = arith.constant 0 : index
    %c0_0 = arith.constant 0 : index
    %c0_1 = arith.constant 0 : index
    %c0_2 = arith.constant 0 : index
    %0 = vector.load %arg2[%c0, %c0_0, %c0_1, %c0_2] : memref<1x1x16x18xbf16, #tpu.memory_space<vmem>>, vector<1x1x16x18xbf16>
    %1 = vector.shape_cast %0 : vector<1x1x16x18xbf16> to vector<16x18xbf16>
    %2 = vector.extract_strided_slice %1 {offsets = [0, 0], sizes = [16, 16], strides = [1, 1]} : vector<16x18xbf16> to vector<16x16xbf16>
    %3 = vector.extract_strided_slice %1 {offsets = [0, 1], sizes = [16, 16], strides = [1, 1]} : vector<16x18xbf16> to vector<16x16xbf16>
    %4 = vector.extract_strided_slice %1 {offsets = [0, 2], sizes = [16, 16], strides = [1, 1]} : vector<16x18xbf16> to vector<16x16xbf16>
    %c0_3 = arith.constant 0 : index
    %c0_4 = arith.constant 0 : index
    %c0_5 = arith.constant 0 : index
    %c0_6 = arith.constant 0 : index
    %5 = vector.load %arg3[%c0_3, %c0_4, %c0_5, %c0_6] : memref<1x1x16x18xbf16, #tpu.memory_space<vmem>>, vector<1x1x16x18xbf16>
    %6 = vector.shape_cast %5 : vector<1x1x16x18xbf16> to vector<16x18xbf16>
    %7 = vector.extract_strided_slice %6 {offsets = [0, 0], sizes = [16, 16], strides = [1, 1]} : vector<16x18xbf16> to vector<16x16xbf16>
    %8 = vector.extract_strided_slice %6 {offsets = [0, 1], sizes = [16, 16], strides = [1, 1]} : vector<16x18xbf16> to vector<16x16xbf16>
    %9 = vector.extract_strided_slice %6 {offsets = [0, 2], sizes = [16, 16], strides = [1, 1]} : vector<16x18xbf16> to vector<16x16xbf16>
    %c0_7 = arith.constant 0 : index
    %c0_8 = arith.constant 0 : index
    %c0_9 = arith.constant 0 : index
    %c0_10 = arith.constant 0 : index
    %10 = vector.load %arg4[%c0_7, %c0_8, %c0_9, %c0_10] : memref<1x1x16x18xbf16, #tpu.memory_space<vmem>>, vector<1x1x16x18xbf16>
    %11 = vector.shape_cast %10 : vector<1x1x16x18xbf16> to vector<16x18xbf16>
    %12 = vector.extract_strided_slice %11 {offsets = [0, 0], sizes = [16, 16], strides = [1, 1]} : vector<16x18xbf16> to vector<16x16xbf16>
    %13 = vector.extract_strided_slice %11 {offsets = [0, 1], sizes = [16, 16], strides = [1, 1]} : vector<16x18xbf16> to vector<16x16xbf16>
    %14 = vector.extract_strided_slice %11 {offsets = [0, 2], sizes = [16, 16], strides = [1, 1]} : vector<16x18xbf16> to vector<16x16xbf16>
    %15 = tpu.concatenate %2, %3, %4, %7, %8, %9, %12, %13, %14 in 0 : vector<16x16xbf16>, vector<16x16xbf16>, vector<16x16xbf16>, vector<16x16xbf16>, vector<16x16xbf16>, vector<16x16xbf16>, vector<16x16xbf16>, vector<16x16xbf16>, vector<16x16xbf16> -> vector<144x16xbf16>
    %c0_11 = arith.constant 0 : index
    %c0_12 = arith.constant 0 : index
    %16 = vector.load %arg5[%c0_11, %c0_12] : memref<4x144xbf16, #tpu.memory_space<vmem>>, vector<4x144xbf16>
    %cst = arith.constant dense<0.000000e+00> : vector<4x16xf32>
    %17 = tpu.matmul %16, %15, %cst {dimension_numbers = #tpu.dot_dimension_numbers<[1], [0], [0], [1], [0, 0, 1, 1], [], []>} : vector<4x144xbf16>, vector<144x16xbf16>, vector<4x16xf32> -> vector<4x16xf32>
    %c0_13 = arith.constant 0 : index
    %c0_14 = arith.constant 0 : index
    %18 = vector.load %arg6[%c0_13, %c0_14] : memref<4x1xf32, #tpu.memory_space<vmem>>, vector<4x1xf32>
    %19 = vector.broadcast %18 : vector<4x1xf32> to vector<4x16xf32>
    %20 = arith.addf %17, %19 : vector<4x16xf32>
    %cst_15 = arith.constant 0.000000e+00 : f32
    %21 = vector.broadcast %cst_15 : f32 to vector<4x16xf32>
    %22 = arith.maximumf %20, %21 : vector<4x16xf32>
    %23 = arith.truncf %22 : vector<4x16xf32> to vector<4x16xbf16>
    %c0_16 = arith.constant 0 : index
    %c0_17 = arith.constant 0 : index
    %c0_18 = arith.constant 0 : index
    %c0_19 = arith.constant 0 : index
    %24 = vector.load %arg7[%c0_16, %c0_17, %c0_18, %c0_19] : memref<1x1x4x16xbf16, #tpu.memory_space<vmem>>, vector<1x1x4x16xbf16>
    %25 = vector.shape_cast %24 : vector<1x1x4x16xbf16> to vector<4x16xbf16>
    %26 = vector.shape_cast %23 : vector<4x16xbf16> to vector<1x1x4x16xbf16>
    tpu.vector_store %arg7[%c0_16, %c0_17, %c0_18, %c0_19], %26 {strides = array<i32>} : memref<1x1x4x16xbf16, #tpu.memory_space<vmem>>, vector<1x1x4x16xbf16>,
    return
  }
  func.func @transform_0(%arg0: i32, %arg1: i32) -> (i32, i32, i32, i32) {
    %c1_i32 = arith.constant 1 : i32
    %0 = arith.muli %arg1, %c1_i32 : i32
    %c0_i32 = arith.constant 0 : i32
    %1 = arith.addi %0, %c0_i32 : i32
    %c0_i32_0 = arith.constant 0 : i32
    %c0_i32_1 = arith.constant 0 : i32
    %c0_i32_2 = arith.constant 0 : i32
    return %arg0, %1, %c0_i32_0, %c0_i32_1 : i32, i32, i32, i32
  }
  func.func @transform_1(%arg0: i32, %arg1: i32) -> (i32, i32, i32, i32) {
    %c1_i32 = arith.constant 1 : i32
    %0 = arith.muli %arg1, %c1_i32 : i32
    %c1_i32_0 = arith.constant 1 : i32
    %1 = arith.addi %0, %c1_i32_0 : i32
    %c0_i32 = arith.constant 0 : i32
    %c0_i32_1 = arith.constant 0 : i32
    %c0_i32_2 = arith.constant 0 : i32
    return %arg0, %1, %c0_i32, %c0_i32_1 : i32, i32, i32, i32
  }
  func.func @transform_2(%arg0: i32, %arg1: i32) -> (i32, i32, i32, i32) {
    %c1_i32 = arith.constant 1 : i32
    %0 = arith.muli %arg1, %c1_i32 : i32
    %c2_i32 = arith.constant 2 : i32
    %1 = arith.addi %0, %c2_i32 : i32
    %c0_i32 = arith.constant 0 : i32
    %c0_i32_0 = arith.constant 0 : i32
    %c0_i32_1 = arith.constant 0 : i32
    return %arg0, %1, %c0_i32, %c0_i32_0 : i32, i32, i32, i32
  }
  func.func @transform_3(%arg0: i32, %arg1: i32) -> (i32, i32) {
    %c0_i32 = arith.constant 0 : i32
    %c0_i32_0 = arith.constant 0 : i32
    %c0_i32_1 = arith.constant 0 : i32
    return %c0_i32, %c0_i32_0 : i32, i32
  }
  func.func @transform_4(%arg0: i32, %arg1: i32) -> (i32, i32) {
    %c0_i32 = arith.constant 0 : i32
    %c0_i32_0 = arith.constant 0 : i32
    %c0_i32_1 = arith.constant 0 : i32
    return %c0_i32, %c0_i32_0 : i32, i32
  }
  func.func @transform_5(%arg0: i32, %arg1: i32) -> (i32, i32, i32, i32) {
    %c0_i32 = arith.constant 0 : i32
    %c0_i32_0 = arith.constant 0 : i32
    %c0_i32_1 = arith.constant 0 : i32
    return %arg0, %arg1, %c0_i32, %c0_i32_0 : i32, i32, i32, i32
  }
}

module attributes {stable_mosaic.version = 11 : i64} {
  func.func @_tdf_kernel(%arg0: i32, %arg1: memref<64x16xbf16, #tpu.memory_space<vmem>>, %arg2: memref<16x4xbf16, #tpu.memory_space<vmem>>, %arg3: memref<4x16xbf16, #tpu.memory_space<vmem>>, %arg4: memref<1x4xf32, #tpu.memory_space<vmem>>, %arg5: memref<1x16xf32, #tpu.memory_space<vmem>>, %arg6: memref<64x1xf32, #tpu.memory_space<vmem>>, %arg7: memref<64x1xf32, #tpu.memory_space<vmem>>, %arg8: memref<64x1xf32, #tpu.memory_space<vmem>>, %arg9: memref<64x1xf32, #tpu.memory_space<vmem>>, %arg10: memref<64x16xbf16, #tpu.memory_space<vmem>>) attributes {dimension_semantics = [#tpu.dimension_semantics<parallel>], iteration_bounds = array<i64: 1>, scalar_prefetch = 0 : i64, scratch_operands = 0 : i64, tpu.core_type = #tpu.core_type<tc>, window_params = [{transform_indices = @transform_0, window_bounds = array<i64: 64, 16>}, {pipeline_mode = #tpu.pipeline_mode<synchronous>, transform_indices = @transform_1, window_bounds = array<i64: 16, 4>}, {pipeline_mode = #tpu.pipeline_mode<synchronous>, transform_indices = @transform_2, window_bounds = array<i64: 4, 16>}, {pipeline_mode = #tpu.pipeline_mode<synchronous>, transform_indices = @transform_3, window_bounds = array<i64: 1, 4>}, {pipeline_mode = #tpu.pipeline_mode<synchronous>, transform_indices = @transform_4, window_bounds = array<i64: 1, 16>}, {transform_indices = @transform_5, window_bounds = array<i64: 64, 1>}, {transform_indices = @transform_6, window_bounds = array<i64: 64, 1>}, {transform_indices = @transform_7, window_bounds = array<i64: 64, 1>}, {transform_indices = @transform_8, window_bounds = array<i64: 64, 1>}, {transform_indices = @transform_9, window_bounds = array<i64: 64, 16>}]} {
    %c0 = arith.constant 0 : index
    %c0_0 = arith.constant 0 : index
    %0 = vector.load %arg1[%c0, %c0_0] : memref<64x16xbf16, #tpu.memory_space<vmem>>, vector<64x16xbf16>
    %c0_1 = arith.constant 0 : index
    %c0_2 = arith.constant 0 : index
    %1 = vector.load %arg2[%c0_1, %c0_2] : memref<16x4xbf16, #tpu.memory_space<vmem>>, vector<16x4xbf16>
    %cst = arith.constant dense<0.000000e+00> : vector<64x4xf32>
    %2 = tpu.matmul %0, %1, %cst {dimension_numbers = #tpu.dot_dimension_numbers<[1], [0], [0], [1], [0, 0, 1, 1], [], []>} : vector<64x16xbf16>, vector<16x4xbf16>, vector<64x4xf32> -> vector<64x4xf32>
    %c0_3 = arith.constant 0 : index
    %c0_4 = arith.constant 0 : index
    %3 = vector.load %arg4[%c0_3, %c0_4] : memref<1x4xf32, #tpu.memory_space<vmem>>, vector<1x4xf32>
    %4 = vector.broadcast %3 : vector<1x4xf32> to vector<64x4xf32>
    %5 = arith.addf %2, %4 : vector<64x4xf32>
    %c0_5 = arith.constant 0 : index
    %c0_6 = arith.constant 0 : index
    %6 = vector.load %arg6[%c0_5, %c0_6] : memref<64x1xf32, #tpu.memory_space<vmem>>, vector<64x1xf32>
    %7 = vector.broadcast %6 : vector<64x1xf32> to vector<64x4xf32>
    %8 = arith.mulf %5, %7 : vector<64x4xf32>
    %c0_7 = arith.constant 0 : index
    %c0_8 = arith.constant 0 : index
    %9 = vector.load %arg7[%c0_7, %c0_8] : memref<64x1xf32, #tpu.memory_space<vmem>>, vector<64x1xf32>
    %10 = vector.broadcast %9 : vector<64x1xf32> to vector<64x4xf32>
    %11 = arith.addf %8, %10 : vector<64x4xf32>
    %cst_9 = arith.constant 0.000000e+00 : f32
    %12 = vector.broadcast %cst_9 : f32 to vector<64x4xf32>
    %13 = arith.maximumf %11, %12 : vector<64x4xf32>
    %14 = arith.truncf %13 : vector<64x4xf32> to vector<64x4xbf16>
    %c0_10 = arith.constant 0 : index
    %c0_11 = arith.constant 0 : index
    %15 = vector.load %arg3[%c0_10, %c0_11] : memref<4x16xbf16, #tpu.memory_space<vmem>>, vector<4x16xbf16>
    %cst_12 = arith.constant dense<0.000000e+00> : vector<64x16xf32>
    %16 = tpu.matmul %14, %15, %cst_12 {dimension_numbers = #tpu.dot_dimension_numbers<[1], [0], [0], [1], [0, 0, 1, 1], [], []>} : vector<64x4xbf16>, vector<4x16xbf16>, vector<64x16xf32> -> vector<64x16xf32>
    %c0_13 = arith.constant 0 : index
    %c0_14 = arith.constant 0 : index
    %17 = vector.load %arg5[%c0_13, %c0_14] : memref<1x16xf32, #tpu.memory_space<vmem>>, vector<1x16xf32>
    %18 = vector.broadcast %17 : vector<1x16xf32> to vector<64x16xf32>
    %19 = arith.addf %16, %18 : vector<64x16xf32>
    %c0_15 = arith.constant 0 : index
    %c0_16 = arith.constant 0 : index
    %20 = vector.load %arg8[%c0_15, %c0_16] : memref<64x1xf32, #tpu.memory_space<vmem>>, vector<64x1xf32>
    %21 = vector.broadcast %20 : vector<64x1xf32> to vector<64x16xf32>
    %22 = arith.mulf %19, %21 : vector<64x16xf32>
    %c0_17 = arith.constant 0 : index
    %c0_18 = arith.constant 0 : index
    %23 = vector.load %arg9[%c0_17, %c0_18] : memref<64x1xf32, #tpu.memory_space<vmem>>, vector<64x1xf32>
    %24 = vector.broadcast %23 : vector<64x1xf32> to vector<64x16xf32>
    %25 = arith.addf %22, %24 : vector<64x16xf32>
    %cst_19 = arith.constant 0.000000e+00 : f32
    %26 = vector.broadcast %cst_19 : f32 to vector<64x16xf32>
    %27 = arith.maximumf %25, %26 : vector<64x16xf32>
    %28 = arith.extf %0 : vector<64x16xbf16> to vector<64x16xf32>
    %29 = arith.addf %27, %28 : vector<64x16xf32>
    %30 = arith.truncf %29 : vector<64x16xf32> to vector<64x16xbf16>
    %c0_20 = arith.constant 0 : index
    %c0_21 = arith.constant 0 : index
    %31 = vector.load %arg10[%c0_20, %c0_21] : memref<64x16xbf16, #tpu.memory_space<vmem>>, vector<64x16xbf16>
    tpu.vector_store %arg10[%c0_20, %c0_21], %30 {strides = array<i32>} : memref<64x16xbf16, #tpu.memory_space<vmem>>, vector<64x16xbf16>,
    return
  }
  func.func @transform_0(%arg0: i32) -> (i32, i32) {
    %c0_i32 = arith.constant 0 : i32
    %c0_i32_0 = arith.constant 0 : i32
    return %arg0, %c0_i32 : i32, i32
  }
  func.func @transform_1(%arg0: i32) -> (i32, i32) {
    %c0_i32 = arith.constant 0 : i32
    %c0_i32_0 = arith.constant 0 : i32
    %c0_i32_1 = arith.constant 0 : i32
    return %c0_i32, %c0_i32_0 : i32, i32
  }
  func.func @transform_2(%arg0: i32) -> (i32, i32) {
    %c0_i32 = arith.constant 0 : i32
    %c0_i32_0 = arith.constant 0 : i32
    %c0_i32_1 = arith.constant 0 : i32
    return %c0_i32, %c0_i32_0 : i32, i32
  }
  func.func @transform_3(%arg0: i32) -> (i32, i32) {
    %c0_i32 = arith.constant 0 : i32
    %c0_i32_0 = arith.constant 0 : i32
    %c0_i32_1 = arith.constant 0 : i32
    return %c0_i32, %c0_i32_0 : i32, i32
  }
  func.func @transform_4(%arg0: i32) -> (i32, i32) {
    %c0_i32 = arith.constant 0 : i32
    %c0_i32_0 = arith.constant 0 : i32
    %c0_i32_1 = arith.constant 0 : i32
    return %c0_i32, %c0_i32_0 : i32, i32
  }
  func.func @transform_5(%arg0: i32) -> (i32, i32) {
    %c0_i32 = arith.constant 0 : i32
    %c0_i32_0 = arith.constant 0 : i32
    return %arg0, %c0_i32 : i32, i32
  }
  func.func @transform_6(%arg0: i32) -> (i32, i32) {
    %c0_i32 = arith.constant 0 : i32
    %c0_i32_0 = arith.constant 0 : i32
    return %arg0, %c0_i32 : i32, i32
  }
  func.func @transform_7(%arg0: i32) -> (i32, i32) {
    %c0_i32 = arith.constant 0 : i32
    %c0_i32_0 = arith.constant 0 : i32
    return %arg0, %c0_i32 : i32, i32
  }
  func.func @transform_8(%arg0: i32) -> (i32, i32) {
    %c0_i32 = arith.constant 0 : i32
    %c0_i32_0 = arith.constant 0 : i32
    return %arg0, %c0_i32 : i32, i32
  }
  func.func @transform_9(%arg0: i32) -> (i32, i32) {
    %c0_i32 = arith.constant 0 : i32
    %c0_i32_0 = arith.constant 0 : i32
    return %arg0, %c0_i32 : i32, i32
  }
}

module attributes {stable_mosaic.version = 11 : i64} {
  func.func @_conv_kernel(%arg0: i32, %arg1: i32, %arg2: memref<1x1x16x8xbf16, #tpu.memory_space<vmem>>, %arg3: memref<1x1x16x8xbf16, #tpu.memory_space<vmem>>, %arg4: memref<8x32xbf16, #tpu.memory_space<vmem>>, %arg5: memref<8x1xf32, #tpu.memory_space<vmem>>, %arg6: memref<1x1x8x8xbf16, #tpu.memory_space<vmem>>) attributes {dimension_semantics = [#tpu.dimension_semantics<parallel>, #tpu.dimension_semantics<parallel>], iteration_bounds = array<i64: 2, 4>, scalar_prefetch = 0 : i64, scratch_operands = 0 : i64, tpu.core_type = #tpu.core_type<tc>, window_params = [{transform_indices = @transform_0, window_bounds = array<i64: 1, 1, 16, 8>}, {transform_indices = @transform_1, window_bounds = array<i64: 1, 1, 16, 8>}, {pipeline_mode = #tpu.pipeline_mode<synchronous>, transform_indices = @transform_2, window_bounds = array<i64: 8, 32>}, {pipeline_mode = #tpu.pipeline_mode<synchronous>, transform_indices = @transform_3, window_bounds = array<i64: 8, 1>}, {transform_indices = @transform_4, window_bounds = array<i64: 1, 1, 8, 8>}]} {
    %c0 = arith.constant 0 : index
    %c0_0 = arith.constant 0 : index
    %c0_1 = arith.constant 0 : index
    %c0_2 = arith.constant 0 : index
    %0 = vector.load %arg2[%c0, %c0_0, %c0_1, %c0_2] : memref<1x1x16x8xbf16, #tpu.memory_space<vmem>>, vector<1x1x16x8xbf16>
    %1 = vector.shape_cast %0 : vector<1x1x16x8xbf16> to vector<16x8xbf16>
    %c0_3 = arith.constant 0 : index
    %c0_4 = arith.constant 0 : index
    %c0_5 = arith.constant 0 : index
    %c0_6 = arith.constant 0 : index
    %2 = vector.load %arg3[%c0_3, %c0_4, %c0_5, %c0_6] : memref<1x1x16x8xbf16, #tpu.memory_space<vmem>>, vector<1x1x16x8xbf16>
    %3 = vector.shape_cast %2 : vector<1x1x16x8xbf16> to vector<16x8xbf16>
    %4 = tpu.concatenate %1, %3 in 0 : vector<16x8xbf16>, vector<16x8xbf16> -> vector<32x8xbf16>
    %c0_7 = arith.constant 0 : index
    %c0_8 = arith.constant 0 : index
    %5 = vector.load %arg4[%c0_7, %c0_8] : memref<8x32xbf16, #tpu.memory_space<vmem>>, vector<8x32xbf16>
    %cst = arith.constant dense<0.000000e+00> : vector<8x8xf32>
    %6 = tpu.matmul %5, %4, %cst {dimension_numbers = #tpu.dot_dimension_numbers<[1], [0], [0], [1], [0, 0, 1, 1], [], []>} : vector<8x32xbf16>, vector<32x8xbf16>, vector<8x8xf32> -> vector<8x8xf32>
    %c0_9 = arith.constant 0 : index
    %c0_10 = arith.constant 0 : index
    %7 = vector.load %arg5[%c0_9, %c0_10] : memref<8x1xf32, #tpu.memory_space<vmem>>, vector<8x1xf32>
    %8 = vector.broadcast %7 : vector<8x1xf32> to vector<8x8xf32>
    %9 = arith.addf %6, %8 : vector<8x8xf32>
    %cst_11 = arith.constant 0.000000e+00 : f32
    %10 = vector.broadcast %cst_11 : f32 to vector<8x8xf32>
    %11 = arith.maximumf %9, %10 : vector<8x8xf32>
    %12 = arith.truncf %11 : vector<8x8xf32> to vector<8x8xbf16>
    %c0_12 = arith.constant 0 : index
    %c0_13 = arith.constant 0 : index
    %c0_14 = arith.constant 0 : index
    %c0_15 = arith.constant 0 : index
    %13 = vector.load %arg6[%c0_12, %c0_13, %c0_14, %c0_15] : memref<1x1x8x8xbf16, #tpu.memory_space<vmem>>, vector<1x1x8x8xbf16>
    %14 = vector.shape_cast %13 : vector<1x1x8x8xbf16> to vector<8x8xbf16>
    %15 = vector.shape_cast %12 : vector<8x8xbf16> to vector<1x1x8x8xbf16>
    tpu.vector_store %arg6[%c0_12, %c0_13, %c0_14, %c0_15], %15 {strides = array<i32>} : memref<1x1x8x8xbf16, #tpu.memory_space<vmem>>, vector<1x1x8x8xbf16>,
    return
  }
  func.func @transform_0(%arg0: i32, %arg1: i32) -> (i32, i32, i32, i32) {
    %c2_i32 = arith.constant 2 : i32
    %0 = arith.muli %arg1, %c2_i32 : i32
    %c0_i32 = arith.constant 0 : i32
    %1 = arith.addi %0, %c0_i32 : i32
    %c0_i32_0 = arith.constant 0 : i32
    %c0_i32_1 = arith.constant 0 : i32
    %c0_i32_2 = arith.constant 0 : i32
    return %arg0, %1, %c0_i32_0, %c0_i32_1 : i32, i32, i32, i32
  }
  func.func @transform_1(%arg0: i32, %arg1: i32) -> (i32, i32, i32, i32) {
    %c2_i32 = arith.constant 2 : i32
    %0 = arith.muli %arg1, %c2_i32 : i32
    %c1_i32 = arith.constant 1 : i32
    %1 = arith.addi %0, %c1_i32 : i32
    %c0_i32 = arith.constant 0 : i32
    %c0_i32_0 = arith.constant 0 : i32
    %c0_i32_1 = arith.constant 0 : i32
    return %arg0, %1, %c0_i32, %c0_i32_0 : i32, i32, i32, i32
  }
  func.func @transform_2(%arg0: i32, %arg1: i32) -> (i32, i32) {
    %c0_i32 = arith.constant 0 : i32
    %c0_i32_0 = arith.constant 0 : i32
    %c0_i32_1 = arith.constant 0 : i32
    return %c0_i32, %c0_i32_0 : i32, i32
  }
  func.func @transform_3(%arg0: i32, %arg1: i32) -> (i32, i32) {
    %c0_i32 = arith.constant 0 : i32
    %c0_i32_0 = arith.constant 0 : i32
    %c0_i32_1 = arith.constant 0 : i32
    return %c0_i32, %c0_i32_0 : i32, i32
  }
  func.func @transform_4(%arg0: i32, %arg1: i32) -> (i32, i32, i32, i32) {
    %c0_i32 = arith.constant 0 : i32
    %c0_i32_0 = arith.constant 0 : i32
    %c0_i32_1 = arith.constant 0 : i32
    return %arg0, %arg1, %c0_i32, %c0_i32_0 : i32, i32, i32, i32
  }
}

module attributes {stable_mosaic.version = 11 : i64} {
  func.func @_tdf_kernel(%arg0: i32, %arg1: memref<64x8xbf16, #tpu.memory_space<vmem>>, %arg2: memref<8x2xbf16, #tpu.memory_space<vmem>>, %arg3: memref<2x8xbf16, #tpu.memory_space<vmem>>, %arg4: memref<1x2xf32, #tpu.memory_space<vmem>>, %arg5: memref<1x8xf32, #tpu.memory_space<vmem>>, %arg6: memref<64x1xf32, #tpu.memory_space<vmem>>, %arg7: memref<64x1xf32, #tpu.memory_space<vmem>>, %arg8: memref<64x1xf32, #tpu.memory_space<vmem>>, %arg9: memref<64x1xf32, #tpu.memory_space<vmem>>, %arg10: memref<64x8xbf16, #tpu.memory_space<vmem>>) attributes {dimension_semantics = [#tpu.dimension_semantics<parallel>], iteration_bounds = array<i64: 1>, scalar_prefetch = 0 : i64, scratch_operands = 0 : i64, tpu.core_type = #tpu.core_type<tc>, window_params = [{transform_indices = @transform_0, window_bounds = array<i64: 64, 8>}, {pipeline_mode = #tpu.pipeline_mode<synchronous>, transform_indices = @transform_1, window_bounds = array<i64: 8, 2>}, {pipeline_mode = #tpu.pipeline_mode<synchronous>, transform_indices = @transform_2, window_bounds = array<i64: 2, 8>}, {pipeline_mode = #tpu.pipeline_mode<synchronous>, transform_indices = @transform_3, window_bounds = array<i64: 1, 2>}, {pipeline_mode = #tpu.pipeline_mode<synchronous>, transform_indices = @transform_4, window_bounds = array<i64: 1, 8>}, {transform_indices = @transform_5, window_bounds = array<i64: 64, 1>}, {transform_indices = @transform_6, window_bounds = array<i64: 64, 1>}, {transform_indices = @transform_7, window_bounds = array<i64: 64, 1>}, {transform_indices = @transform_8, window_bounds = array<i64: 64, 1>}, {transform_indices = @transform_9, window_bounds = array<i64: 64, 8>}]} {
    %c0 = arith.constant 0 : index
    %c0_0 = arith.constant 0 : index
    %0 = vector.load %arg1[%c0, %c0_0] : memref<64x8xbf16, #tpu.memory_space<vmem>>, vector<64x8xbf16>
    %c0_1 = arith.constant 0 : index
    %c0_2 = arith.constant 0 : index
    %1 = vector.load %arg2[%c0_1, %c0_2] : memref<8x2xbf16, #tpu.memory_space<vmem>>, vector<8x2xbf16>
    %cst = arith.constant dense<0.000000e+00> : vector<64x2xf32>
    %2 = tpu.matmul %0, %1, %cst {dimension_numbers = #tpu.dot_dimension_numbers<[1], [0], [0], [1], [0, 0, 1, 1], [], []>} : vector<64x8xbf16>, vector<8x2xbf16>, vector<64x2xf32> -> vector<64x2xf32>
    %c0_3 = arith.constant 0 : index
    %c0_4 = arith.constant 0 : index
    %3 = vector.load %arg4[%c0_3, %c0_4] : memref<1x2xf32, #tpu.memory_space<vmem>>, vector<1x2xf32>
    %4 = vector.broadcast %3 : vector<1x2xf32> to vector<64x2xf32>
    %5 = arith.addf %2, %4 : vector<64x2xf32>
    %c0_5 = arith.constant 0 : index
    %c0_6 = arith.constant 0 : index
    %6 = vector.load %arg6[%c0_5, %c0_6] : memref<64x1xf32, #tpu.memory_space<vmem>>, vector<64x1xf32>
    %7 = vector.broadcast %6 : vector<64x1xf32> to vector<64x2xf32>
    %8 = arith.mulf %5, %7 : vector<64x2xf32>
    %c0_7 = arith.constant 0 : index
    %c0_8 = arith.constant 0 : index
    %9 = vector.load %arg7[%c0_7, %c0_8] : memref<64x1xf32, #tpu.memory_space<vmem>>, vector<64x1xf32>
    %10 = vector.broadcast %9 : vector<64x1xf32> to vector<64x2xf32>
    %11 = arith.addf %8, %10 : vector<64x2xf32>
    %cst_9 = arith.constant 0.000000e+00 : f32
    %12 = vector.broadcast %cst_9 : f32 to vector<64x2xf32>
    %13 = arith.maximumf %11, %12 : vector<64x2xf32>
    %14 = arith.truncf %13 : vector<64x2xf32> to vector<64x2xbf16>
    %c0_10 = arith.constant 0 : index
    %c0_11 = arith.constant 0 : index
    %15 = vector.load %arg3[%c0_10, %c0_11] : memref<2x8xbf16, #tpu.memory_space<vmem>>, vector<2x8xbf16>
    %cst_12 = arith.constant dense<0.000000e+00> : vector<64x8xf32>
    %16 = tpu.matmul %14, %15, %cst_12 {dimension_numbers = #tpu.dot_dimension_numbers<[1], [0], [0], [1], [0, 0, 1, 1], [], []>} : vector<64x2xbf16>, vector<2x8xbf16>, vector<64x8xf32> -> vector<64x8xf32>
    %c0_13 = arith.constant 0 : index
    %c0_14 = arith.constant 0 : index
    %17 = vector.load %arg5[%c0_13, %c0_14] : memref<1x8xf32, #tpu.memory_space<vmem>>, vector<1x8xf32>
    %18 = vector.broadcast %17 : vector<1x8xf32> to vector<64x8xf32>
    %19 = arith.addf %16, %18 : vector<64x8xf32>
    %c0_15 = arith.constant 0 : index
    %c0_16 = arith.constant 0 : index
    %20 = vector.load %arg8[%c0_15, %c0_16] : memref<64x1xf32, #tpu.memory_space<vmem>>, vector<64x1xf32>
    %21 = vector.broadcast %20 : vector<64x1xf32> to vector<64x8xf32>
    %22 = arith.mulf %19, %21 : vector<64x8xf32>
    %c0_17 = arith.constant 0 : index
    %c0_18 = arith.constant 0 : index
    %23 = vector.load %arg9[%c0_17, %c0_18] : memref<64x1xf32, #tpu.memory_space<vmem>>, vector<64x1xf32>
    %24 = vector.broadcast %23 : vector<64x1xf32> to vector<64x8xf32>
    %25 = arith.addf %22, %24 : vector<64x8xf32>
    %cst_19 = arith.constant 0.000000e+00 : f32
    %26 = vector.broadcast %cst_19 : f32 to vector<64x8xf32>
    %27 = arith.maximumf %25, %26 : vector<64x8xf32>
    %28 = arith.extf %0 : vector<64x8xbf16> to vector<64x8xf32>
    %29 = arith.addf %27, %28 : vector<64x8xf32>
    %30 = arith.truncf %29 : vector<64x8xf32> to vector<64x8xbf16>
    %c0_20 = arith.constant 0 : index
    %c0_21 = arith.constant 0 : index
    %31 = vector.load %arg10[%c0_20, %c0_21] : memref<64x8xbf16, #tpu.memory_space<vmem>>, vector<64x8xbf16>
    tpu.vector_store %arg10[%c0_20, %c0_21], %30 {strides = array<i32>} : memref<64x8xbf16, #tpu.memory_space<vmem>>, vector<64x8xbf16>,
    return
  }
  func.func @transform_0(%arg0: i32) -> (i32, i32) {
    %c0_i32 = arith.constant 0 : i32
    %c0_i32_0 = arith.constant 0 : i32
    return %arg0, %c0_i32 : i32, i32
  }
  func.func @transform_1(%arg0: i32) -> (i32, i32) {
    %c0_i32 = arith.constant 0 : i32
    %c0_i32_0 = arith.constant 0 : i32
    %c0_i32_1 = arith.constant 0 : i32
    return %c0_i32, %c0_i32_0 : i32, i32
  }
  func.func @transform_2(%arg0: i32) -> (i32, i32) {
    %c0_i32 = arith.constant 0 : i32
    %c0_i32_0 = arith.constant 0 : i32
    %c0_i32_1 = arith.constant 0 : i32
    return %c0_i32, %c0_i32_0 : i32, i32
  }
  func.func @transform_3(%arg0: i32) -> (i32, i32) {
    %c0_i32 = arith.constant 0 : i32
    %c0_i32_0 = arith.constant 0 : i32
    %c0_i32_1 = arith.constant 0 : i32
    return %c0_i32, %c0_i32_0 : i32, i32
  }
  func.func @transform_4(%arg0: i32) -> (i32, i32) {
    %c0_i32 = arith.constant 0 : i32
    %c0_i32_0 = arith.constant 0 : i32
    %c0_i32_1 = arith.constant 0 : i32
    return %c0_i32, %c0_i32_0 : i32, i32
  }
  func.func @transform_5(%arg0: i32) -> (i32, i32) {
    %c0_i32 = arith.constant 0 : i32
    %c0_i32_0 = arith.constant 0 : i32
    return %arg0, %c0_i32 : i32, i32
  }
  func.func @transform_6(%arg0: i32) -> (i32, i32) {
    %c0_i32 = arith.constant 0 : i32
    %c0_i32_0 = arith.constant 0 : i32
    return %arg0, %c0_i32 : i32, i32
  }
  func.func @transform_7(%arg0: i32) -> (i32, i32) {
    %c0_i32 = arith.constant 0 : i32
    %c0_i32_0 = arith.constant 0 : i32
    return %arg0, %c0_i32 : i32, i32
  }
  func.func @transform_8(%arg0: i32) -> (i32, i32) {
    %c0_i32 = arith.constant 0 : i32
    %c0_i32_0 = arith.constant 0 : i32
    return %arg0, %c0_i32 : i32, i32
  }
  func.func @transform_9(%arg0: i32) -> (i32, i32) {
    %c0_i32 = arith.constant 0 : i32
    %c0_i32_0 = arith.constant 0 : i32
    return %arg0, %c0_i32 : i32, i32
  }
}

module attributes {stable_mosaic.version = 11 : i64} {
  func.func @_conv_kernel(%arg0: i32, %arg1: i32, %arg2: memref<1x1x16x10xbf16, #tpu.memory_space<vmem>>, %arg3: memref<1x1x16x10xbf16, #tpu.memory_space<vmem>>, %arg4: memref<1x1x16x10xbf16, #tpu.memory_space<vmem>>, %arg5: memref<8x144xbf16, #tpu.memory_space<vmem>>, %arg6: memref<8x1xf32, #tpu.memory_space<vmem>>, %arg7: memref<1x1x8x8xbf16, #tpu.memory_space<vmem>>) attributes {dimension_semantics = [#tpu.dimension_semantics<parallel>, #tpu.dimension_semantics<parallel>], iteration_bounds = array<i64: 2, 4>, scalar_prefetch = 0 : i64, scratch_operands = 0 : i64, tpu.core_type = #tpu.core_type<tc>, window_params = [{transform_indices = @transform_0, window_bounds = array<i64: 1, 1, 16, 10>}, {transform_indices = @transform_1, window_bounds = array<i64: 1, 1, 16, 10>}, {transform_indices = @transform_2, window_bounds = array<i64: 1, 1, 16, 10>}, {pipeline_mode = #tpu.pipeline_mode<synchronous>, transform_indices = @transform_3, window_bounds = array<i64: 8, 144>}, {pipeline_mode = #tpu.pipeline_mode<synchronous>, transform_indices = @transform_4, window_bounds = array<i64: 8, 1>}, {transform_indices = @transform_5, window_bounds = array<i64: 1, 1, 8, 8>}]} {
    %c0 = arith.constant 0 : index
    %c0_0 = arith.constant 0 : index
    %c0_1 = arith.constant 0 : index
    %c0_2 = arith.constant 0 : index
    %0 = vector.load %arg2[%c0, %c0_0, %c0_1, %c0_2] : memref<1x1x16x10xbf16, #tpu.memory_space<vmem>>, vector<1x1x16x10xbf16>
    %1 = vector.shape_cast %0 : vector<1x1x16x10xbf16> to vector<16x10xbf16>
    %2 = vector.extract_strided_slice %1 {offsets = [0, 0], sizes = [16, 8], strides = [1, 1]} : vector<16x10xbf16> to vector<16x8xbf16>
    %3 = vector.extract_strided_slice %1 {offsets = [0, 1], sizes = [16, 8], strides = [1, 1]} : vector<16x10xbf16> to vector<16x8xbf16>
    %4 = vector.extract_strided_slice %1 {offsets = [0, 2], sizes = [16, 8], strides = [1, 1]} : vector<16x10xbf16> to vector<16x8xbf16>
    %c0_3 = arith.constant 0 : index
    %c0_4 = arith.constant 0 : index
    %c0_5 = arith.constant 0 : index
    %c0_6 = arith.constant 0 : index
    %5 = vector.load %arg3[%c0_3, %c0_4, %c0_5, %c0_6] : memref<1x1x16x10xbf16, #tpu.memory_space<vmem>>, vector<1x1x16x10xbf16>
    %6 = vector.shape_cast %5 : vector<1x1x16x10xbf16> to vector<16x10xbf16>
    %7 = vector.extract_strided_slice %6 {offsets = [0, 0], sizes = [16, 8], strides = [1, 1]} : vector<16x10xbf16> to vector<16x8xbf16>
    %8 = vector.extract_strided_slice %6 {offsets = [0, 1], sizes = [16, 8], strides = [1, 1]} : vector<16x10xbf16> to vector<16x8xbf16>
    %9 = vector.extract_strided_slice %6 {offsets = [0, 2], sizes = [16, 8], strides = [1, 1]} : vector<16x10xbf16> to vector<16x8xbf16>
    %c0_7 = arith.constant 0 : index
    %c0_8 = arith.constant 0 : index
    %c0_9 = arith.constant 0 : index
    %c0_10 = arith.constant 0 : index
    %10 = vector.load %arg4[%c0_7, %c0_8, %c0_9, %c0_10] : memref<1x1x16x10xbf16, #tpu.memory_space<vmem>>, vector<1x1x16x10xbf16>
    %11 = vector.shape_cast %10 : vector<1x1x16x10xbf16> to vector<16x10xbf16>
    %12 = vector.extract_strided_slice %11 {offsets = [0, 0], sizes = [16, 8], strides = [1, 1]} : vector<16x10xbf16> to vector<16x8xbf16>
    %13 = vector.extract_strided_slice %11 {offsets = [0, 1], sizes = [16, 8], strides = [1, 1]} : vector<16x10xbf16> to vector<16x8xbf16>
    %14 = vector.extract_strided_slice %11 {offsets = [0, 2], sizes = [16, 8], strides = [1, 1]} : vector<16x10xbf16> to vector<16x8xbf16>
    %15 = tpu.concatenate %2, %3, %4, %7, %8, %9, %12, %13, %14 in 0 : vector<16x8xbf16>, vector<16x8xbf16>, vector<16x8xbf16>, vector<16x8xbf16>, vector<16x8xbf16>, vector<16x8xbf16>, vector<16x8xbf16>, vector<16x8xbf16>, vector<16x8xbf16> -> vector<144x8xbf16>
    %c0_11 = arith.constant 0 : index
    %c0_12 = arith.constant 0 : index
    %16 = vector.load %arg5[%c0_11, %c0_12] : memref<8x144xbf16, #tpu.memory_space<vmem>>, vector<8x144xbf16>
    %cst = arith.constant dense<0.000000e+00> : vector<8x8xf32>
    %17 = tpu.matmul %16, %15, %cst {dimension_numbers = #tpu.dot_dimension_numbers<[1], [0], [0], [1], [0, 0, 1, 1], [], []>} : vector<8x144xbf16>, vector<144x8xbf16>, vector<8x8xf32> -> vector<8x8xf32>
    %c0_13 = arith.constant 0 : index
    %c0_14 = arith.constant 0 : index
    %18 = vector.load %arg6[%c0_13, %c0_14] : memref<8x1xf32, #tpu.memory_space<vmem>>, vector<8x1xf32>
    %19 = vector.broadcast %18 : vector<8x1xf32> to vector<8x8xf32>
    %20 = arith.addf %17, %19 : vector<8x8xf32>
    %cst_15 = arith.constant 0.000000e+00 : f32
    %21 = vector.broadcast %cst_15 : f32 to vector<8x8xf32>
    %22 = arith.maximumf %20, %21 : vector<8x8xf32>
    %23 = arith.truncf %22 : vector<8x8xf32> to vector<8x8xbf16>
    %c0_16 = arith.constant 0 : index
    %c0_17 = arith.constant 0 : index
    %c0_18 = arith.constant 0 : index
    %c0_19 = arith.constant 0 : index
    %24 = vector.load %arg7[%c0_16, %c0_17, %c0_18, %c0_19] : memref<1x1x8x8xbf16, #tpu.memory_space<vmem>>, vector<1x1x8x8xbf16>
    %25 = vector.shape_cast %24 : vector<1x1x8x8xbf16> to vector<8x8xbf16>
    %26 = vector.shape_cast %23 : vector<8x8xbf16> to vector<1x1x8x8xbf16>
    tpu.vector_store %arg7[%c0_16, %c0_17, %c0_18, %c0_19], %26 {strides = array<i32>} : memref<1x1x8x8xbf16, #tpu.memory_space<vmem>>, vector<1x1x8x8xbf16>,
    return
  }
  func.func @transform_0(%arg0: i32, %arg1: i32) -> (i32, i32, i32, i32) {
    %c1_i32 = arith.constant 1 : i32
    %0 = arith.muli %arg1, %c1_i32 : i32
    %c0_i32 = arith.constant 0 : i32
    %1 = arith.addi %0, %c0_i32 : i32
    %c0_i32_0 = arith.constant 0 : i32
    %c0_i32_1 = arith.constant 0 : i32
    %c0_i32_2 = arith.constant 0 : i32
    return %arg0, %1, %c0_i32_0, %c0_i32_1 : i32, i32, i32, i32
  }
  func.func @transform_1(%arg0: i32, %arg1: i32) -> (i32, i32, i32, i32) {
    %c1_i32 = arith.constant 1 : i32
    %0 = arith.muli %arg1, %c1_i32 : i32
    %c1_i32_0 = arith.constant 1 : i32
    %1 = arith.addi %0, %c1_i32_0 : i32
    %c0_i32 = arith.constant 0 : i32
    %c0_i32_1 = arith.constant 0 : i32
    %c0_i32_2 = arith.constant 0 : i32
    return %arg0, %1, %c0_i32, %c0_i32_1 : i32, i32, i32, i32
  }
  func.func @transform_2(%arg0: i32, %arg1: i32) -> (i32, i32, i32, i32) {
    %c1_i32 = arith.constant 1 : i32
    %0 = arith.muli %arg1, %c1_i32 : i32
    %c2_i32 = arith.constant 2 : i32
    %1 = arith.addi %0, %c2_i32 : i32
    %c0_i32 = arith.constant 0 : i32
    %c0_i32_0 = arith.constant 0 : i32
    %c0_i32_1 = arith.constant 0 : i32
    return %arg0, %1, %c0_i32, %c0_i32_0 : i32, i32, i32, i32
  }
  func.func @transform_3(%arg0: i32, %arg1: i32) -> (i32, i32) {
    %c0_i32 = arith.constant 0 : i32
    %c0_i32_0 = arith.constant 0 : i32
    %c0_i32_1 = arith.constant 0 : i32
    return %c0_i32, %c0_i32_0 : i32, i32
  }
  func.func @transform_4(%arg0: i32, %arg1: i32) -> (i32, i32) {
    %c0_i32 = arith.constant 0 : i32
    %c0_i32_0 = arith.constant 0 : i32
    %c0_i32_1 = arith.constant 0 : i32
    return %c0_i32, %c0_i32_0 : i32, i32
  }
  func.func @transform_5(%arg0: i32, %arg1: i32) -> (i32, i32, i32, i32) {
    %c0_i32 = arith.constant 0 : i32
    %c0_i32_0 = arith.constant 0 : i32
    %c0_i32_1 = arith.constant 0 : i32
    return %arg0, %arg1, %c0_i32, %c0_i32_0 : i32, i32, i32, i32
  }
}

module attributes {stable_mosaic.version = 11 : i64} {
  func.func @_conv_kernel(%arg0: i32, %arg1: i32, %arg2: memref<1x1x16x4xbf16, #tpu.memory_space<vmem>>, %arg3: memref<1x1x16x4xbf16, #tpu.memory_space<vmem>>, %arg4: memref<12x32xbf16, #tpu.memory_space<vmem>>, %arg5: memref<12x1xf32, #tpu.memory_space<vmem>>, %arg6: memref<1x1x12x4xbf16, #tpu.memory_space<vmem>>) attributes {dimension_semantics = [#tpu.dimension_semantics<parallel>, #tpu.dimension_semantics<parallel>], iteration_bounds = array<i64: 2, 2>, scalar_prefetch = 0 : i64, scratch_operands = 0 : i64, tpu.core_type = #tpu.core_type<tc>, window_params = [{transform_indices = @transform_0, window_bounds = array<i64: 1, 1, 16, 4>}, {transform_indices = @transform_1, window_bounds = array<i64: 1, 1, 16, 4>}, {pipeline_mode = #tpu.pipeline_mode<synchronous>, transform_indices = @transform_2, window_bounds = array<i64: 12, 32>}, {pipeline_mode = #tpu.pipeline_mode<synchronous>, transform_indices = @transform_3, window_bounds = array<i64: 12, 1>}, {transform_indices = @transform_4, window_bounds = array<i64: 1, 1, 12, 4>}]} {
    %c0 = arith.constant 0 : index
    %c0_0 = arith.constant 0 : index
    %c0_1 = arith.constant 0 : index
    %c0_2 = arith.constant 0 : index
    %0 = vector.load %arg2[%c0, %c0_0, %c0_1, %c0_2] : memref<1x1x16x4xbf16, #tpu.memory_space<vmem>>, vector<1x1x16x4xbf16>
    %1 = vector.shape_cast %0 : vector<1x1x16x4xbf16> to vector<16x4xbf16>
    %c0_3 = arith.constant 0 : index
    %c0_4 = arith.constant 0 : index
    %c0_5 = arith.constant 0 : index
    %c0_6 = arith.constant 0 : index
    %2 = vector.load %arg3[%c0_3, %c0_4, %c0_5, %c0_6] : memref<1x1x16x4xbf16, #tpu.memory_space<vmem>>, vector<1x1x16x4xbf16>
    %3 = vector.shape_cast %2 : vector<1x1x16x4xbf16> to vector<16x4xbf16>
    %4 = tpu.concatenate %1, %3 in 0 : vector<16x4xbf16>, vector<16x4xbf16> -> vector<32x4xbf16>
    %c0_7 = arith.constant 0 : index
    %c0_8 = arith.constant 0 : index
    %5 = vector.load %arg4[%c0_7, %c0_8] : memref<12x32xbf16, #tpu.memory_space<vmem>>, vector<12x32xbf16>
    %cst = arith.constant dense<0.000000e+00> : vector<12x4xf32>
    %6 = tpu.matmul %5, %4, %cst {dimension_numbers = #tpu.dot_dimension_numbers<[1], [0], [0], [1], [0, 0, 1, 1], [], []>} : vector<12x32xbf16>, vector<32x4xbf16>, vector<12x4xf32> -> vector<12x4xf32>
    %c0_9 = arith.constant 0 : index
    %c0_10 = arith.constant 0 : index
    %7 = vector.load %arg5[%c0_9, %c0_10] : memref<12x1xf32, #tpu.memory_space<vmem>>, vector<12x1xf32>
    %8 = vector.broadcast %7 : vector<12x1xf32> to vector<12x4xf32>
    %9 = arith.addf %6, %8 : vector<12x4xf32>
    %cst_11 = arith.constant 0.000000e+00 : f32
    %10 = vector.broadcast %cst_11 : f32 to vector<12x4xf32>
    %11 = arith.maximumf %9, %10 : vector<12x4xf32>
    %12 = arith.truncf %11 : vector<12x4xf32> to vector<12x4xbf16>
    %c0_12 = arith.constant 0 : index
    %c0_13 = arith.constant 0 : index
    %c0_14 = arith.constant 0 : index
    %c0_15 = arith.constant 0 : index
    %13 = vector.load %arg6[%c0_12, %c0_13, %c0_14, %c0_15] : memref<1x1x12x4xbf16, #tpu.memory_space<vmem>>, vector<1x1x12x4xbf16>
    %14 = vector.shape_cast %13 : vector<1x1x12x4xbf16> to vector<12x4xbf16>
    %15 = vector.shape_cast %12 : vector<12x4xbf16> to vector<1x1x12x4xbf16>
    tpu.vector_store %arg6[%c0_12, %c0_13, %c0_14, %c0_15], %15 {strides = array<i32>} : memref<1x1x12x4xbf16, #tpu.memory_space<vmem>>, vector<1x1x12x4xbf16>,
    return
  }
  func.func @transform_0(%arg0: i32, %arg1: i32) -> (i32, i32, i32, i32) {
    %c2_i32 = arith.constant 2 : i32
    %0 = arith.muli %arg1, %c2_i32 : i32
    %c0_i32 = arith.constant 0 : i32
    %1 = arith.addi %0, %c0_i32 : i32
    %c0_i32_0 = arith.constant 0 : i32
    %c0_i32_1 = arith.constant 0 : i32
    %c0_i32_2 = arith.constant 0 : i32
    return %arg0, %1, %c0_i32_0, %c0_i32_1 : i32, i32, i32, i32
  }
  func.func @transform_1(%arg0: i32, %arg1: i32) -> (i32, i32, i32, i32) {
    %c2_i32 = arith.constant 2 : i32
    %0 = arith.muli %arg1, %c2_i32 : i32
    %c1_i32 = arith.constant 1 : i32
    %1 = arith.addi %0, %c1_i32 : i32
    %c0_i32 = arith.constant 0 : i32
    %c0_i32_0 = arith.constant 0 : i32
    %c0_i32_1 = arith.constant 0 : i32
    return %arg0, %1, %c0_i32, %c0_i32_0 : i32, i32, i32, i32
  }
  func.func @transform_2(%arg0: i32, %arg1: i32) -> (i32, i32) {
    %c0_i32 = arith.constant 0 : i32
    %c0_i32_0 = arith.constant 0 : i32
    %c0_i32_1 = arith.constant 0 : i32
    return %c0_i32, %c0_i32_0 : i32, i32
  }
  func.func @transform_3(%arg0: i32, %arg1: i32) -> (i32, i32) {
    %c0_i32 = arith.constant 0 : i32
    %c0_i32_0 = arith.constant 0 : i32
    %c0_i32_1 = arith.constant 0 : i32
    return %c0_i32, %c0_i32_0 : i32, i32
  }
  func.func @transform_4(%arg0: i32, %arg1: i32) -> (i32, i32, i32, i32) {
    %c0_i32 = arith.constant 0 : i32
    %c0_i32_0 = arith.constant 0 : i32
    %c0_i32_1 = arith.constant 0 : i32
    return %arg0, %arg1, %c0_i32, %c0_i32_0 : i32, i32, i32, i32
  }
}

module attributes {stable_mosaic.version = 11 : i64} {
  func.func @_conv_kernel(%arg0: i32, %arg1: i32, %arg2: memref<1x1x16x6xbf16, #tpu.memory_space<vmem>>, %arg3: memref<1x1x16x6xbf16, #tpu.memory_space<vmem>>, %arg4: memref<1x1x16x6xbf16, #tpu.memory_space<vmem>>, %arg5: memref<12x144xbf16, #tpu.memory_space<vmem>>, %arg6: memref<12x1xf32, #tpu.memory_space<vmem>>, %arg7: memref<1x1x12x4xbf16, #tpu.memory_space<vmem>>) attributes {dimension_semantics = [#tpu.dimension_semantics<parallel>, #tpu.dimension_semantics<parallel>], iteration_bounds = array<i64: 2, 2>, scalar_prefetch = 0 : i64, scratch_operands = 0 : i64, tpu.core_type = #tpu.core_type<tc>, window_params = [{transform_indices = @transform_0, window_bounds = array<i64: 1, 1, 16, 6>}, {transform_indices = @transform_1, window_bounds = array<i64: 1, 1, 16, 6>}, {transform_indices = @transform_2, window_bounds = array<i64: 1, 1, 16, 6>}, {pipeline_mode = #tpu.pipeline_mode<synchronous>, transform_indices = @transform_3, window_bounds = array<i64: 12, 144>}, {pipeline_mode = #tpu.pipeline_mode<synchronous>, transform_indices = @transform_4, window_bounds = array<i64: 12, 1>}, {transform_indices = @transform_5, window_bounds = array<i64: 1, 1, 12, 4>}]} {
    %c0 = arith.constant 0 : index
    %c0_0 = arith.constant 0 : index
    %c0_1 = arith.constant 0 : index
    %c0_2 = arith.constant 0 : index
    %0 = vector.load %arg2[%c0, %c0_0, %c0_1, %c0_2] : memref<1x1x16x6xbf16, #tpu.memory_space<vmem>>, vector<1x1x16x6xbf16>
    %1 = vector.shape_cast %0 : vector<1x1x16x6xbf16> to vector<16x6xbf16>
    %2 = vector.extract_strided_slice %1 {offsets = [0, 0], sizes = [16, 4], strides = [1, 1]} : vector<16x6xbf16> to vector<16x4xbf16>
    %3 = vector.extract_strided_slice %1 {offsets = [0, 1], sizes = [16, 4], strides = [1, 1]} : vector<16x6xbf16> to vector<16x4xbf16>
    %4 = vector.extract_strided_slice %1 {offsets = [0, 2], sizes = [16, 4], strides = [1, 1]} : vector<16x6xbf16> to vector<16x4xbf16>
    %c0_3 = arith.constant 0 : index
    %c0_4 = arith.constant 0 : index
    %c0_5 = arith.constant 0 : index
    %c0_6 = arith.constant 0 : index
    %5 = vector.load %arg3[%c0_3, %c0_4, %c0_5, %c0_6] : memref<1x1x16x6xbf16, #tpu.memory_space<vmem>>, vector<1x1x16x6xbf16>
    %6 = vector.shape_cast %5 : vector<1x1x16x6xbf16> to vector<16x6xbf16>
    %7 = vector.extract_strided_slice %6 {offsets = [0, 0], sizes = [16, 4], strides = [1, 1]} : vector<16x6xbf16> to vector<16x4xbf16>
    %8 = vector.extract_strided_slice %6 {offsets = [0, 1], sizes = [16, 4], strides = [1, 1]} : vector<16x6xbf16> to vector<16x4xbf16>
    %9 = vector.extract_strided_slice %6 {offsets = [0, 2], sizes = [16, 4], strides = [1, 1]} : vector<16x6xbf16> to vector<16x4xbf16>
    %c0_7 = arith.constant 0 : index
    %c0_8 = arith.constant 0 : index
    %c0_9 = arith.constant 0 : index
    %c0_10 = arith.constant 0 : index
    %10 = vector.load %arg4[%c0_7, %c0_8, %c0_9, %c0_10] : memref<1x1x16x6xbf16, #tpu.memory_space<vmem>>, vector<1x1x16x6xbf16>
    %11 = vector.shape_cast %10 : vector<1x1x16x6xbf16> to vector<16x6xbf16>
    %12 = vector.extract_strided_slice %11 {offsets = [0, 0], sizes = [16, 4], strides = [1, 1]} : vector<16x6xbf16> to vector<16x4xbf16>
    %13 = vector.extract_strided_slice %11 {offsets = [0, 1], sizes = [16, 4], strides = [1, 1]} : vector<16x6xbf16> to vector<16x4xbf16>
    %14 = vector.extract_strided_slice %11 {offsets = [0, 2], sizes = [16, 4], strides = [1, 1]} : vector<16x6xbf16> to vector<16x4xbf16>
    %15 = tpu.concatenate %2, %3, %4, %7, %8, %9, %12, %13, %14 in 0 : vector<16x4xbf16>, vector<16x4xbf16>, vector<16x4xbf16>, vector<16x4xbf16>, vector<16x4xbf16>, vector<16x4xbf16>, vector<16x4xbf16>, vector<16x4xbf16>, vector<16x4xbf16> -> vector<144x4xbf16>
    %c0_11 = arith.constant 0 : index
    %c0_12 = arith.constant 0 : index
    %16 = vector.load %arg5[%c0_11, %c0_12] : memref<12x144xbf16, #tpu.memory_space<vmem>>, vector<12x144xbf16>
    %cst = arith.constant dense<0.000000e+00> : vector<12x4xf32>
    %17 = tpu.matmul %16, %15, %cst {dimension_numbers = #tpu.dot_dimension_numbers<[1], [0], [0], [1], [0, 0, 1, 1], [], []>} : vector<12x144xbf16>, vector<144x4xbf16>, vector<12x4xf32> -> vector<12x4xf32>
    %c0_13 = arith.constant 0 : index
    %c0_14 = arith.constant 0 : index
    %18 = vector.load %arg6[%c0_13, %c0_14] : memref<12x1xf32, #tpu.memory_space<vmem>>, vector<12x1xf32>
    %19 = vector.broadcast %18 : vector<12x1xf32> to vector<12x4xf32>
    %20 = arith.addf %17, %19 : vector<12x4xf32>
    %cst_15 = arith.constant 0.000000e+00 : f32
    %21 = vector.broadcast %cst_15 : f32 to vector<12x4xf32>
    %22 = arith.maximumf %20, %21 : vector<12x4xf32>
    %23 = arith.truncf %22 : vector<12x4xf32> to vector<12x4xbf16>
    %c0_16 = arith.constant 0 : index
    %c0_17 = arith.constant 0 : index
    %c0_18 = arith.constant 0 : index
    %c0_19 = arith.constant 0 : index
    %24 = vector.load %arg7[%c0_16, %c0_17, %c0_18, %c0_19] : memref<1x1x12x4xbf16, #tpu.memory_space<vmem>>, vector<1x1x12x4xbf16>
    %25 = vector.shape_cast %24 : vector<1x1x12x4xbf16> to vector<12x4xbf16>
    %26 = vector.shape_cast %23 : vector<12x4xbf16> to vector<1x1x12x4xbf16>
    tpu.vector_store %arg7[%c0_16, %c0_17, %c0_18, %c0_19], %26 {strides = array<i32>} : memref<1x1x12x4xbf16, #tpu.memory_space<vmem>>, vector<1x1x12x4xbf16>,
    return
  }
  func.func @transform_0(%arg0: i32, %arg1: i32) -> (i32, i32, i32, i32) {
    %c1_i32 = arith.constant 1 : i32
    %0 = arith.muli %arg1, %c1_i32 : i32
    %c0_i32 = arith.constant 0 : i32
    %1 = arith.addi %0, %c0_i32 : i32
    %c0_i32_0 = arith.constant 0 : i32
    %c0_i32_1 = arith.constant 0 : i32
    %c0_i32_2 = arith.constant 0 : i32
    return %arg0, %1, %c0_i32_0, %c0_i32_1 : i32, i32, i32, i32
  }
  func.func @transform_1(%arg0: i32, %arg1: i32) -> (i32, i32, i32, i32) {
    %c1_i32 = arith.constant 1 : i32
    %0 = arith.muli %arg1, %c1_i32 : i32
    %c1_i32_0 = arith.constant 1 : i32
    %1 = arith.addi %0, %c1_i32_0 : i32
    %c0_i32 = arith.constant 0 : i32
    %c0_i32_1 = arith.constant 0 : i32
    %c0_i32_2 = arith.constant 0 : i32
    return %arg0, %1, %c0_i32, %c0_i32_1 : i32, i32, i32, i32
  }
  func.func @transform_2(%arg0: i32, %arg1: i32) -> (i32, i32, i32, i32) {
    %c1_i32 = arith.constant 1 : i32
    %0 = arith.muli %arg1, %c1_i32 : i32
    %c2_i32 = arith.constant 2 : i32
    %1 = arith.addi %0, %c2_i32 : i32
    %c0_i32 = arith.constant 0 : i32
    %c0_i32_0 = arith.constant 0 : i32
    %c0_i32_1 = arith.constant 0 : i32
    return %arg0, %1, %c0_i32, %c0_i32_0 : i32, i32, i32, i32
  }
  func.func @transform_3(%arg0: i32, %arg1: i32) -> (i32, i32) {
    %c0_i32 = arith.constant 0 : i32
    %c0_i32_0 = arith.constant 0 : i32
    %c0_i32_1 = arith.constant 0 : i32
    return %c0_i32, %c0_i32_0 : i32, i32
  }
  func.func @transform_4(%arg0: i32, %arg1: i32) -> (i32, i32) {
    %c0_i32 = arith.constant 0 : i32
    %c0_i32_0 = arith.constant 0 : i32
    %c0_i32_1 = arith.constant 0 : i32
    return %c0_i32, %c0_i32_0 : i32, i32
  }
  func.func @transform_5(%arg0: i32, %arg1: i32) -> (i32, i32, i32, i32) {
    %c0_i32 = arith.constant 0 : i32
    %c0_i32_0 = arith.constant 0 : i32
    %c0_i32_1 = arith.constant 0 : i32
    return %arg0, %arg1, %c0_i32, %c0_i32_0 : i32, i32, i32, i32
  }
}

module attributes {stable_mosaic.version = 11 : i64} {
  func.func @_tdf_kernel(%arg0: i32, %arg1: memref<48x4xbf16, #tpu.memory_space<vmem>>, %arg2: memref<4x1xbf16, #tpu.memory_space<vmem>>, %arg3: memref<1x4xbf16, #tpu.memory_space<vmem>>, %arg4: memref<1x1xf32, #tpu.memory_space<vmem>>, %arg5: memref<1x4xf32, #tpu.memory_space<vmem>>, %arg6: memref<48x1xf32, #tpu.memory_space<vmem>>, %arg7: memref<48x1xf32, #tpu.memory_space<vmem>>, %arg8: memref<48x1xf32, #tpu.memory_space<vmem>>, %arg9: memref<48x1xf32, #tpu.memory_space<vmem>>, %arg10: memref<48x4xbf16, #tpu.memory_space<vmem>>) attributes {dimension_semantics = [#tpu.dimension_semantics<parallel>], iteration_bounds = array<i64: 1>, scalar_prefetch = 0 : i64, scratch_operands = 0 : i64, tpu.core_type = #tpu.core_type<tc>, window_params = [{transform_indices = @transform_0, window_bounds = array<i64: 48, 4>}, {pipeline_mode = #tpu.pipeline_mode<synchronous>, transform_indices = @transform_1, window_bounds = array<i64: 4, 1>}, {pipeline_mode = #tpu.pipeline_mode<synchronous>, transform_indices = @transform_2, window_bounds = array<i64: 1, 4>}, {pipeline_mode = #tpu.pipeline_mode<synchronous>, transform_indices = @transform_3, window_bounds = array<i64: 1, 1>}, {pipeline_mode = #tpu.pipeline_mode<synchronous>, transform_indices = @transform_4, window_bounds = array<i64: 1, 4>}, {transform_indices = @transform_5, window_bounds = array<i64: 48, 1>}, {transform_indices = @transform_6, window_bounds = array<i64: 48, 1>}, {transform_indices = @transform_7, window_bounds = array<i64: 48, 1>}, {transform_indices = @transform_8, window_bounds = array<i64: 48, 1>}, {transform_indices = @transform_9, window_bounds = array<i64: 48, 4>}]} {
    %c0 = arith.constant 0 : index
    %c0_0 = arith.constant 0 : index
    %0 = vector.load %arg1[%c0, %c0_0] : memref<48x4xbf16, #tpu.memory_space<vmem>>, vector<48x4xbf16>
    %c0_1 = arith.constant 0 : index
    %c0_2 = arith.constant 0 : index
    %1 = vector.load %arg2[%c0_1, %c0_2] : memref<4x1xbf16, #tpu.memory_space<vmem>>, vector<4x1xbf16>
    %cst = arith.constant dense<0.000000e+00> : vector<48x1xf32>
    %2 = tpu.matmul %0, %1, %cst {dimension_numbers = #tpu.dot_dimension_numbers<[1], [0], [0], [1], [0, 0, 1, 1], [], []>} : vector<48x4xbf16>, vector<4x1xbf16>, vector<48x1xf32> -> vector<48x1xf32>
    %c0_3 = arith.constant 0 : index
    %c0_4 = arith.constant 0 : index
    %3 = vector.load %arg4[%c0_3, %c0_4] : memref<1x1xf32, #tpu.memory_space<vmem>>, vector<1x1xf32>
    %4 = vector.broadcast %3 : vector<1x1xf32> to vector<48x1xf32>
    %5 = arith.addf %2, %4 : vector<48x1xf32>
    %c0_5 = arith.constant 0 : index
    %c0_6 = arith.constant 0 : index
    %6 = vector.load %arg6[%c0_5, %c0_6] : memref<48x1xf32, #tpu.memory_space<vmem>>, vector<48x1xf32>
    %7 = arith.mulf %5, %6 : vector<48x1xf32>
    %c0_7 = arith.constant 0 : index
    %c0_8 = arith.constant 0 : index
    %8 = vector.load %arg7[%c0_7, %c0_8] : memref<48x1xf32, #tpu.memory_space<vmem>>, vector<48x1xf32>
    %9 = arith.addf %7, %8 : vector<48x1xf32>
    %cst_9 = arith.constant 0.000000e+00 : f32
    %10 = vector.broadcast %cst_9 : f32 to vector<48x1xf32>
    %11 = arith.maximumf %9, %10 : vector<48x1xf32>
    %12 = arith.truncf %11 : vector<48x1xf32> to vector<48x1xbf16>
    %c0_10 = arith.constant 0 : index
    %c0_11 = arith.constant 0 : index
    %13 = vector.load %arg3[%c0_10, %c0_11] : memref<1x4xbf16, #tpu.memory_space<vmem>>, vector<1x4xbf16>
    %cst_12 = arith.constant dense<0.000000e+00> : vector<48x4xf32>
    %14 = tpu.matmul %12, %13, %cst_12 {dimension_numbers = #tpu.dot_dimension_numbers<[1], [0], [0], [1], [0, 0, 1, 1], [], []>} : vector<48x1xbf16>, vector<1x4xbf16>, vector<48x4xf32> -> vector<48x4xf32>
    %c0_13 = arith.constant 0 : index
    %c0_14 = arith.constant 0 : index
    %15 = vector.load %arg5[%c0_13, %c0_14] : memref<1x4xf32, #tpu.memory_space<vmem>>, vector<1x4xf32>
    %16 = vector.broadcast %15 : vector<1x4xf32> to vector<48x4xf32>
    %17 = arith.addf %14, %16 : vector<48x4xf32>
    %c0_15 = arith.constant 0 : index
    %c0_16 = arith.constant 0 : index
    %18 = vector.load %arg8[%c0_15, %c0_16] : memref<48x1xf32, #tpu.memory_space<vmem>>, vector<48x1xf32>
    %19 = vector.broadcast %18 : vector<48x1xf32> to vector<48x4xf32>
    %20 = arith.mulf %17, %19 : vector<48x4xf32>
    %c0_17 = arith.constant 0 : index
    %c0_18 = arith.constant 0 : index
    %21 = vector.load %arg9[%c0_17, %c0_18] : memref<48x1xf32, #tpu.memory_space<vmem>>, vector<48x1xf32>
    %22 = vector.broadcast %21 : vector<48x1xf32> to vector<48x4xf32>
    %23 = arith.addf %20, %22 : vector<48x4xf32>
    %cst_19 = arith.constant 0.000000e+00 : f32
    %24 = vector.broadcast %cst_19 : f32 to vector<48x4xf32>
    %25 = arith.maximumf %23, %24 : vector<48x4xf32>
    %26 = arith.extf %0 : vector<48x4xbf16> to vector<48x4xf32>
    %27 = arith.addf %25, %26 : vector<48x4xf32>
    %28 = arith.truncf %27 : vector<48x4xf32> to vector<48x4xbf16>
    %c0_20 = arith.constant 0 : index
    %c0_21 = arith.constant 0 : index
    %29 = vector.load %arg10[%c0_20, %c0_21] : memref<48x4xbf16, #tpu.memory_space<vmem>>, vector<48x4xbf16>
    tpu.vector_store %arg10[%c0_20, %c0_21], %28 {strides = array<i32>} : memref<48x4xbf16, #tpu.memory_space<vmem>>, vector<48x4xbf16>,
    return
  }
  func.func @transform_0(%arg0: i32) -> (i32, i32) {
    %c0_i32 = arith.constant 0 : i32
    %c0_i32_0 = arith.constant 0 : i32
    return %arg0, %c0_i32 : i32, i32
  }
  func.func @transform_1(%arg0: i32) -> (i32, i32) {
    %c0_i32 = arith.constant 0 : i32
    %c0_i32_0 = arith.constant 0 : i32
    %c0_i32_1 = arith.constant 0 : i32
    return %c0_i32, %c0_i32_0 : i32, i32
  }
  func.func @transform_2(%arg0: i32) -> (i32, i32) {
    %c0_i32 = arith.constant 0 : i32
    %c0_i32_0 = arith.constant 0 : i32
    %c0_i32_1 = arith.constant 0 : i32
    return %c0_i32, %c0_i32_0 : i32, i32
  }
  func.func @transform_3(%arg0: i32) -> (i32, i32) {
    %c0_i32 = arith.constant 0 : i32
    %c0_i32_0 = arith.constant 0 : i32
    %c0_i32_1 = arith.constant 0 : i32
    return %c0_i32, %c0_i32_0 : i32, i32
  }
  func.func @transform_4(%arg0: i32) -> (i32, i32) {
    %c0_i32 = arith.constant 0 : i32
    %c0_i32_0 = arith.constant 0 : i32
    %c0_i32_1 = arith.constant 0 : i32
    return %c0_i32, %c0_i32_0 : i32, i32
  }
  func.func @transform_5(%arg0: i32) -> (i32, i32) {
    %c0_i32 = arith.constant 0 : i32
    %c0_i32_0 = arith.constant 0 : i32
    return %arg0, %c0_i32 : i32, i32
  }
  func.func @transform_6(%arg0: i32) -> (i32, i32) {
    %c0_i32 = arith.constant 0 : i32
    %c0_i32_0 = arith.constant 0 : i32
    return %arg0, %c0_i32 : i32, i32
  }
  func.func @transform_7(%arg0: i32) -> (i32, i32) {
    %c0_i32 = arith.constant 0 : i32
    %c0_i32_0 = arith.constant 0 : i32
    return %arg0, %c0_i32 : i32, i32
  }
  func.func @transform_8(%arg0: i32) -> (i32, i32) {
    %c0_i32 = arith.constant 0 : i32
    %c0_i32_0 = arith.constant 0 : i32
    return %arg0, %c0_i32 : i32, i32
  }
  func.func @transform_9(%arg0: i32) -> (i32, i32) {
    %c0_i32 = arith.constant 0 : i32
    %c0_i32_0 = arith.constant 0 : i32
    return %arg0, %c0_i32 : i32, i32
  }
}

module attributes {stable_mosaic.version = 11 : i64} {
  func.func @_upconv_kernel(%arg0: i32, %arg1: i32, %arg2: memref<1x1x12x4xbf16, #tpu.memory_space<vmem>>, %arg3: memref<32x12xbf16, #tpu.memory_space<vmem>>, %arg4: memref<32x1xf32, #tpu.memory_space<vmem>>, %arg5: memref<1x1x32x4xbf16, #tpu.memory_space<vmem>>, %arg6: memref<1x1x32x4xbf16, #tpu.memory_space<vmem>>) attributes {dimension_semantics = [#tpu.dimension_semantics<parallel>, #tpu.dimension_semantics<parallel>], iteration_bounds = array<i64: 2, 2>, scalar_prefetch = 0 : i64, scratch_operands = 0 : i64, tpu.core_type = #tpu.core_type<tc>, window_params = [{transform_indices = @transform_0, window_bounds = array<i64: 1, 1, 12, 4>}, {pipeline_mode = #tpu.pipeline_mode<synchronous>, transform_indices = @transform_1, window_bounds = array<i64: 32, 12>}, {pipeline_mode = #tpu.pipeline_mode<synchronous>, transform_indices = @transform_2, window_bounds = array<i64: 32, 1>}, {transform_indices = @transform_3, window_bounds = array<i64: 1, 1, 32, 4>}, {transform_indices = @transform_4, window_bounds = array<i64: 1, 1, 32, 4>}]} {
    %c0 = arith.constant 0 : index
    %c0_0 = arith.constant 0 : index
    %0 = vector.load %arg3[%c0, %c0_0] : memref<32x12xbf16, #tpu.memory_space<vmem>>, vector<32x12xbf16>
    %c0_1 = arith.constant 0 : index
    %c0_2 = arith.constant 0 : index
    %c0_3 = arith.constant 0 : index
    %c0_4 = arith.constant 0 : index
    %1 = vector.load %arg2[%c0_1, %c0_2, %c0_3, %c0_4] : memref<1x1x12x4xbf16, #tpu.memory_space<vmem>>, vector<1x1x12x4xbf16>
    %2 = vector.shape_cast %1 : vector<1x1x12x4xbf16> to vector<12x4xbf16>
    %cst = arith.constant dense<0.000000e+00> : vector<32x4xf32>
    %3 = tpu.matmul %0, %2, %cst {dimension_numbers = #tpu.dot_dimension_numbers<[1], [0], [0], [1], [0, 0, 1, 1], [], []>} : vector<32x12xbf16>, vector<12x4xbf16>, vector<32x4xf32> -> vector<32x4xf32>
    %c0_5 = arith.constant 0 : index
    %c0_6 = arith.constant 0 : index
    %4 = vector.load %arg4[%c0_5, %c0_6] : memref<32x1xf32, #tpu.memory_space<vmem>>, vector<32x1xf32>
    %5 = vector.broadcast %4 : vector<32x1xf32> to vector<32x4xf32>
    %6 = arith.addf %3, %5 : vector<32x4xf32>
    %cst_7 = arith.constant 0.000000e+00 : f32
    %7 = vector.broadcast %cst_7 : f32 to vector<32x4xf32>
    %8 = arith.maximumf %6, %7 : vector<32x4xf32>
    %c0_8 = arith.constant 0 : index
    %c0_9 = arith.constant 0 : index
    %c0_10 = arith.constant 0 : index
    %c0_11 = arith.constant 0 : index
    %9 = vector.load %arg5[%c0_8, %c0_9, %c0_10, %c0_11] : memref<1x1x32x4xbf16, #tpu.memory_space<vmem>>, vector<1x1x32x4xbf16>
    %10 = vector.shape_cast %9 : vector<1x1x32x4xbf16> to vector<32x4xbf16>
    %11 = arith.extf %10 : vector<32x4xbf16> to vector<32x4xf32>
    %12 = arith.mulf %8, %11 : vector<32x4xf32>
    %13 = arith.truncf %12 : vector<32x4xf32> to vector<32x4xbf16>
    %c0_12 = arith.constant 0 : index
    %c0_13 = arith.constant 0 : index
    %c0_14 = arith.constant 0 : index
    %c0_15 = arith.constant 0 : index
    %14 = vector.load %arg6[%c0_12, %c0_13, %c0_14, %c0_15] : memref<1x1x32x4xbf16, #tpu.memory_space<vmem>>, vector<1x1x32x4xbf16>
    %15 = vector.shape_cast %14 : vector<1x1x32x4xbf16> to vector<32x4xbf16>
    %16 = vector.shape_cast %13 : vector<32x4xbf16> to vector<1x1x32x4xbf16>
    tpu.vector_store %arg6[%c0_12, %c0_13, %c0_14, %c0_15], %16 {strides = array<i32>} : memref<1x1x32x4xbf16, #tpu.memory_space<vmem>>, vector<1x1x32x4xbf16>,
    return
  }
  func.func @transform_0(%arg0: i32, %arg1: i32) -> (i32, i32, i32, i32) {
    %c0_i32 = arith.constant 0 : i32
    %c0_i32_0 = arith.constant 0 : i32
    %c0_i32_1 = arith.constant 0 : i32
    return %arg0, %arg1, %c0_i32, %c0_i32_0 : i32, i32, i32, i32
  }
  func.func @transform_1(%arg0: i32, %arg1: i32) -> (i32, i32) {
    %c0_i32 = arith.constant 0 : i32
    %c0_i32_0 = arith.constant 0 : i32
    %c0_i32_1 = arith.constant 0 : i32
    return %c0_i32, %c0_i32_0 : i32, i32
  }
  func.func @transform_2(%arg0: i32, %arg1: i32) -> (i32, i32) {
    %c0_i32 = arith.constant 0 : i32
    %c0_i32_0 = arith.constant 0 : i32
    %c0_i32_1 = arith.constant 0 : i32
    return %c0_i32, %c0_i32_0 : i32, i32
  }
  func.func @transform_3(%arg0: i32, %arg1: i32) -> (i32, i32, i32, i32) {
    %c0_i32 = arith.constant 0 : i32
    %c0_i32_0 = arith.constant 0 : i32
    %c0_i32_1 = arith.constant 0 : i32
    return %arg0, %arg1, %c0_i32, %c0_i32_0 : i32, i32, i32, i32
  }
  func.func @transform_4(%arg0: i32, %arg1: i32) -> (i32, i32, i32, i32) {
    %c0_i32 = arith.constant 0 : i32
    %c0_i32_0 = arith.constant 0 : i32
    %c0_i32_1 = arith.constant 0 : i32
    return %arg0, %arg1, %c0_i32, %c0_i32_0 : i32, i32, i32, i32
  }
}

module attributes {stable_mosaic.version = 11 : i64} {
  func.func @_upconv_kernel(%arg0: i32, %arg1: i32, %arg2: memref<1x1x8x8xbf16, #tpu.memory_space<vmem>>, %arg3: memref<16x8xbf16, #tpu.memory_space<vmem>>, %arg4: memref<16x1xf32, #tpu.memory_space<vmem>>, %arg5: memref<1x1x16x8xbf16, #tpu.memory_space<vmem>>, %arg6: memref<1x1x16x8xbf16, #tpu.memory_space<vmem>>) attributes {dimension_semantics = [#tpu.dimension_semantics<parallel>, #tpu.dimension_semantics<parallel>], iteration_bounds = array<i64: 2, 4>, scalar_prefetch = 0 : i64, scratch_operands = 0 : i64, tpu.core_type = #tpu.core_type<tc>, window_params = [{transform_indices = @transform_0, window_bounds = array<i64: 1, 1, 8, 8>}, {pipeline_mode = #tpu.pipeline_mode<synchronous>, transform_indices = @transform_1, window_bounds = array<i64: 16, 8>}, {pipeline_mode = #tpu.pipeline_mode<synchronous>, transform_indices = @transform_2, window_bounds = array<i64: 16, 1>}, {transform_indices = @transform_3, window_bounds = array<i64: 1, 1, 16, 8>}, {transform_indices = @transform_4, window_bounds = array<i64: 1, 1, 16, 8>}]} {
    %c0 = arith.constant 0 : index
    %c0_0 = arith.constant 0 : index
    %0 = vector.load %arg3[%c0, %c0_0] : memref<16x8xbf16, #tpu.memory_space<vmem>>, vector<16x8xbf16>
    %c0_1 = arith.constant 0 : index
    %c0_2 = arith.constant 0 : index
    %c0_3 = arith.constant 0 : index
    %c0_4 = arith.constant 0 : index
    %1 = vector.load %arg2[%c0_1, %c0_2, %c0_3, %c0_4] : memref<1x1x8x8xbf16, #tpu.memory_space<vmem>>, vector<1x1x8x8xbf16>
    %2 = vector.shape_cast %1 : vector<1x1x8x8xbf16> to vector<8x8xbf16>
    %cst = arith.constant dense<0.000000e+00> : vector<16x8xf32>
    %3 = tpu.matmul %0, %2, %cst {dimension_numbers = #tpu.dot_dimension_numbers<[1], [0], [0], [1], [0, 0, 1, 1], [], []>} : vector<16x8xbf16>, vector<8x8xbf16>, vector<16x8xf32> -> vector<16x8xf32>
    %c0_5 = arith.constant 0 : index
    %c0_6 = arith.constant 0 : index
    %4 = vector.load %arg4[%c0_5, %c0_6] : memref<16x1xf32, #tpu.memory_space<vmem>>, vector<16x1xf32>
    %5 = vector.broadcast %4 : vector<16x1xf32> to vector<16x8xf32>
    %6 = arith.addf %3, %5 : vector<16x8xf32>
    %cst_7 = arith.constant 0.000000e+00 : f32
    %7 = vector.broadcast %cst_7 : f32 to vector<16x8xf32>
    %8 = arith.maximumf %6, %7 : vector<16x8xf32>
    %c0_8 = arith.constant 0 : index
    %c0_9 = arith.constant 0 : index
    %c0_10 = arith.constant 0 : index
    %c0_11 = arith.constant 0 : index
    %9 = vector.load %arg5[%c0_8, %c0_9, %c0_10, %c0_11] : memref<1x1x16x8xbf16, #tpu.memory_space<vmem>>, vector<1x1x16x8xbf16>
    %10 = vector.shape_cast %9 : vector<1x1x16x8xbf16> to vector<16x8xbf16>
    %11 = arith.extf %10 : vector<16x8xbf16> to vector<16x8xf32>
    %12 = arith.mulf %8, %11 : vector<16x8xf32>
    %13 = arith.truncf %12 : vector<16x8xf32> to vector<16x8xbf16>
    %c0_12 = arith.constant 0 : index
    %c0_13 = arith.constant 0 : index
    %c0_14 = arith.constant 0 : index
    %c0_15 = arith.constant 0 : index
    %14 = vector.load %arg6[%c0_12, %c0_13, %c0_14, %c0_15] : memref<1x1x16x8xbf16, #tpu.memory_space<vmem>>, vector<1x1x16x8xbf16>
    %15 = vector.shape_cast %14 : vector<1x1x16x8xbf16> to vector<16x8xbf16>
    %16 = vector.shape_cast %13 : vector<16x8xbf16> to vector<1x1x16x8xbf16>
    tpu.vector_store %arg6[%c0_12, %c0_13, %c0_14, %c0_15], %16 {strides = array<i32>} : memref<1x1x16x8xbf16, #tpu.memory_space<vmem>>, vector<1x1x16x8xbf16>,
    return
  }
  func.func @transform_0(%arg0: i32, %arg1: i32) -> (i32, i32, i32, i32) {
    %c0_i32 = arith.constant 0 : i32
    %c0_i32_0 = arith.constant 0 : i32
    %c0_i32_1 = arith.constant 0 : i32
    return %arg0, %arg1, %c0_i32, %c0_i32_0 : i32, i32, i32, i32
  }
  func.func @transform_1(%arg0: i32, %arg1: i32) -> (i32, i32) {
    %c0_i32 = arith.constant 0 : i32
    %c0_i32_0 = arith.constant 0 : i32
    %c0_i32_1 = arith.constant 0 : i32
    return %c0_i32, %c0_i32_0 : i32, i32
  }
  func.func @transform_2(%arg0: i32, %arg1: i32) -> (i32, i32) {
    %c0_i32 = arith.constant 0 : i32
    %c0_i32_0 = arith.constant 0 : i32
    %c0_i32_1 = arith.constant 0 : i32
    return %c0_i32, %c0_i32_0 : i32, i32
  }
  func.func @transform_3(%arg0: i32, %arg1: i32) -> (i32, i32, i32, i32) {
    %c0_i32 = arith.constant 0 : i32
    %c0_i32_0 = arith.constant 0 : i32
    %c0_i32_1 = arith.constant 0 : i32
    return %arg0, %arg1, %c0_i32, %c0_i32_0 : i32, i32, i32, i32
  }
  func.func @transform_4(%arg0: i32, %arg1: i32) -> (i32, i32, i32, i32) {
    %c0_i32 = arith.constant 0 : i32
    %c0_i32_0 = arith.constant 0 : i32
    %c0_i32_1 = arith.constant 0 : i32
    return %arg0, %arg1, %c0_i32, %c0_i32_0 : i32, i32, i32, i32
  }
}

module attributes {stable_mosaic.version = 11 : i64} {
  func.func @_conv_kernel(%arg0: i32, %arg1: i32, %arg2: memref<1x1x4x16xbf16, #tpu.memory_space<vmem>>, %arg3: memref<2x4xbf16, #tpu.memory_space<vmem>>, %arg4: memref<2x1xf32, #tpu.memory_space<vmem>>, %arg5: memref<1x1x2x16xf32, #tpu.memory_space<vmem>>) attributes {dimension_semantics = [#tpu.dimension_semantics<parallel>, #tpu.dimension_semantics<parallel>], iteration_bounds = array<i64: 2, 8>, scalar_prefetch = 0 : i64, scratch_operands = 0 : i64, tpu.core_type = #tpu.core_type<tc>, window_params = [{transform_indices = @transform_0, window_bounds = array<i64: 1, 1, 4, 16>}, {pipeline_mode = #tpu.pipeline_mode<synchronous>, transform_indices = @transform_1, window_bounds = array<i64: 2, 4>}, {pipeline_mode = #tpu.pipeline_mode<synchronous>, transform_indices = @transform_2, window_bounds = array<i64: 2, 1>}, {transform_indices = @transform_3, window_bounds = array<i64: 1, 1, 2, 16>}]} {
    %c0 = arith.constant 0 : index
    %c0_0 = arith.constant 0 : index
    %c0_1 = arith.constant 0 : index
    %c0_2 = arith.constant 0 : index
    %0 = vector.load %arg2[%c0, %c0_0, %c0_1, %c0_2] : memref<1x1x4x16xbf16, #tpu.memory_space<vmem>>, vector<1x1x4x16xbf16>
    %1 = vector.shape_cast %0 : vector<1x1x4x16xbf16> to vector<4x16xbf16>
    %c0_3 = arith.constant 0 : index
    %c0_4 = arith.constant 0 : index
    %2 = vector.load %arg3[%c0_3, %c0_4] : memref<2x4xbf16, #tpu.memory_space<vmem>>, vector<2x4xbf16>
    %cst = arith.constant dense<0.000000e+00> : vector<2x16xf32>
    %3 = tpu.matmul %2, %1, %cst {dimension_numbers = #tpu.dot_dimension_numbers<[1], [0], [0], [1], [0, 0, 1, 1], [], []>} : vector<2x4xbf16>, vector<4x16xbf16>, vector<2x16xf32> -> vector<2x16xf32>
    %c0_5 = arith.constant 0 : index
    %c0_6 = arith.constant 0 : index
    %4 = vector.load %arg4[%c0_5, %c0_6] : memref<2x1xf32, #tpu.memory_space<vmem>>, vector<2x1xf32>
    %5 = vector.broadcast %4 : vector<2x1xf32> to vector<2x16xf32>
    %6 = arith.addf %3, %5 : vector<2x16xf32>
    %c0_7 = arith.constant 0 : index
    %c0_8 = arith.constant 0 : index
    %c0_9 = arith.constant 0 : index
    %c0_10 = arith.constant 0 : index
    %7 = vector.load %arg5[%c0_7, %c0_8, %c0_9, %c0_10] : memref<1x1x2x16xf32, #tpu.memory_space<vmem>>, vector<1x1x2x16xf32>
    %8 = vector.shape_cast %7 : vector<1x1x2x16xf32> to vector<2x16xf32>
    %9 = vector.shape_cast %6 : vector<2x16xf32> to vector<1x1x2x16xf32>
    tpu.vector_store %arg5[%c0_7, %c0_8, %c0_9, %c0_10], %9 {strides = array<i32>} : memref<1x1x2x16xf32, #tpu.memory_space<vmem>>, vector<1x1x2x16xf32>,
    return
  }
  func.func @transform_0(%arg0: i32, %arg1: i32) -> (i32, i32, i32, i32) {
    %c1_i32 = arith.constant 1 : i32
    %0 = arith.muli %arg1, %c1_i32 : i32
    %c0_i32 = arith.constant 0 : i32
    %1 = arith.addi %0, %c0_i32 : i32
    %c0_i32_0 = arith.constant 0 : i32
    %c0_i32_1 = arith.constant 0 : i32
    %c0_i32_2 = arith.constant 0 : i32
    return %arg0, %1, %c0_i32_0, %c0_i32_1 : i32, i32, i32, i32
  }
  func.func @transform_1(%arg0: i32, %arg1: i32) -> (i32, i32) {
    %c0_i32 = arith.constant 0 : i32
    %c0_i32_0 = arith.constant 0 : i32
    %c0_i32_1 = arith.constant 0 : i32
    return %c0_i32, %c0_i32_0 : i32, i32
  }
  func.func @transform_2(%arg0: i32, %arg1: i32) -> (i32, i32) {
    %c0_i32 = arith.constant 0 : i32
    %c0_i32_0 = arith.constant 0 : i32
    %c0_i32_1 = arith.constant 0 : i32
    return %c0_i32, %c0_i32_0 : i32, i32
  }
  func.func @transform_3(%arg0: i32, %arg1: i32) -> (i32, i32, i32, i32) {
    %c0_i32 = arith.constant 0 : i32
    %c0_i32_0 = arith.constant 0 : i32
    %c0_i32_1 = arith.constant 0 : i32
    return %arg0, %arg1, %c0_i32, %c0_i32_0 : i32, i32, i32, i32
  }
}

module attributes {stable_mosaic.version = 11 : i64} {
  func.func @_mm_kernel(%arg0: i32, %arg1: i32, %arg2: i32, %arg3: memref<16x34xf32, #tpu.memory_space<vmem>>, %arg4: memref<34x32xf32, #tpu.memory_space<vmem>>, %arg5: memref<16x32xf32, #tpu.memory_space<vmem>>, %arg6: memref<16x32xf32, #tpu.memory_space<vmem>>) attributes {dimension_semantics = [#tpu.dimension_semantics<parallel>, #tpu.dimension_semantics<parallel>, #tpu.dimension_semantics<arbitrary>], iteration_bounds = array<i64: 1, 1, 1>, scalar_prefetch = 0 : i64, scratch_operands = 1 : i64, tpu.core_type = #tpu.core_type<tc>, window_params = [{transform_indices = @transform_0, window_bounds = array<i64: 16, 34>}, {transform_indices = @transform_1, window_bounds = array<i64: 34, 32>}, {transform_indices = @transform_2, window_bounds = array<i64: 16, 32>}]} {
    %c0_i32 = arith.constant 0 : i32
    %0 = arith.cmpi eq, %arg2, %c0_i32 : i32
    %1 = arith.extui %0 : i1 to i32
    %c0_i32_0 = arith.constant 0 : i32
    %2 = arith.cmpi ne, %1, %c0_i32_0 : i32
    scf.if %2 {
      %cst_10 = arith.constant 0.000000e+00 : f32
      %12 = vector.broadcast %cst_10 : f32 to vector<16x32xf32>
      %c0_11 = arith.constant 0 : index
      %c0_12 = arith.constant 0 : index
      %13 = vector.load %arg6[%c0_11, %c0_12] : memref<16x32xf32, #tpu.memory_space<vmem>>, vector<16x32xf32>
      tpu.vector_store %arg6[%c0_11, %c0_12], %12 {strides = array<i32>} : memref<16x32xf32, #tpu.memory_space<vmem>>, vector<16x32xf32>,
    } else {
    }
    %c0 = arith.constant 0 : index
    %c0_1 = arith.constant 0 : index
    %3 = vector.load %arg6[%c0, %c0_1] : memref<16x32xf32, #tpu.memory_space<vmem>>, vector<16x32xf32>
    %c0_2 = arith.constant 0 : index
    %c0_3 = arith.constant 0 : index
    %4 = vector.load %arg3[%c0_2, %c0_3] : memref<16x34xf32, #tpu.memory_space<vmem>>, vector<16x34xf32>
    %c0_4 = arith.constant 0 : index
    %c0_5 = arith.constant 0 : index
    %5 = vector.load %arg4[%c0_4, %c0_5] : memref<34x32xf32, #tpu.memory_space<vmem>>, vector<34x32xf32>
    %cst = arith.constant dense<0.000000e+00> : vector<16x32xf32>
    %6 = tpu.matmul %4, %5, %cst {dimension_numbers = #tpu.dot_dimension_numbers<[1], [0], [0], [1], [0, 0, 1, 1], [], []>} : vector<16x34xf32>, vector<34x32xf32>, vector<16x32xf32> -> vector<16x32xf32>
    %7 = arith.addf %3, %6 : vector<16x32xf32>
    %c0_6 = arith.constant 0 : index
    %c0_7 = arith.constant 0 : index
    %8 = vector.load %arg6[%c0_6, %c0_7] : memref<16x32xf32, #tpu.memory_space<vmem>>, vector<16x32xf32>
    tpu.vector_store %arg6[%c0_6, %c0_7], %7 {strides = array<i32>} : memref<16x32xf32, #tpu.memory_space<vmem>>, vector<16x32xf32>,
    %c0_i32_8 = arith.constant 0 : i32
    %9 = arith.cmpi eq, %arg2, %c0_i32_8 : i32
    %10 = arith.extui %9 : i1 to i32
    %c0_i32_9 = arith.constant 0 : i32
    %11 = arith.cmpi ne, %10, %c0_i32_9 : i32
    scf.if %11 {
      %c0_10 = arith.constant 0 : index
      %c0_11 = arith.constant 0 : index
      %12 = vector.load %arg6[%c0_10, %c0_11] : memref<16x32xf32, #tpu.memory_space<vmem>>, vector<16x32xf32>
      %c0_12 = arith.constant 0 : index
      %c0_13 = arith.constant 0 : index
      %13 = vector.load %arg5[%c0_12, %c0_13] : memref<16x32xf32, #tpu.memory_space<vmem>>, vector<16x32xf32>
      tpu.vector_store %arg5[%c0_12, %c0_13], %12 {strides = array<i32>} : memref<16x32xf32, #tpu.memory_space<vmem>>, vector<16x32xf32>,
    } else {
    }
    return
  }
  func.func @transform_0(%arg0: i32, %arg1: i32, %arg2: i32) -> (i32, i32) {
    %c0_i32 = arith.constant 0 : i32
    return %arg0, %arg2 : i32, i32
  }
  func.func @transform_1(%arg0: i32, %arg1: i32, %arg2: i32) -> (i32, i32) {
    %c0_i32 = arith.constant 0 : i32
    return %arg2, %arg1 : i32, i32
  }
  func.func @transform_2(%arg0: i32, %arg1: i32, %arg2: i32) -> (i32, i32) {
    %c0_i32 = arith.constant 0 : i32
    return %arg0, %arg1 : i32, i32
  }
}

</mosaic_0001>

<bundles_post_ra>
// kernel: tile.123
= control target key start
LH: loop header
LB: loop body
LE: loop exit
PB: predicated region body
PF: predicated region fallthrough
CT: control target
= control target key end

     0   :  { %s28_s0 = inlined_call_operand.vmem [shape: f32[4], index: 0, kind: input, shape index: {}]   ;;  %s29_s1 = inlined_call_operand.vmem [shape: f32[16,4], index: 1, kind: output, shape index: {}]  }
   0x1   :  { %v4_v0 = vld [vmem:[%s28_s0] ss:$0 sm:$0xff] }
   0x2   :  { %5 = vst [vmem:[%s29_s1] sm:$0xff] %v4_v0  ;;  %8 = vst [vmem:[%s29_s1 + $0x8] sm:$0xff] %v4_v0 }

// kernel: tile.0
= control target key start
LH: loop header
LB: loop body
LE: loop exit
PB: predicated region body
PF: predicated region fallthrough
CT: control target
= control target key end

     0   :  { %vm3_vm0 = vcmask 7168   ;;  %s64_s10 = smov 127   ;;  %s65_s15 = smov 125   ;;  %s114_s0 = inlined_call_operand.vmem [shape: f32[16,4], index: 0, kind: input, shape index: {}]   ;;  %s115_s1 = inlined_call_operand.vmem [shape: f32[64,1], index: 1, kind: output, shape index: {}]  }
   0x1   :  { %v23_v0 = vld [vmem:[%s114_s0] sm:$0xff]   ;;  %v49_v1 = vld [vmem:[%s114_s0 + $0x8] sm:$0xff]   ;;  %s63_s0 = smov 126  }
   0x2   :  { %24 = vrot.lane.b32.xlu1 %v23_v0, %s63_s0  ;;  %11 = vrot.lane.b32.xlu0 %v23_v0, %s64_s10  ;;  %4 = vst.msk [vmem:[%s115_s1] ss:$4 sm:$0xff] %vm3_vm0, %v23_v0   ;;  %50 = vst.msk [vmem:[%s115_s1 + $0x20] ss:$4 sm:$0xff] %vm3_vm0, %v49_v1  }
   0x6   :  { %31 = vrot.lane.b32.xlu1 %v49_v1, %s63_s0  ;;  %18 = vrot.lane.b32.xlu0 %v49_v1, %s64_s10 }
   0xa   :  { %44 = vrot.lane.b32.xlu1 %v49_v1, %s65_s15  ;;  %37 = vrot.lane.b32.xlu0 %v23_v0, %s65_s15 }
  0x74   :  { %v25_v2 = vpop.permute.xlu1 %24   ;;  %v12_v3 = vpop.permute.xlu0 %11  }
  0x75   :  { %54 = vst.msk [vmem:[%s115_s1 + $0x2] ss:$4 sm:$0xff] %vm3_vm0, %v25_v2   ;;  %51 = vst.msk [vmem:[%s115_s1 + $0x1] ss:$4 sm:$0xff] %vm3_vm0, %v12_v3  }
  0x78   :  { %v32_v4 = vpop.permute.xlu1 %31   ;;  %v19_v5 = vpop.permute.xlu0 %18  }
  0x79   :  { %56 = vst.msk [vmem:[%s115_s1 + $0x22] ss:$4 sm:$0xff] %vm3_vm0, %v32_v4   ;;  %53 = vst.msk [vmem:[%s115_s1 + $0x21] ss:$4 sm:$0xff] %vm3_vm0, %v19_v5  }
  0x7c   :  { %v45_v6 = vpop.permute.xlu1 %44   ;;  %v38_v7 = vpop.permute.xlu0 %37  }
  0x7d   :  { %59 = vst.msk [vmem:[%s115_s1 + $0x23] ss:$4 sm:$0xff] %vm3_vm0, %v45_v6   ;;  %57 = vst.msk [vmem:[%s115_s1 + $0x3] ss:$4 sm:$0xff] %vm3_vm0, %v38_v7  }

// kernel: conv_tdf_net_forward.18
= control target key start
LH: loop header
LB: loop body
LE: loop exit
PB: predicated region body
PF: predicated region fallthrough
CT: control target
= control target key end

     0   :  { %vm26_vm0 = vcmask 261120   ;;  %vm15_vm1 = vcmask 277504   ;;  %v152_v3 = vmov 0.0   ;;  %s200_s1 = inlined_call_operand.vmem [shape: f32[32,34], index: 1, kind: input, shape index: {}]   ;;  %s201_s0 = inlined_call_operand.vmem [shape: f32[16,32], index: 0, kind: input, shape index: {}]   ;;  %s202_s2 = inlined_call_operand.vmem [shape: f32[16,34], index: 2, kind: output, shape index: {}]  }
   0x1   :  { %v22_v0 = vld [vmem:[%s200_s1] sm:$0xff]  ;;  %v23_v1 = vld [vmem:[%s200_s1 + $0x8] sm:$0xff]  ;;  %v24_v2 = vld [vmem:[%s200_s1 + $0x10] sm:$0xff]  ;;  %17 = vst.msk [vmem:[#allocation2 + $0x8] sm:$0xff] %vm15_vm1, %v152_v3 }
   0x2   :  { %16 = vst.msk [vmem:[#allocation2] sm:$0xff] %vm15_vm1, %v152_v3  ;;  %v143_v4 = vpack.c.bf16 %v23_v1, %v22_v0  ;;  %v25_v5 = vld [vmem:[%s200_s1 + $0x18] sm:$0xff]  ;;  %v20_v6 = vld [vmem:[%s201_s0] sm:$0xff]  ;;  %v21_v8 = vld [vmem:[%s201_s0 + $0x8] sm:$0xff] }
   0x3   :  { %v147_v7 = vpack.c.bf16 %v25_v5, %v24_v2  ;;  %140 = vmatprep.mubr.msk.f32.mxu0 %vm26_vm0, %v20_v6 }
   0x4   :  { %144 = vmatprep.subr.bf16.mxu0 %v143_v4 }
   0x5   :  { %146 = vmatpush3.bf16.msra.mxu0 %v143_v4 }
   0x6   :  { %148 = vmatprep.subr.bf16.mxu0 %v147_v7 }
   0x8   :  { %v19_v9 = vld [vmem:[#allocation2 + $0x8] sm:$0xff] }
   0x9   :  { %150 = vmatpush3.bf16.msra.mxu0 %v147_v7  ;;  %v18_v10 = vld [vmem:[#allocation2] sm:$0xff] }
   0xc   :  { %141 = vmatmul.mubr.msk.f32.vlgmr.msra.gmra.mrb[0].mxu0 %vm26_vm0, %v21_v8 }
  0xdf   :  { %v142_v11 = vpop.f32.mrb[0].mxu0 }
  0xe0   :  { %v109_v12 = vadd.f32 %v142_v11, %v19_v9  ;;  %v99_v13 = vpop.f32.mrb[1].mxu0 }
  0xe1   :  { %v108_v14 = vadd.f32 %v99_v13, %v18_v10 }
  0xe2   :  { %112 = vst.msk [vmem:[#allocation2 + $0x8] sm:$0xff] %vm15_vm1, %v109_v12 }
  0xe3   :  { %111 = vst.msk [vmem:[#allocation2] sm:$0xff] %vm15_vm1, %v108_v14 }
  0xe9   :  { %v117_v15 = vld [vmem:[#allocation2 + $0x8] sm:$0xff] }
  0xea   :  { %119 = vst.msk [vmem:[%s202_s2 + $0x8] sm:$0xff] %vm15_vm1, %v117_v15  ;;  %v116_v16 = vld [vmem:[#allocation2] sm:$0xff] }
  0xeb   :  { %118 = vst.msk [vmem:[%s202_s2] sm:$0xff] %vm15_vm1, %v116_v16 }

// kernel: conv_tdf_net_forward.19
= control target key start
LH: loop header
LB: loop body
LE: loop exit
PB: predicated region body
PF: predicated region fallthrough
CT: control target
= control target key end

     0   :  { %s469_s12 = smov 0   ;;  %s471_s13 = smov 0   ;;  %s526_s0 = inlined_call_operand.vmem [shape: bf16[2,8,2,16], index: 0, kind: input, shape index: {}]   ;;  %s527_s1 = inlined_call_operand.vmem [shape: bf16[4,2], index: 1, kind: input, shape index: {}]   ;;  %s528_s2 = inlined_call_operand.vmem [shape: f32[4,1], index: 2, kind: input, shape index: {}]   ;;  %s529_s3 = inlined_call_operand.vmem [shape: bf16[2,8,4,16], index: 3, kind: output, shape index: {}]  }
   0x1   :  { %s473_s14 = smov 0   ;;  %s475_s15 = smov 0  }
   0x2   :  { %s477_s16 = smov 0  }
   0x3 LB: > { %s22_s17 = sadd.s32 1, %s436_s14  ;;  %s25_s18 = sadd.s32 1, %s440_s15  ;;  %s444_s16 = sphi %s477_s16, %s13_s16   ;;  %s440_s15 = sphi %s475_s15, %s533_s15   ;;  %s436_s14 = sphi %s473_s14, %s532_s14   ;;  %s432_s13 = sphi %s471_s13, %s531_s13   ;;  %s428_s12 = sphi %s469_s12, %s530_s12  }
   0x4   : > { %p23_p0 = scmp.ge.s32.totalorder %s22_s17, 8  ;;  %p347_p1 = scmp.ge.s32.totalorder %s444_s16, 1 }
   0x5   : > { %p155_p2 = scmp.lt.s32.totalorder %s444_s16, 17 }
   0x6   : > { %s535_s17 = smov (%p23_p0, %s22_s17), 0  ;;  %s537_s18 = smov (!%p23_p0, %s25_s18), %s440_s15 }
   0x7   : > { %p156_p3 = pnand %p347_p1, %p155_p2  ;;  %p27_p4 = scmp.ge.s32.totalorder %s537_s18, 2 }
   0x8   : > { %p184_p5 = scmp.lt.s32.totalorder (!%p156_p3), %s432_s13, 1  ;;  %p186_p6 = scmp.lt.s32.totalorder (!%p156_p3), %s428_s12, 7  ;;  %v446_v0 = vmov (!%p156_p3), 0.0   ;;  %vm447_vm0 = vmmov (!%p156_p3), 0   ;;  %v202_v1 = vld [vmem:[%s528_s2] sm:$0xf] (!%p156_p3) }
   0x9   : > { %s539_s18 = smov (%p27_p4, %s537_s18), 0  ;;  %159 = sbr.rel (%p156_p3) target bundleno = 244 (0xf4), region = 32 }
   0xa   : > { %356 = vmatprep.subr.bf16.mxu0 (!%p156_p3), %v446_v0  ;;  %358 = vmatprep.mubr.msk.bf16.mxu0 (!%p156_p3), %vm447_vm0, %v446_v0  ;;  %v448_v2 = vmov (!%p156_p3), 0   ;;  %vm212_vm1 = vcmask (!%p156_p3), 1040384   ;;  %v201_v5 = vld [vmem:[%s527_s1] sm:$0x3] (!%p156_p3)  ;;  %vm208_vm2 = vcmask (!%p156_p3), 15360   ;;  %vm258_vm3 = vcmask (!%p156_p3), 123904  }
   0xb   : > { %405 = vset.pattern.permute.xlu0 (!%p156_p3), %v448_v2 }
   0xc   : > { %205 = vperm.xlu0 (!%p156_p3), %405, %v202_v1  }
  0x10   : > { %s541_s13 = smov (!%p184_p5, %s432_s13), 1  ;;  %s543_s12 = smov (!%p186_p6, %s428_s12), 7 }
  0x11   : > { %s348_s21 = sshll.u32 %s541_s13, 3 }
  0x12   : > { %s189_s22 = sadd.s32 %s348_s21, %s543_s12 }
  0x13   : > { %s190_s25 = scalar_lea.vmem %s526_s0, %s189_s22  ;;  %s350_s28 = sshll.u32 %s189_s22, 1 }
  0x14   : > { %v200_v3 = vld [vmem:[%s190_s25] sm:$0x1]  ;;  %s198_s4 = scalar_lea.vmem %s529_s3, %s350_s28 }
  0x15   : > { %v214_v4 = vsel %vm212_vm1, %v200_v3, 0 }
  0x16   : > { %357 = vmatpush3.bf16.msra.mxu0 %v214_v4 }
  0x19   : > { %359 = vmatmul.mubr.msk.bf16.vlgmr.msra.gmra.mrb[0].mxu0 %vm208_vm2, %v201_v5 }
  0x8b   : > { %v206_v6 = vpop.permute.xlu0 %205 }
  0xec   : > { %v250_v7 = vpop.f32.mrb[0].mxu0 }
  0xed   : > { %v251_v8 = vadd.f32 %v250_v7, %v206_v6  ;;  %v360_v9 = vpop.f32.mrb[1].mxu0 }
  0xee   : > { %v253_v10 = vpop.f32.mrb[2].mxu0 }
  0xef   : > { %v256_v11 = vmax.f32 %v251_v8, 0.0  ;;  %v361_v12 = vpop.f32.mrb[3].mxu0 }
  0xf1   : > { %v257_v13 = vpack.c.bf16 %v256_v11, %v256_v11 }
  0xf3   : > { %259 = vst.msk [vmem:[%s198_s4] sm:$0x3] %vm258_vm3, %v257_v13 }
  0xf4 PF: > { %s13_s16 = sadd.s32 1, %s444_s16   ;;  %s530_s12 = smov %s436_s14 }
  0xf5   : > { %p10_p7 = scmp.ge.s32.totalorder %s13_s16, 18   ;;  %s531_s13 = smov %s440_s15 }
  0xf6   : > { %s532_s14 = smov %s535_s17  ;;  %s533_s15 = smov %s539_s18 }
  0xf7   :  { %12 = sbr.rel (!%p10_p7) target bundleno = 3 (0x3), region = 62 }

// kernel: conv_tdf_net_forward.20
= control target key start
LH: loop header
LB: loop body
LE: loop exit
PB: predicated region body
PF: predicated region fallthrough
CT: control target
= control target key end

     0   :  { %s721_s18 = smov 0   ;;  %s723_s19 = smov 0   ;;  %s796_s0 = inlined_call_operand.vmem [shape: bf16[2,10,16,18], index: 0, kind: input, shape index: {}, may-alias: {0,1,2}]   ;;  %s797_s1 = inlined_call_operand.vmem [shape: bf16[2,10,16,18], index: 1, kind: input, shape index: {}, may-alias: {0,1,2}]   ;;  %s798_s2 = inlined_call_operand.vmem [shape: bf16[2,10,16,18], index: 2, kind: input, shape index: {}, may-alias: {0,1,2}]   ;;  %s799_s3 = inlined_call_operand.vmem [shape: bf16[4,144], index: 3, kind: input, shape index: {}]   ;;  %s800_s4 = inlined_call_operand.vmem [shape: f32[4,1], index: 4, kind: input, shape index: {}]   ;;  %s801_s5 = inlined_call_operand.vmem [shape: bf16[2,8,4,16], index: 5, kind: output, shape index: {}]  }
   0x1   :  { %s725_s20 = smov 0   ;;  %s727_s21 = smov 0  }
   0x2   :  { %s729_s22 = smov 0  }
   0x3 LB: > { %s24_s23 = sadd.s32 1, %s678_s20  ;;  %s27_s24 = sadd.s32 1, %s682_s21  ;;  %s686_s22 = sphi %s729_s22, %s15_s22   ;;  %s682_s21 = sphi %s727_s21, %s805_s21   ;;  %s678_s20 = sphi %s725_s20, %s804_s20   ;;  %s674_s19 = sphi %s723_s19, %s803_s19   ;;  %s670_s18 = sphi %s721_s18, %s802_s18  }
   0x4   : > { %p25_p0 = scmp.ge.s32.totalorder %s24_s23, 8  ;;  %p584_p1 = scmp.ge.s32.totalorder %s686_s22, 1 }
   0x5   : > { %p247_p2 = scmp.lt.s32.totalorder %s686_s22, 17 }
   0x6   : > { %s807_s23 = smov (%p25_p0, %s24_s23), 0  ;;  %s809_s24 = smov (!%p25_p0, %s27_s24), %s682_s21 }
   0x7   : > { %p248_p3 = pnand %p584_p1, %p247_p2  ;;  %p29_p4 = scmp.ge.s32.totalorder %s809_s24, 2 }
   0x8   : > { %p302_p5 = scmp.lt.s32.totalorder (!%p248_p3), %s674_s19, 1  ;;  %p304_p6 = scmp.lt.s32.totalorder (!%p248_p3), %s670_s18, 9  ;;  %v688_v0 = vmov (!%p248_p3), 0   ;;  %vm401_vm0 = vcmask (!%p248_p3), 130048   ;;  %v385_v6 = vld [vmem:[%s800_s4] sm:$0xf] (!%p248_p3) }
   0x9   : > { %s811_s24 = smov (%p29_p4, %s809_s24), 0  ;;  %251 = sbr.rel (%p248_p3) target bundleno = 389 (0x185), region = 40 }
   0xa   : > { %405 = vmatprep.subr.bf16.mxu0 (!%p248_p3), %v688_v0  ;;  %644 = vset.pattern.permute.xlu0 (!%p248_p3), %v688_v0  ;;  %s311_s27 = sadd.s32 (!%p248_p3), 1, %s670_s18  ;;  %s322_s30 = sadd.s32 (!%p248_p3), 2, %s670_s18  ;;  %v596_v4 = vld.sshfl [vmem:[%s799_s3] sm:$0x33 pattern:$0x76325410] (!%p248_p3) }
   0xb   : > { %p314_p7 = scmp.lt.s32.totalorder (!%p248_p3), %s311_s27, 9  ;;  %p325_p8 = scmp.lt.s32.totalorder (!%p248_p3), %s322_s30, 9  ;;  %v399_v5 = vcombine.high (!%p248_p3), %v596_v4, %v596_v4  ;;  %vm447_vm1 = vcmask (!%p248_p3), 123904  }
   0xc   : > { %s689_s10 = smov (!%p248_p3), 127   ;;  %p335_p9 = scmp.lt.s32.totalorder (!%p248_p3), %s670_s18, 7 }
   0xd   : > { %597 = vmatprep.mubr.msk.bf16.mxu0 (!%p248_p3), %vm401_vm0, %v399_v5 }
  0x10   : > { %s813_s19 = smov (!%p302_p5, %s674_s19), 1  ;;  %s815_s27 = smov (!%p314_p7, %s311_s27), 9 }
  0x11   : > { %s305_s25 = scalar_select %p304_p6, %s670_s18, 9 }
  0x12   : > { %s600_s26 = smul.u32 20, %s813_s19  ;;  %s817_s30 = smov (!%p325_p8, %s322_s30), 9 }
  0x13   : > { %s585_s28 = sshll.u32 %s305_s25, 1  ;;  %s587_s11 = sshll.u32 %s815_s27, 1 }
  0x14   : > { %s308_s29 = sadd.s32 %s600_s26, %s585_s28  ;;  %s318_s12 = sadd.s32 %s600_s26, %s587_s11 }
  0x15   : > { %s586_s6 = sshll.u32 %s308_s29, 2  ;;  %s589_s13 = sshll.u32 %s817_s30, 1 }
  0x16   : > { %s310_s9 = scalar_lea.vmem %s796_s0, %s586_s6  ;;  %s588_s14 = sshll.u32 %s318_s12, 2 }
  0x17   : > { %v645_v1 = vld [vmem:[%s310_s9] sm:$0xff]   ;;  %s329_s15 = sadd.s32 %s600_s26, %s589_s13  ;;  %s320_s25 = scalar_lea.vmem %s797_s1, %s588_s14 }
  0x18   : > { %354 = vrot.lane.b32.xlu0 %v645_v1, %s689_s10  ;;  %406 = vmatpush1.bf16.msra.mxu0 %v645_v1  ;;  %s590_s28 = sshll.u32 %s329_s15, 2  ;;  %s690_s29 = smov 126   ;;  %v646_v2 = vld [vmem:[%s320_s25] sm:$0xff]  }
  0x19   : > { %407 = vmatprep.subr.bf16.mxu0 %v688_v0  ;;  %s331_s8 = scalar_lea.vmem %s798_s2, %s590_s28  ;;  %366 = vrot.lane.b32.xlu1 %v646_v2, %s689_s10  ;;  %s819_s18 = smov (!%p335_p9, %s670_s18), 7 }
  0x1a   : > { %v647_v3 = vld [vmem:[%s331_s8] sm:$0xff]  }
  0x1c   : > { %357 = vrot.lane.b32.xlu0 %v645_v1, %s690_s29 }
  0x1d   : > { %369 = vrot.lane.b32.xlu1 %v646_v2, %s690_s29 }
  0x20   : > { %378 = vrot.lane.b32.xlu0 %v647_v3, %s689_s10  ;;  %s591_s10 = sshll.u32 %s813_s19, 3 }
  0x21   : > { %381 = vrot.lane.b32.xlu1 %v647_v3, %s690_s29  ;;  %s338_s11 = sadd.s32 %s591_s10, %s819_s18 }
  0x22   : > { %s592_s12 = sshll.u32 %s338_s11, 1 }
  0x23   : > { %s340_s15 = scalar_lea.vmem %s801_s5, %s592_s12 }
  0x24   : > { %388 = vperm.xlu0 %644, %v385_v6  }
  0x8a   : > { %v355_v7 = vpop.permute.xlu0 %354 }
  0x8b   : > { %408 = vmatpush1.bf16.msra.mxu0 %v355_v7  ;;  %v367_v9 = vpop.permute.xlu1 %366 }
  0x8c   : > { %409 = vmatprep.subr.bf16.mxu0 %v688_v0 }
  0x8e   : > { %v358_v8 = vpop.permute.xlu0 %357 }
  0x8f   : > { %410 = vmatpush1.bf16.msra.mxu0 %v358_v8  ;;  %v370_v10 = vpop.permute.xlu1 %369 }
  0x90   : > { %411 = vmatprep.subr.bf16.mxu0 %v688_v0 }
  0x92   : > { %v379_v11 = vpop.permute.xlu0 %378 }
  0x93   : > { %412 = vmatpush1.bf16.msra.mxu0 %v646_v2  ;;  %v382_v12 = vpop.permute.xlu1 %381 }
  0x94   : > { %413 = vmatprep.subr.bf16.mxu0 %v688_v0 }
  0x97   : > { %414 = vmatpush1.bf16.msra.mxu0 %v367_v9 }
  0x98   : > { %415 = vmatprep.subr.bf16.mxu0 %v688_v0 }
  0x9b   : > { %416 = vmatpush1.bf16.msra.mxu0 %v370_v10 }
  0x9c   : > { %417 = vmatprep.subr.bf16.mxu0 %v688_v0 }
  0x9f   : > { %418 = vmatpush1.bf16.msra.mxu0 %v647_v3 }
  0xa0   : > { %419 = vmatprep.subr.bf16.mxu0 %v688_v0 }
  0xa3   : > { %420 = vmatpush1.bf16.msra.mxu0 %v379_v11  ;;  %v389_v13 = vpop.permute.xlu0 %388 }
  0xa4   : > { %421 = vmatprep.subr.bf16.mxu0 %v688_v0 }
  0xa7   : > { %422 = vmatpush1.bf16.msra.mxu0 %v382_v12 }
  0xaa   : > { %438 = vmatmul.mubr.bf16.vlgmr.msra.gmra.mrb[0].mxu0 %v596_v4 }
 0x17d   : > { %v439_v14 = vpop.f32.mrb[0].mxu0 }
 0x17e   : > { %v440_v15 = vadd.f32 %v439_v14, %v389_v13  ;;  %v441_v16 = vpop.f32.mrb[1].mxu0 }
 0x17f   : > { %v442_v17 = vpop.f32.mrb[2].mxu0 }
 0x180   : > { %v445_v18 = vmax.f32 %v440_v15, 0.0  ;;  %v443_v19 = vpop.f32.mrb[3].mxu0 }
 0x182   : > { %v446_v20 = vpack.c.bf16 %v445_v18, %v445_v18 }
 0x184   : > { %448 = vst.msk [vmem:[%s340_s15] sm:$0x3] %vm447_vm1, %v446_v20 }
 0x185 PF: > { %s15_s22 = sadd.s32 1, %s686_s22   ;;  %s802_s18 = smov %s678_s20 }
 0x186   : > { %p12_p10 = scmp.ge.s32.totalorder %s15_s22, 18   ;;  %s803_s19 = smov %s682_s21 }
 0x187   : > { %s804_s20 = smov %s807_s23  ;;  %s805_s21 = smov %s811_s24 }
 0x188   :  { %14 = sbr.rel (!%p12_p10) target bundleno = 3 (0x3), region = 76 }

// kernel: conv_tdf_net_forward.21
= control target key start
LH: loop header
LB: loop body
LE: loop exit
PB: predicated region body
PF: predicated region fallthrough
CT: control target
= control target key end

     0   :  { %v623_v1 = vmov 0   ;;  %vm76_vm0 = vcmask 130048   ;;  %vm299_vm1 = vcmask 1041408   ;;  %vm286_vm2 = vcmask 31744   ;;  %s857_s1 = inlined_call_operand.vmem [shape: bf16[16,4], index: 1, kind: input, shape index: {}]   ;;  %s858_s0 = inlined_call_operand.vmem [shape: bf16[64,16], index: 0, kind: input, shape index: {}]   ;;  %s859_s5 = inlined_call_operand.vmem [shape: f32[64,1], index: 5, kind: input, shape index: {}]   ;;  %s860_s6 = inlined_call_operand.vmem [shape: f32[64,1], index: 6, kind: input, shape index: {}]   ;;  %s861_s7 = inlined_call_operand.vmem [shape: f32[64,1], index: 7, kind: input, shape index: {}]   ;;  %s862_s8 = inlined_call_operand.vmem [shape: f32[64,1], index: 8, kind: input, shape index: {}]   ;;  %s863_s2 = inlined_call_operand.vmem [shape: bf16[4,16], index: 2, kind: input, shape index: {}]   ;;  %s864_s3 = inlined_call_operand.vmem [shape: f32[1,4], index: 3, kind: input, shape index: {}]   ;;  %s865_s4 = inlined_call_operand.vmem [shape: f32[1,16], index: 4, kind: input, shape index: {}]   ;;  %s866_s9 = inlined_call_operand.vmem [shape: bf16[64,16], index: 9, kind: output, shape index: {}]  }
   0x1   :  { %v614_v0 = vld [vmem:[%s857_s1] sm:$0xff]   ;;  %613 = vset.pattern.permute.xlu1 %v623_v1  ;;  %612 = vset.pattern.permute.xlu0 %v623_v1  ;;  %v685_v3 = vld [vmem:[%s858_s0 + $0x8] sm:$0xff]   ;;  %v690_v4 = vld [vmem:[%s858_s0 + $0x10] sm:$0xff]   ;;  %vm536_vm3 = vcmask 125952  }
   0x2   :  { %v680_v2 = vld [vmem:[%s858_s0] sm:$0xff]   ;;  %590 = vmatprep.subr.bf16.mxu0 %v614_v0  ;;  %v156_v5 = vld [vmem:[%s859_s5 + $0x10] sm:$0xff]  ;;  %v157_v7 = vld [vmem:[%s859_s5 + $0x18] sm:$0xff] }
   0x3   :  { %v154_v6 = vld [vmem:[%s859_s5] sm:$0xff]  ;;  %591 = vmatpush3.bf16.msra.mxu0 %v614_v0  ;;  %174 = vperm.xlu1 %613, %v156_v5   ;;  %v155_v8 = vld [vmem:[%s859_s5 + $0x8] sm:$0xff]  ;;  %v713_v9 = vld [vmem:[%s858_s0 + $0x18] sm:$0xff]  }
   0x4   :  { %592 = vmatprep.mubr.msk.bf16.mxu0 %vm76_vm0, %v680_v2  ;;  %164 = vperm.xlu0 %612, %v154_v6   ;;  %v211_v10 = vld [vmem:[%s860_s6 + $0x8] sm:$0xff]  ;;  %v210_v11 = vld [vmem:[%s860_s6] sm:$0xff]  ;;  %v213_v12 = vld [vmem:[%s860_s6 + $0x18] sm:$0xff] }
   0x5   :  { %v212_v13 = vld [vmem:[%s860_s6 + $0x10] sm:$0xff]  ;;  %v159_v14 = vld [vmem:[%s859_s5 + $0x28] sm:$0xff]  ;;  %v158_v15 = vld [vmem:[%s859_s5 + $0x20] sm:$0xff] }
   0x6   :  { %593 = vmatmul.mubr.msk.bf16.vlgmr.msra.gmra.mrb[0].mxu0 %vm76_vm0, %v685_v3  ;;  %v161_v16 = vld [vmem:[%s859_s5 + $0x38] sm:$0xff]  ;;  %v160_v17 = vld [vmem:[%s859_s5 + $0x30] sm:$0xff]  ;;  %v215_v18 = vld [vmem:[%s860_s6 + $0x28] sm:$0xff] }
   0x7   :  { %596 = vmatprep.mubr.msk.bf16.mxu0 %vm76_vm0, %v690_v4  ;;  %179 = vperm.xlu1 %613, %v157_v7   ;;  %v214_v19 = vld [vmem:[%s860_s6 + $0x20] sm:$0xff]  ;;  %v217_v20 = vld [vmem:[%s860_s6 + $0x38] sm:$0xff]  ;;  %v216_v21 = vld [vmem:[%s860_s6 + $0x30] sm:$0xff] }
   0x8   :  { %169 = vperm.xlu0 %612, %v155_v8   ;;  %v369_v22 = vld [vmem:[%s861_s7 + $0x8] sm:$0xff]  ;;  %v368_v23 = vld [vmem:[%s861_s7] sm:$0xff]  ;;  %v371_v24 = vld [vmem:[%s861_s7 + $0x18] sm:$0xff] }
   0x9   :  { %v370_v25 = vld [vmem:[%s861_s7 + $0x10] sm:$0xff]  ;;  %v373_v26 = vld [vmem:[%s861_s7 + $0x28] sm:$0xff]  ;;  %v372_v27 = vld [vmem:[%s861_s7 + $0x20] sm:$0xff] }
   0xa   :  { %v375_v28 = vld [vmem:[%s861_s7 + $0x38] sm:$0xff]  ;;  %v374_v29 = vld [vmem:[%s861_s7 + $0x30] sm:$0xff]  ;;  %v425_v30 = vld [vmem:[%s862_s8 + $0x8] sm:$0xff] }
   0xb   :  { %225 = vperm.xlu1 %613, %v211_v10   ;;  %v424_v31 = vld [vmem:[%s862_s8] sm:$0xff]  ;;  %v427_v32 = vld [vmem:[%s862_s8 + $0x18] sm:$0xff]  ;;  %v426_v33 = vld [vmem:[%s862_s8 + $0x10] sm:$0xff] }
   0xc   :  { %220 = vperm.xlu0 %612, %v210_v11   ;;  %v429_v34 = vld [vmem:[%s862_s8 + $0x28] sm:$0xff]  ;;  %v428_v35 = vld [vmem:[%s862_s8 + $0x20] sm:$0xff]  ;;  %v431_v36 = vld [vmem:[%s862_s8 + $0x38] sm:$0xff] }
   0xd   :  { %v430_v37 = vld [vmem:[%s862_s8 + $0x30] sm:$0xff]  ;;  %v278_v38 = vld [vmem:[%s863_s2] sm:$0x3] }
   0xe   :  { %597 = vmatmul.mubr.msk.bf16.gmra.mrb[4].mxu0 %vm76_vm0, %v713_v9  ;;  %610 = vmatprep.subr.msk.bf16.mxu1 %vm299_vm1, %v278_v38  ;;  %v301_v39 = vsel %vm299_vm1, %v278_v38, 0  ;;  %v549_v50 = vld [vmem:[%s864_s3] ss:$0 sm:$0xff] }
   0xf   :  { %235 = vperm.xlu1 %613, %v213_v12   ;;  %601 = vmatpush3.bf16.msra.mxu1 %v301_v39 }
  0x10   :  { %230 = vperm.xlu0 %612, %v212_v13  }
  0x13   :  { %189 = vperm.xlu1 %613, %v159_v14  }
  0x14   :  { %184 = vperm.xlu0 %612, %v158_v15  }
  0x17   :  { %199 = vperm.xlu1 %613, %v161_v16  }
  0x18   :  { %194 = vperm.xlu0 %612, %v160_v17  }
  0x1b   :  { %245 = vperm.xlu1 %613, %v215_v18  }
  0x1c   :  { %240 = vperm.xlu0 %612, %v214_v19  }
  0x1f   :  { %255 = vperm.xlu1 %613, %v217_v20  }
  0x20   :  { %250 = vperm.xlu0 %612, %v216_v21  }
  0x23   :  { %383 = vperm.xlu1 %613, %v369_v22  }
  0x24   :  { %378 = vperm.xlu0 %612, %v368_v23  }
  0x27   :  { %393 = vperm.xlu1 %613, %v371_v24  }
  0x28   :  { %388 = vperm.xlu0 %612, %v370_v25  }
  0x2b   :  { %403 = vperm.xlu1 %613, %v373_v26  }
  0x2c   :  { %398 = vperm.xlu0 %612, %v372_v27  }
  0x2f   :  { %413 = vperm.xlu1 %613, %v375_v28  }
  0x30   :  { %408 = vperm.xlu0 %612, %v374_v29  }
  0x33   :  { %439 = vperm.xlu1 %613, %v425_v30  }
  0x34   :  { %434 = vperm.xlu0 %612, %v424_v31  }
  0x37   :  { %449 = vperm.xlu1 %613, %v427_v32  }
  0x38   :  { %444 = vperm.xlu0 %612, %v426_v33  }
  0x3b   :  { %459 = vperm.xlu1 %613, %v429_v34  }
  0x3c   :  { %454 = vperm.xlu0 %612, %v428_v35  }
  0x3f   :  { %469 = vperm.xlu1 %613, %v431_v36  }
  0x40   :  { %464 = vperm.xlu0 %612, %v430_v37  }
  0x82   :  { %v175_v41 = vpop.permute.xlu1 %174 }
  0x83   :  { %v165_v40 = vpop.permute.xlu0 %164 }
  0x86   :  { %v180_v43 = vpop.permute.xlu1 %179 }
  0x87   :  { %v170_v42 = vpop.permute.xlu0 %169 }
  0x8a   :  { %v226_v45 = vpop.permute.xlu1 %225 }
  0x8b   :  { %v221_v44 = vpop.permute.xlu0 %220 }
  0x8e   :  { %v236_v47 = vpop.permute.xlu1 %235 }
  0x8f   :  { %v231_v46 = vpop.permute.xlu0 %230 }
  0x92   :  { %v190_v49 = vpop.permute.xlu1 %189 }
  0x93   :  { %v185_v48 = vpop.permute.xlu0 %184 }
  0x96   :  { %v200_v55 = vpop.permute.xlu1 %199 }
  0x97   :  { %v195_v51 = vpop.permute.xlu0 %194 }
  0x9a   :  { %v246_v8 = vpop.permute.xlu1 %245 }
  0x9b   :  { %v241_v1 = vpop.permute.xlu0 %240 }
  0x9e   :  { %v256_v30 = vpop.permute.xlu1 %255 }
  0x9f   :  { %v251_v24 = vpop.permute.xlu0 %250 }
  0xd9   :  { %v594_v52 = vpop.f32.mrb[0].mxu0 }
  0xda   :  { %v132_v53 = vadd.f32 %v594_v52, %v549_v50  ;;  %v123_v54 = vpop.f32.mrb[1].mxu0 }
  0xdb   :  { %v124_v56 = vadd.f32 %v549_v50, %v123_v54  ;;  %v595_v57 = vpop.f32.mrb[2].mxu0 }
  0xdc   :  { %v204_v58 = vmul.f32 %v175_v41, %v132_v53  ;;  %v135_v59 = vadd.f32 %v595_v57, %v549_v50  ;;  %v126_v60 = vpop.f32.mrb[3].mxu0  ;;  %v379_v41 = vpop.permute.xlu0 %378 }
  0xdd   :  { %v202_v61 = vmul.f32 %v165_v40, %v124_v56  ;;  %v127_v62 = vadd.f32 %v549_v50, %v126_v60 }
  0xde   :  { %v260_v63 = vadd.f32 %v231_v46, %v204_v58  ;;  %v205_v0 = vmul.f32 %v180_v43, %v135_v59 }
  0xdf   :  { %v203_v5 = vmul.f32 %v170_v42, %v127_v62  ;;  %v258_v6 = vadd.f32 %v221_v44, %v202_v61  ;;  %v384_v42 = vpop.permute.xlu1 %383 }
  0xe0   :  { %v261_v7 = vadd.f32 %v236_v47, %v205_v0  ;;  %v268_v12 = vmax.f32 %v260_v63, 0.0  ;;  %v389_v43 = vpop.permute.xlu0 %388 }
  0xe1   :  { %v598_v10 = vpop.f32.mrb[4].mxu0  ;;  %v259_v11 = vadd.f32 %v226_v45, %v203_v5  ;;  %v266_v18 = vmax.f32 %v258_v6, 0.0  ;;  %v488_v6 = vunpack.c.l.bf16 %v680_v2 }
  0xe2   :  { %v269_v13 = vmax.f32 %v261_v7, 0.0  ;;  %v148_v14 = vadd.f32 %v598_v10, %v549_v50  ;;  %v139_v15 = vpop.f32.mrb[5].mxu0 }
  0xe3   :  { %v140_v16 = vadd.f32 %v549_v50, %v139_v15  ;;  %v599_v17 = vpop.f32.mrb[6].mxu0  ;;  %v267_v19 = vmax.f32 %v259_v11, 0.0  ;;  %v394_v44 = vpop.permute.xlu1 %393 }
  0xe4   :  { %v275_v20 = vpack.c.bf16 %v269_v13, %v268_v12  ;;  %v208_v21 = vmul.f32 %v195_v51, %v148_v14  ;;  %v151_v22 = vadd.f32 %v599_v17, %v549_v50  ;;  %v142_v23 = vpop.f32.mrb[7].mxu0  ;;  %v399_v45 = vpop.permute.xlu0 %398  ;;  %v559_v51 = vld [vmem:[%s865_s4] ss:$0 sm:$0xff]  ;;  %v491_v13 = vunpack.c.h.bf16 %v685_v3 }
  0xe5   :  { %v206_v25 = vmul.f32 %v185_v48, %v140_v16  ;;  %v143_v26 = vadd.f32 %v549_v50, %v142_v23  ;;  %v274_v27 = vpack.c.bf16 %v267_v19, %v266_v18  ;;  %v489_v14 = vunpack.c.h.bf16 %v680_v2 }
  0xe6   :  { %v264_v28 = vadd.f32 %v251_v24, %v208_v21  ;;  %v209_v29 = vmul.f32 %v200_v55, %v151_v22 }
  0xe7   :  { %v262_v31 = vadd.f32 %v241_v1, %v206_v25  ;;  %v207_v32 = vmul.f32 %v190_v49, %v143_v26  ;;  %602 = vmatprep.mubr.msk.bf16.mxu1 %vm286_vm2, %v274_v27  ;;  %v811_v46 = vpop.permute.xlu1 %403  ;;  %v490_v1 = vunpack.c.l.bf16 %v685_v3 }
  0xe8   :  { %v265_v33 = vadd.f32 %v256_v30, %v209_v29  ;;  %603 = vmatmul.mubr.msk.bf16.vlgmr.msra.gmra.mrb[0].mxu1 %vm286_vm2, %v275_v20  ;;  %v272_v35 = vmax.f32 %v264_v28, 0.0  ;;  %v409_v47 = vpop.permute.xlu0 %408 }
  0xe9   :  { %v263_v34 = vadd.f32 %v246_v8, %v207_v32  ;;  %v270_v37 = vmax.f32 %v262_v31, 0.0 }
  0xea   :  { %v273_v36 = vmax.f32 %v265_v33, 0.0 }
  0xeb   :  { %v271_v38 = vmax.f32 %v263_v34, 0.0  ;;  %v414_v48 = vpop.permute.xlu1 %413 }
  0xec   :  { %v277_v39 = vpack.c.bf16 %v273_v36, %v272_v35  ;;  %v435_v49 = vpop.permute.xlu0 %434 }
  0xed   :  { %v276_v40 = vpack.c.bf16 %v271_v38, %v270_v37  ;;  %v494_v37 = vunpack.c.l.bf16 %v713_v9 }
  0xef   :  { %606 = vmatprep.mubr.msk.bf16.mxu1 %vm286_vm2, %v276_v40  ;;  %v440_v50 = vpop.permute.xlu1 %439 }
  0xf0   :  { %607 = vmatmul.mubr.msk.bf16.gmra.mrb[4].mxu1 %vm286_vm2, %v277_v39  ;;  %v445_v52 = vpop.permute.xlu0 %444 }
  0xf3   :  { %v450_v56 = vpop.permute.xlu1 %449 }
  0xf4   :  { %v455_v7 = vpop.permute.xlu0 %454 }
  0xf7   :  { %v460_v15 = vpop.permute.xlu1 %459 }
  0xf8   :  { %v465_v31 = vpop.permute.xlu0 %464 }
  0xfb   :  { %v470_v39 = vpop.permute.xlu1 %469 }
 0x1bb   :  { %v604_v53 = vpop.f32.mrb[0].mxu1 }
 0x1bc   :  { %v346_v54 = vadd.f32 %v604_v53, %v559_v51  ;;  %v337_v55 = vpop.f32.mrb[1].mxu1 }
 0x1bd   :  { %v338_v57 = vadd.f32 %v559_v51, %v337_v55  ;;  %v605_v58 = vpop.f32.mrb[2].mxu1 }
 0x1be   :  { %v418_v59 = vmul.f32 %v389_v43, %v346_v54  ;;  %v349_v60 = vadd.f32 %v605_v58, %v559_v51  ;;  %v340_v61 = vpop.f32.mrb[3].mxu1 }
 0x1bf   :  { %v416_v62 = vmul.f32 %v379_v41, %v338_v57  ;;  %v341_v63 = vadd.f32 %v559_v51, %v340_v61 }
 0x1c0   :  { %v474_v0 = vadd.f32 %v445_v52, %v418_v59  ;;  %v419_v5 = vmul.f32 %v394_v44, %v349_v60 }
 0x1c1   :  { %v472_v8 = vadd.f32 %v435_v49, %v416_v62  ;;  %v417_v10 = vmul.f32 %v384_v42, %v341_v63  ;;  %v492_v42 = vunpack.c.l.bf16 %v690_v4 }
 0x1c2   :  { %v482_v11 = vmax.f32 %v474_v0, 0.0  ;;  %v475_v12 = vadd.f32 %v450_v56, %v419_v5 }
 0x1c3   :  { %v480_v16 = vmax.f32 %v472_v8, 0.0  ;;  %v473_v17 = vadd.f32 %v440_v50, %v417_v10  ;;  %v608_v18 = vpop.f32.mrb[4].mxu1  ;;  %v493_v50 = vunpack.c.h.bf16 %v690_v4 }
 0x1c4   :  { %v498_v19 = vadd.f32 %v490_v1, %v482_v11  ;;  %v483_v20 = vmax.f32 %v475_v12, 0.0  ;;  %v362_v21 = vadd.f32 %v608_v18, %v559_v51  ;;  %v353_v22 = vpop.f32.mrb[5].mxu1 }
 0x1c5   :  { %v496_v23 = vadd.f32 %v488_v6, %v480_v16  ;;  %v481_v24 = vmax.f32 %v473_v17, 0.0  ;;  %v354_v25 = vadd.f32 %v559_v51, %v353_v22  ;;  %v609_v26 = vpop.f32.mrb[6].mxu1 }
 0x1c6   :  { %v574_v27 = vpack.c.bf16 %v498_v19, %v498_v19  ;;  %v499_v28 = vadd.f32 %v491_v13, %v483_v20  ;;  %v422_v29 = vmul.f32 %v409_v47, %v362_v21  ;;  %v365_v30 = vadd.f32 %v609_v26, %v559_v51  ;;  %v356_v3 = vpop.f32.mrb[7].mxu1 }
 0x1c7   :  { %v572_v2 = vpack.c.bf16 %v496_v23, %v496_v23  ;;  %v497_v32 = vadd.f32 %v489_v14, %v481_v24  ;;  %v420_v33 = vmul.f32 %v399_v45, %v354_v25  ;;  %v357_v34 = vadd.f32 %v559_v51, %v356_v3 }
 0x1c8   :  { %539 = vst.msk [vmem:[%s866_s9 + $0x8] sm:$0xf] %vm536_vm3, %v574_v27  ;;  %v575_v35 = vpack.c.bf16 %v499_v28, %v499_v28  ;;  %v478_v36 = vadd.f32 %v465_v31, %v422_v29  ;;  %v423_v38 = vmul.f32 %v414_v48, %v365_v30  ;;  %v495_v47 = vunpack.c.h.bf16 %v713_v9 }
 0x1c9   :  { %537 = vst.msk [vmem:[%s866_s9] sm:$0xf] %vm536_vm3, %v572_v2  ;;  %v573_v40 = vpack.c.bf16 %v497_v32, %v497_v32  ;;  %v476_v41 = vadd.f32 %v455_v7, %v420_v33  ;;  %v421_v43 = vmul.f32 %v811_v46, %v357_v34 }
 0x1ca   :  { %540 = vst.msk [vmem:[%s866_s9 + $0xc] sm:$0xf] %vm536_vm3, %v575_v35  ;;  %v486_v44 = vmax.f32 %v478_v36, 0.0  ;;  %v479_v45 = vadd.f32 %v470_v39, %v423_v38 }
 0x1cb   :  { %538 = vst.msk [vmem:[%s866_s9 + $0x4] sm:$0xf] %vm536_vm3, %v573_v40  ;;  %v484_v48 = vmax.f32 %v476_v41, 0.0  ;;  %v477_v49 = vadd.f32 %v460_v15, %v421_v43 }
 0x1cc   :  { %v502_v51 = vadd.f32 %v494_v37, %v486_v44  ;;  %v487_v46 = vmax.f32 %v479_v45, 0.0 }
 0x1cd   :  { %v500_v52 = vadd.f32 %v492_v42, %v484_v48  ;;  %v485_v53 = vmax.f32 %v477_v49, 0.0 }
 0x1ce   :  { %v578_v54 = vpack.c.bf16 %v502_v51, %v502_v51  ;;  %v503_v55 = vadd.f32 %v495_v47, %v487_v46 }
 0x1cf   :  { %v576_v56 = vpack.c.bf16 %v500_v52, %v500_v52  ;;  %v501_v57 = vadd.f32 %v493_v50, %v485_v53 }
 0x1d0   :  { %543 = vst.msk [vmem:[%s866_s9 + $0x18] sm:$0xf] %vm536_vm3, %v578_v54  ;;  %v579_v9 = vpack.c.bf16 %v503_v55, %v503_v55 }
 0x1d1   :  { %541 = vst.msk [vmem:[%s866_s9 + $0x10] sm:$0xf] %vm536_vm3, %v576_v56  ;;  %v577_v4 = vpack.c.bf16 %v501_v57, %v501_v57 }
 0x1d2   :  { %544 = vst.msk [vmem:[%s866_s9 + $0x1c] sm:$0xf] %vm536_vm3, %v579_v9 }
 0x1d3   :  { %542 = vst.msk [vmem:[%s866_s9 + $0x14] sm:$0xf] %vm536_vm3, %v577_v4 }

// kernel: tile.143
= control target key start
LH: loop header
LB: loop body
LE: loop exit
PB: predicated region body
PF: predicated region fallthrough
CT: control target
= control target key end

     0   :  { %s22_s0 = inlined_call_operand.vmem [shape: f32[8], index: 0, kind: input, shape index: {}]   ;;  %s23_s1 = inlined_call_operand.vmem [shape: f32[8,8], index: 1, kind: output, shape index: {}]  }
   0x1   :  { %v4_v0 = vld [vmem:[%s22_s0] ss:$0 sm:$0xff] }
   0x2   :  { %5 = vst [vmem:[%s23_s1] sm:$0xff] %v4_v0 }

// kernel: tile.4
= control target key start
LH: loop header
LB: loop body
LE: loop exit
PB: predicated region body
PF: predicated region fallthrough
CT: control target
= control target key end

     0   :  { %vm3_vm0 = vcmask 7168   ;;  %s84_s8 = smov 125   ;;  %s85_s13 = smov 126   ;;  %s167_s0 = inlined_call_operand.vmem [shape: f32[8,8], index: 0, kind: input, shape index: {}]   ;;  %s168_s1 = inlined_call_operand.vmem [shape: f32[64,1], index: 1, kind: output, shape index: {}]  }
   0x1   :  { %v6_v0 = vld [vmem:[%s167_s0] sm:$0xff]   ;;  %s83_s0 = smov 127   ;;  %s86_s14 = smov 124  }
   0x2   :  { %7 = vrot.lane.b32.xlu0 %v6_v0, %s83_s0  ;;  %23 = vrot.lane.b32.xlu1 %v6_v0, %s84_s8  ;;  %4 = vst.msk [vmem:[%s168_s1] ss:$8 sm:$0xf] %vm3_vm0, %v6_v0   ;;  %5 = vst.msk [vmem:[%s168_s1] ss:$8 sm:$0xf0] %vm3_vm0, %v6_v0  }
   0x3   :  { %s87_s15 = smov 123   ;;  %s88_s16 = smov 122  }
   0x4   :  { %s89_s17 = smov 121  }
   0x6   :  { %15 = vrot.lane.b32.xlu0 %v6_v0, %s85_s13  ;;  %31 = vrot.lane.b32.xlu1 %v6_v0, %s86_s14 }
   0xa   :  { %39 = vrot.lane.b32.xlu0 %v6_v0, %s87_s15  ;;  %47 = vrot.lane.b32.xlu1 %v6_v0, %s88_s16 }
   0xe   :  { %55 = vrot.lane.b32.xlu0 %v6_v0, %s89_s17 }
  0x74   :  { %v8_v1 = vpop.permute.xlu0 %7   ;;  %v24_v2 = vpop.permute.xlu1 %23  }
  0x75   :  { %62 = vst.msk [vmem:[%s168_s1 + $0x1] ss:$8 sm:$0xf] %vm3_vm0, %v8_v1   ;;  %63 = vst.msk [vmem:[%s168_s1 + $0x1] ss:$8 sm:$0xf0] %vm3_vm0, %v8_v1  }
  0x76   :  { %66 = vst.msk [vmem:[%s168_s1 + $0x3] ss:$8 sm:$0xf] %vm3_vm0, %v24_v2   ;;  %67 = vst.msk [vmem:[%s168_s1 + $0x3] ss:$8 sm:$0xf0] %vm3_vm0, %v24_v2  }
  0x78   :  { %v16_v3 = vpop.permute.xlu0 %15   ;;  %v32_v4 = vpop.permute.xlu1 %31  }
  0x79   :  { %64 = vst.msk [vmem:[%s168_s1 + $0x2] ss:$8 sm:$0xf] %vm3_vm0, %v16_v3   ;;  %65 = vst.msk [vmem:[%s168_s1 + $0x2] ss:$8 sm:$0xf0] %vm3_vm0, %v16_v3  }
  0x7a   :  { %68 = vst.msk [vmem:[%s168_s1 + $0x4] ss:$8 sm:$0xf] %vm3_vm0, %v32_v4   ;;  %69 = vst.msk [vmem:[%s168_s1 + $0x4] ss:$8 sm:$0xf0] %vm3_vm0, %v32_v4  }
  0x7c   :  { %v40_v5 = vpop.permute.xlu0 %39   ;;  %v48_v6 = vpop.permute.xlu1 %47  }
  0x7d   :  { %70 = vst.msk [vmem:[%s168_s1 + $0x5] ss:$8 sm:$0xf] %vm3_vm0, %v40_v5   ;;  %71 = vst.msk [vmem:[%s168_s1 + $0x5] ss:$8 sm:$0xf0] %vm3_vm0, %v40_v5  }
  0x7e   :  { %72 = vst.msk [vmem:[%s168_s1 + $0x6] ss:$8 sm:$0xf] %vm3_vm0, %v48_v6   ;;  %73 = vst.msk [vmem:[%s168_s1 + $0x6] ss:$8 sm:$0xf0] %vm3_vm0, %v48_v6  }
  0x80   :  { %v56_v7 = vpop.permute.xlu0 %55  }
  0x81   :  { %74 = vst.msk [vmem:[%s168_s1 + $0x7] ss:$8 sm:$0xf] %vm3_vm0, %v56_v7   ;;  %75 = vst.msk [vmem:[%s168_s1 + $0x7] ss:$8 sm:$0xf0] %vm3_vm0, %v56_v7  }

// kernel: conv_tdf_net_forward.22
= control target key start
LH: loop header
LB: loop body
LE: loop exit
PB: predicated region body
PF: predicated region fallthrough
CT: control target
= control target key end

     0   :  { %s618_s15 = smov 0   ;;  %s620_s16 = smov 0   ;;  %s687_s0 = inlined_call_operand.vmem [shape: bf16[2,8,16,8], index: 0, kind: input, shape index: {}, may-alias: {0,1}]   ;;  %s688_s1 = inlined_call_operand.vmem [shape: bf16[2,8,16,8], index: 1, kind: input, shape index: {}, may-alias: {0,1}]   ;;  %s689_s2 = inlined_call_operand.vmem [shape: bf16[8,32], index: 2, kind: input, shape index: {}]   ;;  %s690_s3 = inlined_call_operand.vmem [shape: f32[8,1], index: 3, kind: input, shape index: {}]   ;;  %s691_s4 = inlined_call_operand.vmem [shape: bf16[2,4,8,8], index: 4, kind: output, shape index: {}]  }
   0x1   :  { %s622_s17 = smov 0   ;;  %s624_s18 = smov 0  }
   0x2   :  { %s626_s19 = smov 0  }
   0x3 LB: > { %s23_s20 = sadd.s32 1, %s580_s17  ;;  %s26_s21 = sadd.s32 1, %s584_s18  ;;  %s588_s19 = sphi %s626_s19, %s14_s19   ;;  %s584_s18 = sphi %s624_s18, %s695_s18   ;;  %s580_s17 = sphi %s622_s17, %s694_s17   ;;  %s576_s16 = sphi %s620_s16, %s693_s16   ;;  %s572_s15 = sphi %s618_s15, %s692_s15  }
   0x4   : > { %p24_p0 = scmp.ge.s32.totalorder %s23_s20, 4  ;;  %p477_p1 = scmp.ge.s32.totalorder %s588_s19, 1 }
   0x5   : > { %p210_p2 = scmp.lt.s32.totalorder %s588_s19, 9 }
   0x6   : > { %s697_s20 = smov (%p24_p0, %s23_s20), 0  ;;  %s699_s21 = smov (!%p24_p0, %s26_s21), %s584_s18 }
   0x7   : > { %p211_p3 = pnand %p477_p1, %p210_p2  ;;  %p28_p4 = scmp.ge.s32.totalorder %s699_s21, 2 }
   0x8   : > { %s478_s22 = sshll.u32 (!%p211_p3), %s572_s15, 1  ;;  %p256_p5 = scmp.lt.s32.totalorder (!%p211_p3), %s576_s16, 1  ;;  %v590_v0 = vmov (!%p211_p3), 0.0   ;;  %vm591_vm0 = vmmov (!%p211_p3), 0   ;;  %v305_v1 = vld [vmem:[%s690_s3] sm:$0xff] (!%p211_p3)  ;;  %v592_v2 = vmov (!%p211_p3), 0  }
   0x9   : > { %s701_s21 = smov (%p28_p4, %s699_s21), 0  ;;  %214 = sbr.rel (%p211_p3) target bundleno = 248 (0xf8), region = 36 }
   0xa   : > { %496 = vmatprep.subr.bf16.mxu0 (!%p211_p3), %v590_v0  ;;  %p258_p6 = scmp.lt.s32.totalorder (!%p211_p3), %s478_s22, 7  ;;  %s267_s23 = sadd.s32 (!%p211_p3), 1, %s478_s22  ;;  %500 = vmatprep.mubr.msk.bf16.mxu0 (!%p211_p3), %vm591_vm0, %v590_v0  ;;  %v304_v5 = vld [vmem:[%s689_s2] sm:$0xf] (!%p211_p3)  ;;  %vm311_vm1 = vcmask (!%p211_p3), 261120   ;;  %vm357_vm2 = vcmask (!%p211_p3), 60416  }
   0xb   : > { %547 = vset.pattern.permute.xlu0 (!%p211_p3), %v592_v2  ;;  %p270_p7 = scmp.lt.s32.totalorder (!%p211_p3), %s267_s23, 7  ;;  %p281_p8 = scmp.lt.s32.totalorder (!%p211_p3), %s572_s15, 3 }
   0xc   : > { %308 = vperm.xlu0 (!%p211_p3), %547, %v305_v1  }
  0x10   : > { %s703_s16 = smov (!%p256_p5, %s576_s16), 1  ;;  %s705_s22 = smov (!%p258_p6, %s478_s22), 7 }
  0x11   : > { %s480_s26 = sshll.u32 %s703_s16, 4  ;;  %s479_s27 = sshll.u32 %s705_s22, 1 }
  0x12   : > { %s262_s28 = sadd.s32 %s480_s26, %s479_s27  ;;  %s707_s23 = smov (!%p270_p7, %s267_s23), 7 }
  0x13   : > { %s481_s29 = sshll.u32 %s262_s28, 2  ;;  %s483_s7 = sshll.u32 %s707_s23, 1 }
  0x14   : > { %s264_s6 = scalar_lea.vmem %s687_s0, %s481_s29  ;;  %s274_s8 = sadd.s32 %s483_s7, %s480_s26 }
  0x15   : > { %v548_v3 = vld [vmem:[%s264_s6] sm:$0xff]   ;;  %s485_s9 = sshll.u32 %s274_s8, 2  ;;  %s709_s15 = smov (!%p281_p8, %s572_s15), 3 }
  0x16   : > { %497 = vmatpush3.bf16.msra.mxu0 %v548_v3  ;;  %s276_s12 = scalar_lea.vmem %s688_s1, %s485_s9  ;;  %s486_s22 = sshll.u32 %s703_s16, 2 }
  0x17   : > { %498 = vmatprep.subr.bf16.mxu0 %v590_v0  ;;  %v549_v4 = vld [vmem:[%s276_s12] sm:$0xff]   ;;  %s284_s23 = sadd.s32 %s486_s22, %s709_s15 }
  0x18   : > { %s487_s24 = sshll.u32 %s284_s23, 2 }
  0x19   : > { %s286_s27 = scalar_lea.vmem %s691_s4, %s487_s24 }
  0x1a   : > { %499 = vmatpush3.bf16.msra.mxu0 %v549_v4 }
  0x1d   : > { %501 = vmatmul.mubr.msk.bf16.vlgmr.msra.gmra.mrb[0].mxu0 %vm311_vm1, %v304_v5 }
  0x8b   : > { %v309_v6 = vpop.permute.xlu0 %308 }
  0xf0   : > { %v349_v7 = vpop.f32.mrb[0].mxu0 }
  0xf1   : > { %v350_v8 = vadd.f32 %v349_v7, %v309_v6  ;;  %v502_v9 = vpop.f32.mrb[1].mxu0 }
  0xf2   : > { %v352_v10 = vpop.f32.mrb[2].mxu0 }
  0xf3   : > { %v355_v11 = vmax.f32 %v350_v8, 0.0  ;;  %v503_v12 = vpop.f32.mrb[3].mxu0 }
  0xf5   : > { %v356_v13 = vpack.c.bf16 %v355_v11, %v355_v11 }
  0xf7   : > { %358 = vst.msk [vmem:[%s286_s27] sm:$0xf] %vm357_vm2, %v356_v13 }
  0xf8 PF: > { %s14_s19 = sadd.s32 1, %s588_s19   ;;  %s692_s15 = smov %s580_s17 }
  0xf9   : > { %p11_p9 = scmp.ge.s32.totalorder %s14_s19, 10   ;;  %s693_s16 = smov %s584_s18 }
  0xfa   : > { %s694_s17 = smov %s697_s20  ;;  %s695_s18 = smov %s701_s21 }
  0xfb   :  { %13 = sbr.rel (!%p11_p9) target bundleno = 3 (0x3), region = 69 }

// kernel: conv_tdf_net_forward.23
= control target key start
LH: loop header
LB: loop body
LE: loop exit
PB: predicated region body
PF: predicated region fallthrough
CT: control target
= control target key end

     0   :  { %s720_s18 = smov 0   ;;  %s722_s19 = smov 0   ;;  %s795_s0 = inlined_call_operand.vmem [shape: bf16[2,6,16,10], index: 0, kind: input, shape index: {}, may-alias: {0,1,2}]   ;;  %s796_s1 = inlined_call_operand.vmem [shape: bf16[2,6,16,10], index: 1, kind: input, shape index: {}, may-alias: {0,1,2}]   ;;  %s797_s2 = inlined_call_operand.vmem [shape: bf16[2,6,16,10], index: 2, kind: input, shape index: {}, may-alias: {0,1,2}]   ;;  %s798_s3 = inlined_call_operand.vmem [shape: bf16[8,144], index: 3, kind: input, shape index: {}]   ;;  %s799_s4 = inlined_call_operand.vmem [shape: f32[8,1], index: 4, kind: input, shape index: {}]   ;;  %s800_s5 = inlined_call_operand.vmem [shape: bf16[2,4,8,8], index: 5, kind: output, shape index: {}]  }
   0x1   :  { %s724_s20 = smov 0   ;;  %s726_s21 = smov 0  }
   0x2   :  { %s728_s22 = smov 0  }
   0x3 LB: > { %s24_s23 = sadd.s32 1, %s677_s20  ;;  %s27_s24 = sadd.s32 1, %s681_s21  ;;  %s685_s22 = sphi %s728_s22, %s15_s22   ;;  %s681_s21 = sphi %s726_s21, %s804_s21   ;;  %s677_s20 = sphi %s724_s20, %s803_s20   ;;  %s673_s19 = sphi %s722_s19, %s802_s19   ;;  %s669_s18 = sphi %s720_s18, %s801_s18  }
   0x4   : > { %p25_p0 = scmp.ge.s32.totalorder %s24_s23, 4  ;;  %p580_p1 = scmp.ge.s32.totalorder %s685_s22, 1 }
   0x5   : > { %p247_p2 = scmp.lt.s32.totalorder %s685_s22, 9 }
   0x6   : > { %s806_s23 = smov (%p25_p0, %s24_s23), 0  ;;  %s808_s24 = smov (!%p25_p0, %s27_s24), %s681_s21 }
   0x7   : > { %p248_p3 = pnand %p580_p1, %p247_p2  ;;  %p29_p4 = scmp.ge.s32.totalorder %s808_s24, 2 }
   0x8   : > { %p302_p5 = scmp.lt.s32.totalorder (!%p248_p3), %s673_s19, 1  ;;  %p304_p6 = scmp.lt.s32.totalorder (!%p248_p3), %s669_s18, 5  ;;  %v687_v0 = vmov (!%p248_p3), 0   ;;  %v384_v4 = vld [vmem:[%s798_s3] sm:$0xff] (!%p248_p3)  ;;  %vm397_vm0 = vcmask (!%p248_p3), 130048   ;;  %vm443_vm1 = vcmask (!%p248_p3), 60416  }
   0x9   : > { %s810_s24 = smov (%p29_p4, %s808_s24), 0  ;;  %251 = sbr.rel (%p248_p3) target bundleno = 389 (0x185), region = 40 }
   0xa   : > { %401 = vmatprep.subr.bf16.mxu0 (!%p248_p3), %v687_v0  ;;  %641 = vset.pattern.permute.xlu0 (!%p248_p3), %v687_v0  ;;  %s311_s27 = sadd.s32 (!%p248_p3), 1, %s669_s18  ;;  %s322_s30 = sadd.s32 (!%p248_p3), 2, %s669_s18  ;;  %v593_v5 = vcombine.high (!%p248_p3), %v384_v4, %v384_v4  ;;  %v385_v6 = vld [vmem:[%s799_s4] sm:$0xff] (!%p248_p3)  ;;  %v592_v13 = vcombine.low (!%p248_p3), %v384_v4, %v384_v4 }
   0xb   : > { %p314_p7 = scmp.lt.s32.totalorder (!%p248_p3), %s311_s27, 5  ;;  %p325_p8 = scmp.lt.s32.totalorder (!%p248_p3), %s322_s30, 5 }
   0xc   : > { %s688_s10 = smov (!%p248_p3), 127   ;;  %594 = vmatprep.mubr.msk.bf16.mxu0 (!%p248_p3), %vm397_vm0, %v593_v5  ;;  %p335_p9 = scmp.lt.s32.totalorder (!%p248_p3), %s669_s18, 3 }
  0x10   : > { %s812_s19 = smov (!%p302_p5, %s673_s19), 1  ;;  %s814_s27 = smov (!%p314_p7, %s311_s27), 5 }
  0x11   : > { %s305_s25 = scalar_select %p304_p6, %s669_s18, 5 }
  0x12   : > { %s597_s26 = smul.u32 12, %s812_s19  ;;  %s816_s30 = smov (!%p325_p8, %s322_s30), 5 }
  0x13   : > { %s581_s28 = sshll.u32 %s305_s25, 1  ;;  %s583_s11 = sshll.u32 %s814_s27, 1 }
  0x14   : > { %s308_s29 = sadd.s32 %s597_s26, %s581_s28  ;;  %s318_s12 = sadd.s32 %s597_s26, %s583_s11 }
  0x15   : > { %s582_s6 = sshll.u32 %s308_s29, 2  ;;  %s585_s13 = sshll.u32 %s816_s30, 1 }
  0x16   : > { %s310_s9 = scalar_lea.vmem %s795_s0, %s582_s6  ;;  %s584_s14 = sshll.u32 %s318_s12, 2 }
  0x17   : > { %v642_v1 = vld [vmem:[%s310_s9] sm:$0xff]   ;;  %s329_s15 = sadd.s32 %s597_s26, %s585_s13  ;;  %s320_s25 = scalar_lea.vmem %s796_s1, %s584_s14 }
  0x18   : > { %354 = vrot.lane.b32.xlu0 %v642_v1, %s688_s10  ;;  %402 = vmatpush1.bf16.msra.mxu0 %v642_v1  ;;  %s586_s28 = sshll.u32 %s329_s15, 2  ;;  %s689_s29 = smov 126   ;;  %v643_v2 = vld [vmem:[%s320_s25] sm:$0xff]  }
  0x19   : > { %403 = vmatprep.subr.bf16.mxu0 %v687_v0  ;;  %s331_s8 = scalar_lea.vmem %s797_s2, %s586_s28  ;;  %366 = vrot.lane.b32.xlu1 %v643_v2, %s688_s10  ;;  %s818_s18 = smov (!%p335_p9, %s669_s18), 3 }
  0x1a   : > { %v644_v3 = vld [vmem:[%s331_s8] sm:$0xff]  }
  0x1c   : > { %357 = vrot.lane.b32.xlu0 %v642_v1, %s689_s29 }
  0x1d   : > { %369 = vrot.lane.b32.xlu1 %v643_v2, %s689_s29 }
  0x20   : > { %378 = vrot.lane.b32.xlu0 %v644_v3, %s688_s10  ;;  %s587_s10 = sshll.u32 %s812_s19, 2 }
  0x21   : > { %381 = vrot.lane.b32.xlu1 %v644_v3, %s689_s29  ;;  %s338_s11 = sadd.s32 %s587_s10, %s818_s18 }
  0x22   : > { %s588_s12 = sshll.u32 %s338_s11, 2 }
  0x23   : > { %s340_s15 = scalar_lea.vmem %s800_s5, %s588_s12 }
  0x24   : > { %388 = vperm.xlu0 %641, %v385_v6  }
  0x8a   : > { %v355_v7 = vpop.permute.xlu0 %354 }
  0x8b   : > { %404 = vmatpush1.bf16.msra.mxu0 %v355_v7  ;;  %v367_v9 = vpop.permute.xlu1 %366 }
  0x8c   : > { %405 = vmatprep.subr.bf16.mxu0 %v687_v0 }
  0x8e   : > { %v358_v8 = vpop.permute.xlu0 %357 }
  0x8f   : > { %406 = vmatpush1.bf16.msra.mxu0 %v358_v8  ;;  %v370_v10 = vpop.permute.xlu1 %369 }
  0x90   : > { %407 = vmatprep.subr.bf16.mxu0 %v687_v0 }
  0x92   : > { %v379_v11 = vpop.permute.xlu0 %378 }
  0x93   : > { %408 = vmatpush1.bf16.msra.mxu0 %v643_v2  ;;  %v382_v12 = vpop.permute.xlu1 %381 }
  0x94   : > { %409 = vmatprep.subr.bf16.mxu0 %v687_v0 }
  0x97   : > { %410 = vmatpush1.bf16.msra.mxu0 %v367_v9 }
  0x98   : > { %411 = vmatprep.subr.bf16.mxu0 %v687_v0 }
  0x9b   : > { %412 = vmatpush1.bf16.msra.mxu0 %v370_v10 }
  0x9c   : > { %413 = vmatprep.subr.bf16.mxu0 %v687_v0 }
  0x9f   : > { %414 = vmatpush1.bf16.msra.mxu0 %v644_v3 }
  0xa0   : > { %415 = vmatprep.subr.bf16.mxu0 %v687_v0 }
  0xa3   : > { %416 = vmatpush1.bf16.msra.mxu0 %v379_v11  ;;  %v389_v14 = vpop.permute.xlu0 %388 }
  0xa4   : > { %417 = vmatprep.subr.bf16.mxu0 %v687_v0 }
  0xa7   : > { %418 = vmatpush1.bf16.msra.mxu0 %v382_v12 }
  0xaa   : > { %434 = vmatmul.mubr.bf16.vlgmr.msra.gmra.mrb[0].mxu0 %v592_v13 }
 0x17d   : > { %v435_v15 = vpop.f32.mrb[0].mxu0 }
 0x17e   : > { %v436_v16 = vadd.f32 %v435_v15, %v389_v14  ;;  %v437_v17 = vpop.f32.mrb[1].mxu0 }
 0x17f   : > { %v438_v18 = vpop.f32.mrb[2].mxu0 }
 0x180   : > { %v441_v19 = vmax.f32 %v436_v16, 0.0  ;;  %v439_v20 = vpop.f32.mrb[3].mxu0 }
 0x182   : > { %v442_v21 = vpack.c.bf16 %v441_v19, %v441_v19 }
 0x184   : > { %444 = vst.msk [vmem:[%s340_s15] sm:$0xf] %vm443_vm1, %v442_v21 }
 0x185 PF: > { %s15_s22 = sadd.s32 1, %s685_s22   ;;  %s801_s18 = smov %s677_s20 }
 0x186   : > { %p12_p10 = scmp.ge.s32.totalorder %s15_s22, 10   ;;  %s802_s19 = smov %s681_s21 }
 0x187   : > { %s803_s20 = smov %s806_s23  ;;  %s804_s21 = smov %s810_s24 }
 0x188   :  { %14 = sbr.rel (!%p12_p10) target bundleno = 3 (0x3), region = 76 }

// kernel: conv_tdf_net_forward.24
= control target key start
LH: loop header
LB: loop body
LE: loop exit
PB: predicated region body
PF: predicated region fallthrough
CT: control target
= control target key end

     0   :  { %vm82_vm0 = vcmask 1043456   ;;  %vm69_vm1 = vcmask 64512   ;;  %v619_v3 = vmov 0   ;;  %vm296_vm2 = vcmask 1040384   ;;  %s853_s1 = inlined_call_operand.vmem [shape: bf16[8,2], index: 1, kind: input, shape index: {}]   ;;  %s854_s0 = inlined_call_operand.vmem [shape: bf16[64,8], index: 0, kind: input, shape index: {}]   ;;  %s855_s5 = inlined_call_operand.vmem [shape: f32[64,1], index: 5, kind: input, shape index: {}]   ;;  %s856_s6 = inlined_call_operand.vmem [shape: f32[64,1], index: 6, kind: input, shape index: {}]   ;;  %s857_s7 = inlined_call_operand.vmem [shape: f32[64,1], index: 7, kind: input, shape index: {}]   ;;  %s858_s8 = inlined_call_operand.vmem [shape: f32[64,1], index: 8, kind: input, shape index: {}]   ;;  %s859_s2 = inlined_call_operand.vmem [shape: bf16[2,8], index: 2, kind: input, shape index: {}]   ;;  %s860_s3 = inlined_call_operand.vmem [shape: f32[1,2], index: 3, kind: input, shape index: {}]   ;;  %s861_s4 = inlined_call_operand.vmem [shape: f32[1,8], index: 4, kind: input, shape index: {}]   ;;  %s862_s9 = inlined_call_operand.vmem [shape: bf16[64,8], index: 9, kind: output, shape index: {}]  }
   0x1   :  { %v41_v0 = vld [vmem:[%s853_s1] sm:$0xf]  ;;  %v681_v2 = vld [vmem:[%s854_s0 + $0x8] sm:$0xff]   ;;  %610 = vset.pattern.permute.xlu1 %v619_v3  ;;  %609 = vset.pattern.permute.xlu0 %v619_v3  ;;  %v686_v5 = vld [vmem:[%s854_s0 + $0x10] sm:$0xff]   ;;  %vm283_vm3 = vcmask 15360   ;;  %vm533_vm4 = vcmask 60416  }
   0x2   :  { %v676_v1 = vld [vmem:[%s854_s0] sm:$0xff]   ;;  %606 = vmatprep.subr.msk.bf16.mxu0 %vm82_vm0, %v41_v0  ;;  %v84_v4 = vsel %vm82_vm0, %v41_v0, 0  ;;  %v153_v6 = vld [vmem:[%s855_s5 + $0x10] sm:$0xff]  ;;  %v154_v8 = vld [vmem:[%s855_s5 + $0x18] sm:$0xff] }
   0x3   :  { %587 = vmatpush3.bf16.msra.mxu0 %v84_v4  ;;  %171 = vperm.xlu1 %610, %v153_v6   ;;  %v151_v7 = vld [vmem:[%s855_s5] sm:$0xff]  ;;  %v152_v9 = vld [vmem:[%s855_s5 + $0x8] sm:$0xff]  ;;  %v709_v10 = vld [vmem:[%s854_s0 + $0x18] sm:$0xff]  }
   0x4   :  { %588 = vmatprep.mubr.msk.bf16.mxu0 %vm69_vm1, %v676_v1  ;;  %161 = vperm.xlu0 %609, %v151_v7   ;;  %v208_v11 = vld [vmem:[%s856_s6 + $0x8] sm:$0xff]  ;;  %v207_v12 = vld [vmem:[%s856_s6] sm:$0xff]  ;;  %v210_v13 = vld [vmem:[%s856_s6 + $0x18] sm:$0xff] }
   0x5   :  { %v209_v14 = vld [vmem:[%s856_s6 + $0x10] sm:$0xff]  ;;  %v156_v15 = vld [vmem:[%s855_s5 + $0x28] sm:$0xff]  ;;  %v155_v16 = vld [vmem:[%s855_s5 + $0x20] sm:$0xff] }
   0x6   :  { %589 = vmatmul.mubr.msk.bf16.vlgmr.msra.gmra.mrb[0].mxu0 %vm69_vm1, %v681_v2  ;;  %v158_v17 = vld [vmem:[%s855_s5 + $0x38] sm:$0xff]  ;;  %v157_v18 = vld [vmem:[%s855_s5 + $0x30] sm:$0xff]  ;;  %v212_v19 = vld [vmem:[%s856_s6 + $0x28] sm:$0xff] }
   0x7   :  { %592 = vmatprep.mubr.msk.bf16.mxu0 %vm69_vm1, %v686_v5  ;;  %176 = vperm.xlu1 %610, %v154_v8   ;;  %v211_v20 = vld [vmem:[%s856_s6 + $0x20] sm:$0xff]  ;;  %v214_v21 = vld [vmem:[%s856_s6 + $0x38] sm:$0xff]  ;;  %v213_v22 = vld [vmem:[%s856_s6 + $0x30] sm:$0xff] }
   0x8   :  { %166 = vperm.xlu0 %609, %v152_v9   ;;  %v366_v23 = vld [vmem:[%s857_s7 + $0x8] sm:$0xff]  ;;  %v365_v24 = vld [vmem:[%s857_s7] sm:$0xff]  ;;  %v368_v25 = vld [vmem:[%s857_s7 + $0x18] sm:$0xff] }
   0x9   :  { %v367_v26 = vld [vmem:[%s857_s7 + $0x10] sm:$0xff]  ;;  %v370_v27 = vld [vmem:[%s857_s7 + $0x28] sm:$0xff]  ;;  %v369_v28 = vld [vmem:[%s857_s7 + $0x20] sm:$0xff] }
   0xa   :  { %v372_v29 = vld [vmem:[%s857_s7 + $0x38] sm:$0xff]  ;;  %v371_v30 = vld [vmem:[%s857_s7 + $0x30] sm:$0xff]  ;;  %v422_v31 = vld [vmem:[%s858_s8 + $0x8] sm:$0xff] }
   0xb   :  { %222 = vperm.xlu1 %610, %v208_v11   ;;  %v421_v32 = vld [vmem:[%s858_s8] sm:$0xff]  ;;  %v424_v33 = vld [vmem:[%s858_s8 + $0x18] sm:$0xff]  ;;  %v423_v34 = vld [vmem:[%s858_s8 + $0x10] sm:$0xff] }
   0xc   :  { %217 = vperm.xlu0 %609, %v207_v12   ;;  %v426_v35 = vld [vmem:[%s858_s8 + $0x28] sm:$0xff]  ;;  %v425_v36 = vld [vmem:[%s858_s8 + $0x20] sm:$0xff]  ;;  %v428_v37 = vld [vmem:[%s858_s8 + $0x38] sm:$0xff] }
   0xd   :  { %v427_v38 = vld [vmem:[%s858_s8 + $0x30] sm:$0xff]  ;;  %v275_v39 = vld [vmem:[%s859_s2] sm:$0x1] }
   0xe   :  { %593 = vmatmul.mubr.msk.bf16.gmra.mrb[4].mxu0 %vm69_vm1, %v709_v10  ;;  %607 = vmatprep.subr.msk.bf16.mxu1 %vm296_vm2, %v275_v39  ;;  %v298_v40 = vsel %vm296_vm2, %v275_v39, 0  ;;  %v546_v51 = vld [vmem:[%s860_s3] ss:$0 sm:$0xff] }
   0xf   :  { %232 = vperm.xlu1 %610, %v210_v13   ;;  %597 = vmatpush3.bf16.msra.mxu1 %v298_v40 }
  0x10   :  { %227 = vperm.xlu0 %609, %v209_v14  }
  0x13   :  { %186 = vperm.xlu1 %610, %v156_v15  }
  0x14   :  { %181 = vperm.xlu0 %609, %v155_v16  }
  0x17   :  { %196 = vperm.xlu1 %610, %v158_v17  }
  0x18   :  { %191 = vperm.xlu0 %609, %v157_v18  }
  0x1b   :  { %242 = vperm.xlu1 %610, %v212_v19  }
  0x1c   :  { %237 = vperm.xlu0 %609, %v211_v20  }
  0x1f   :  { %252 = vperm.xlu1 %610, %v214_v21  }
  0x20   :  { %247 = vperm.xlu0 %609, %v213_v22  }
  0x23   :  { %380 = vperm.xlu1 %610, %v366_v23  }
  0x24   :  { %375 = vperm.xlu0 %609, %v365_v24  }
  0x27   :  { %390 = vperm.xlu1 %610, %v368_v25  }
  0x28   :  { %385 = vperm.xlu0 %609, %v367_v26  }
  0x2b   :  { %400 = vperm.xlu1 %610, %v370_v27  }
  0x2c   :  { %395 = vperm.xlu0 %609, %v369_v28  }
  0x2f   :  { %410 = vperm.xlu1 %610, %v372_v29  }
  0x30   :  { %405 = vperm.xlu0 %609, %v371_v30  }
  0x33   :  { %436 = vperm.xlu1 %610, %v422_v31  }
  0x34   :  { %431 = vperm.xlu0 %609, %v421_v32  }
  0x37   :  { %446 = vperm.xlu1 %610, %v424_v33  }
  0x38   :  { %441 = vperm.xlu0 %609, %v423_v34  }
  0x3b   :  { %456 = vperm.xlu1 %610, %v426_v35  }
  0x3c   :  { %451 = vperm.xlu0 %609, %v425_v36  }
  0x3f   :  { %466 = vperm.xlu1 %610, %v428_v37  }
  0x40   :  { %461 = vperm.xlu0 %609, %v427_v38  }
  0x82   :  { %v172_v42 = vpop.permute.xlu1 %171 }
  0x83   :  { %v162_v41 = vpop.permute.xlu0 %161 }
  0x86   :  { %v177_v44 = vpop.permute.xlu1 %176 }
  0x87   :  { %v167_v43 = vpop.permute.xlu0 %166 }
  0x8a   :  { %v223_v46 = vpop.permute.xlu1 %222 }
  0x8b   :  { %v218_v45 = vpop.permute.xlu0 %217 }
  0x8e   :  { %v233_v48 = vpop.permute.xlu1 %232 }
  0x8f   :  { %v228_v47 = vpop.permute.xlu0 %227 }
  0x92   :  { %v187_v50 = vpop.permute.xlu1 %186 }
  0x93   :  { %v182_v49 = vpop.permute.xlu0 %181 }
  0x96   :  { %v197_v56 = vpop.permute.xlu1 %196 }
  0x97   :  { %v192_v52 = vpop.permute.xlu0 %191 }
  0x9a   :  { %v243_v9 = vpop.permute.xlu1 %242 }
  0x9b   :  { %v238_v4 = vpop.permute.xlu0 %237 }
  0x9e   :  { %v253_v31 = vpop.permute.xlu1 %252 }
  0x9f   :  { %v248_v25 = vpop.permute.xlu0 %247 }
  0xd9   :  { %v590_v53 = vpop.f32.mrb[0].mxu0 }
  0xda   :  { %v129_v54 = vadd.f32 %v590_v53, %v546_v51  ;;  %v120_v55 = vpop.f32.mrb[1].mxu0 }
  0xdb   :  { %v121_v57 = vadd.f32 %v546_v51, %v120_v55  ;;  %v591_v58 = vpop.f32.mrb[2].mxu0 }
  0xdc   :  { %v201_v59 = vmul.f32 %v172_v42, %v129_v54  ;;  %v132_v60 = vadd.f32 %v591_v58, %v546_v51  ;;  %v123_v61 = vpop.f32.mrb[3].mxu0  ;;  %v376_v42 = vpop.permute.xlu0 %375 }
  0xdd   :  { %v199_v62 = vmul.f32 %v162_v41, %v121_v57  ;;  %v124_v63 = vadd.f32 %v546_v51, %v123_v61 }
  0xde   :  { %v257_v0 = vadd.f32 %v228_v47, %v201_v59  ;;  %v202_v3 = vmul.f32 %v177_v44, %v132_v60 }
  0xdf   :  { %v200_v6 = vmul.f32 %v167_v43, %v124_v63  ;;  %v255_v7 = vadd.f32 %v218_v45, %v199_v62  ;;  %v381_v43 = vpop.permute.xlu1 %380 }
  0xe0   :  { %v258_v8 = vadd.f32 %v233_v48, %v202_v3  ;;  %v265_v13 = vmax.f32 %v257_v0, 0.0  ;;  %v386_v44 = vpop.permute.xlu0 %385 }
  0xe1   :  { %v594_v11 = vpop.f32.mrb[4].mxu0  ;;  %v256_v12 = vadd.f32 %v223_v46, %v200_v6  ;;  %v263_v19 = vmax.f32 %v255_v7, 0.0  ;;  %v485_v7 = vunpack.c.l.bf16 %v676_v1 }
  0xe2   :  { %v266_v14 = vmax.f32 %v258_v8, 0.0  ;;  %v145_v15 = vadd.f32 %v594_v11, %v546_v51  ;;  %v136_v16 = vpop.f32.mrb[5].mxu0 }
  0xe3   :  { %v137_v17 = vadd.f32 %v546_v51, %v136_v16  ;;  %v595_v18 = vpop.f32.mrb[6].mxu0  ;;  %v264_v20 = vmax.f32 %v256_v12, 0.0  ;;  %v391_v45 = vpop.permute.xlu1 %390 }
  0xe4   :  { %v272_v21 = vpack.c.bf16 %v266_v14, %v265_v13  ;;  %v205_v22 = vmul.f32 %v192_v52, %v145_v15  ;;  %v148_v23 = vadd.f32 %v595_v18, %v546_v51  ;;  %v139_v24 = vpop.f32.mrb[7].mxu0  ;;  %v396_v46 = vpop.permute.xlu0 %395  ;;  %v555_v52 = vld [vmem:[%s861_s4] ss:$0 sm:$0xff]  ;;  %v488_v14 = vunpack.c.h.bf16 %v681_v2 }
  0xe5   :  { %v203_v26 = vmul.f32 %v182_v49, %v137_v17  ;;  %v140_v27 = vadd.f32 %v546_v51, %v139_v24  ;;  %v271_v28 = vpack.c.bf16 %v264_v20, %v263_v19  ;;  %v486_v15 = vunpack.c.h.bf16 %v676_v1 }
  0xe6   :  { %v261_v29 = vadd.f32 %v248_v25, %v205_v22  ;;  %v206_v30 = vmul.f32 %v197_v56, %v148_v23 }
  0xe7   :  { %v259_v32 = vadd.f32 %v238_v4, %v203_v26  ;;  %v204_v33 = vmul.f32 %v187_v50, %v140_v27  ;;  %598 = vmatprep.mubr.msk.bf16.mxu1 %vm283_vm3, %v271_v28  ;;  %v807_v47 = vpop.permute.xlu1 %400  ;;  %v487_v4 = vunpack.c.l.bf16 %v681_v2 }
  0xe8   :  { %v262_v34 = vadd.f32 %v253_v31, %v206_v30  ;;  %599 = vmatmul.mubr.msk.bf16.vlgmr.msra.gmra.mrb[0].mxu1 %vm283_vm3, %v272_v21  ;;  %v269_v36 = vmax.f32 %v261_v29, 0.0  ;;  %v406_v48 = vpop.permute.xlu0 %405 }
  0xe9   :  { %v260_v35 = vadd.f32 %v243_v9, %v204_v33  ;;  %v267_v38 = vmax.f32 %v259_v32, 0.0 }
  0xea   :  { %v270_v37 = vmax.f32 %v262_v34, 0.0 }
  0xeb   :  { %v268_v39 = vmax.f32 %v260_v35, 0.0  ;;  %v411_v49 = vpop.permute.xlu1 %410 }
  0xec   :  { %v274_v40 = vpack.c.bf16 %v270_v37, %v269_v36  ;;  %v432_v50 = vpop.permute.xlu0 %431 }
  0xed   :  { %v273_v41 = vpack.c.bf16 %v268_v39, %v267_v38  ;;  %v491_v38 = vunpack.c.l.bf16 %v709_v10 }
  0xef   :  { %602 = vmatprep.mubr.msk.bf16.mxu1 %vm283_vm3, %v273_v41  ;;  %v437_v51 = vpop.permute.xlu1 %436 }
  0xf0   :  { %603 = vmatmul.mubr.msk.bf16.gmra.mrb[4].mxu1 %vm283_vm3, %v274_v40  ;;  %v442_v53 = vpop.permute.xlu0 %441 }
  0xf3   :  { %v447_v57 = vpop.permute.xlu1 %446 }
  0xf4   :  { %v452_v8 = vpop.permute.xlu0 %451 }
  0xf7   :  { %v457_v16 = vpop.permute.xlu1 %456 }
  0xf8   :  { %v462_v32 = vpop.permute.xlu0 %461 }
  0xfb   :  { %v467_v40 = vpop.permute.xlu1 %466 }
 0x1bb   :  { %v600_v54 = vpop.f32.mrb[0].mxu1 }
 0x1bc   :  { %v343_v55 = vadd.f32 %v600_v54, %v555_v52  ;;  %v334_v56 = vpop.f32.mrb[1].mxu1 }
 0x1bd   :  { %v335_v58 = vadd.f32 %v555_v52, %v334_v56  ;;  %v601_v59 = vpop.f32.mrb[2].mxu1 }
 0x1be   :  { %v415_v60 = vmul.f32 %v386_v44, %v343_v55  ;;  %v346_v61 = vadd.f32 %v601_v59, %v555_v52  ;;  %v337_v62 = vpop.f32.mrb[3].mxu1 }
 0x1bf   :  { %v413_v63 = vmul.f32 %v376_v42, %v335_v58  ;;  %v338_v0 = vadd.f32 %v555_v52, %v337_v62 }
 0x1c0   :  { %v471_v3 = vadd.f32 %v442_v53, %v415_v60  ;;  %v416_v6 = vmul.f32 %v391_v45, %v346_v61 }
 0x1c1   :  { %v469_v9 = vadd.f32 %v432_v50, %v413_v63  ;;  %v414_v11 = vmul.f32 %v381_v43, %v338_v0  ;;  %v489_v43 = vunpack.c.l.bf16 %v686_v5 }
 0x1c2   :  { %v479_v12 = vmax.f32 %v471_v3, 0.0  ;;  %v472_v13 = vadd.f32 %v447_v57, %v416_v6 }
 0x1c3   :  { %v477_v17 = vmax.f32 %v469_v9, 0.0  ;;  %v470_v18 = vadd.f32 %v437_v51, %v414_v11  ;;  %v604_v19 = vpop.f32.mrb[4].mxu1  ;;  %v490_v51 = vunpack.c.h.bf16 %v686_v5 }
 0x1c4   :  { %v495_v20 = vadd.f32 %v487_v4, %v479_v12  ;;  %v480_v21 = vmax.f32 %v472_v13, 0.0  ;;  %v359_v22 = vadd.f32 %v604_v19, %v555_v52  ;;  %v350_v23 = vpop.f32.mrb[5].mxu1 }
 0x1c5   :  { %v493_v24 = vadd.f32 %v485_v7, %v477_v17  ;;  %v478_v25 = vmax.f32 %v470_v18, 0.0  ;;  %v351_v26 = vadd.f32 %v555_v52, %v350_v23  ;;  %v605_v27 = vpop.f32.mrb[6].mxu1 }
 0x1c6   :  { %v570_v28 = vpack.c.bf16 %v495_v20, %v495_v20  ;;  %v496_v29 = vadd.f32 %v488_v14, %v480_v21  ;;  %v419_v30 = vmul.f32 %v406_v48, %v359_v22  ;;  %v362_v31 = vadd.f32 %v605_v27, %v555_v52  ;;  %v353_v2 = vpop.f32.mrb[7].mxu1 }
 0x1c7   :  { %v568_v1 = vpack.c.bf16 %v493_v24, %v493_v24  ;;  %v494_v33 = vadd.f32 %v486_v15, %v478_v25  ;;  %v417_v34 = vmul.f32 %v396_v46, %v351_v26  ;;  %v354_v35 = vadd.f32 %v555_v52, %v353_v2 }
 0x1c8   :  { %536 = vst.msk [vmem:[%s862_s9 + $0x8] sm:$0xf] %vm533_vm4, %v570_v28  ;;  %v571_v36 = vpack.c.bf16 %v496_v29, %v496_v29  ;;  %v475_v37 = vadd.f32 %v462_v32, %v419_v30  ;;  %v420_v39 = vmul.f32 %v411_v49, %v362_v31  ;;  %v492_v48 = vunpack.c.h.bf16 %v709_v10 }
 0x1c9   :  { %534 = vst.msk [vmem:[%s862_s9] sm:$0xf] %vm533_vm4, %v568_v1  ;;  %v569_v41 = vpack.c.bf16 %v494_v33, %v494_v33  ;;  %v473_v42 = vadd.f32 %v452_v8, %v417_v34  ;;  %v418_v44 = vmul.f32 %v807_v47, %v354_v35 }
 0x1ca   :  { %537 = vst.msk [vmem:[%s862_s9 + $0xc] sm:$0xf] %vm533_vm4, %v571_v36  ;;  %v483_v45 = vmax.f32 %v475_v37, 0.0  ;;  %v476_v46 = vadd.f32 %v467_v40, %v420_v39 }
 0x1cb   :  { %535 = vst.msk [vmem:[%s862_s9 + $0x4] sm:$0xf] %vm533_vm4, %v569_v41  ;;  %v481_v49 = vmax.f32 %v473_v42, 0.0  ;;  %v474_v50 = vadd.f32 %v457_v16, %v418_v44 }
 0x1cc   :  { %v499_v52 = vadd.f32 %v491_v38, %v483_v45  ;;  %v484_v47 = vmax.f32 %v476_v46, 0.0 }
 0x1cd   :  { %v497_v53 = vadd.f32 %v489_v43, %v481_v49  ;;  %v482_v54 = vmax.f32 %v474_v50, 0.0 }
 0x1ce   :  { %v574_v55 = vpack.c.bf16 %v499_v52, %v499_v52  ;;  %v500_v56 = vadd.f32 %v492_v48, %v484_v47 }
 0x1cf   :  { %v572_v57 = vpack.c.bf16 %v497_v53, %v497_v53  ;;  %v498_v58 = vadd.f32 %v490_v51, %v482_v54 }
 0x1d0   :  { %540 = vst.msk [vmem:[%s862_s9 + $0x18] sm:$0xf] %vm533_vm4, %v574_v55  ;;  %v575_v10 = vpack.c.bf16 %v500_v56, %v500_v56 }
 0x1d1   :  { %538 = vst.msk [vmem:[%s862_s9 + $0x10] sm:$0xf] %vm533_vm4, %v572_v57  ;;  %v573_v5 = vpack.c.bf16 %v498_v58, %v498_v58 }
 0x1d2   :  { %541 = vst.msk [vmem:[%s862_s9 + $0x1c] sm:$0xf] %vm533_vm4, %v575_v10 }
 0x1d3   :  { %539 = vst.msk [vmem:[%s862_s9 + $0x14] sm:$0xf] %vm533_vm4, %v573_v5 }

// kernel: tile.173
= control target key start
LH: loop header
LB: loop body
LE: loop exit
PB: predicated region body
PF: predicated region fallthrough
CT: control target
= control target key end

     0   :  { %s22_s0 = inlined_call_operand.vmem [shape: f32[12], index: 0, kind: input, shape index: {}]   ;;  %s23_s1 = inlined_call_operand.vmem [shape: f32[4,12], index: 1, kind: output, shape index: {}]  }
   0x1   :  { %v4_v0 = vld [vmem:[%s22_s0] ss:$0 sm:$0xff] }
   0x2   :  { %5 = vst [vmem:[%s23_s1] sm:$0xf] %v4_v0 }

// kernel: tile.10
= control target key start
LH: loop header
LB: loop body
LE: loop exit
PB: predicated region body
PF: predicated region fallthrough
CT: control target
= control target key end

     0   :  { %s131_s8 = smov 125   ;;  %s132_s9 = smov 126   ;;  %vm7_vm0 = vcmask 7168   ;;  %s246_s0 = inlined_call_operand.vmem [shape: f32[4,12], index: 0, kind: input, shape index: {}]   ;;  %s247_s1 = inlined_call_operand.vmem [shape: f32[48,1], index: 1, kind: output, shape index: {}]  }
   0x1   :  { %v4_v0 = vld [vmem:[%s246_s0] sm:$0xf]  ;;  %s130_s0 = smov 127   ;;  %s133_s10 = smov 124  }
   0x2   :  { %5 = vst [vmem:[#allocation0] sm:$0xf] %v4_v0  ;;  %s134_s13 = smov 123   ;;  %s135_s14 = smov 122  }
   0x3   :  { %s136_s15 = smov 121   ;;  %s137_s16 = smov 120  }
   0x4   :  { %s138_s17 = smov 119   ;;  %s139_s18 = smov 118  }
   0x5   :  { %s140_s19 = smov 117  }
   0x9   :  { %v9_v1 = vld.sshfl [vmem:[#allocation0] sm:$0xff pattern:$0x22222130]  }
   0xa   :  { %10 = vrot.lane.b32.xlu0 %v9_v1, %s130_s0  ;;  %26 = vrot.lane.b32.xlu1 %v9_v1, %s131_s8  ;;  %v6_v2 = vld [vmem:[#allocation0] sm:$0xf]  }
   0xb   :  { %8 = vst.msk [vmem:[%s247_s1] ss:$12 sm:$0xf] %vm7_vm0, %v6_v2   ;;  %v65_v3 = vld.sshfl [vmem:[#allocation0] sm:$0xff pattern:$0x11111302]  }
   0xe   :  { %18 = vrot.lane.b32.xlu0 %v9_v1, %s132_s9  ;;  %34 = vrot.lane.b32.xlu1 %v9_v1, %s133_s10 }
  0x12   :  { %42 = vrot.lane.b32.xlu0 %v9_v1, %s134_s13  ;;  %50 = vrot.lane.b32.xlu1 %v9_v1, %s135_s14 }
  0x16   :  { %58 = vrot.lane.b32.xlu0 %v9_v1, %s136_s15  ;;  %66 = vrot.lane.b32.xlu1 %v65_v3, %s137_s16 }
  0x1a   :  { %74 = vrot.lane.b32.xlu0 %v65_v3, %s138_s17  ;;  %82 = vrot.lane.b32.xlu1 %v65_v3, %s139_s18 }
  0x1e   :  { %90 = vrot.lane.b32.xlu0 %v65_v3, %s140_s19 }
  0x7c   :  { %v11_v4 = vpop.permute.xlu0 %10   ;;  %v27_v5 = vpop.permute.xlu1 %26  }
  0x7d   :  { %97 = vst.msk [vmem:[%s247_s1 + $0x1] ss:$36 sm:$0x3] %vm7_vm0, %v11_v4   ;;  %98 = vst.msk [vmem:[%s247_s1 - $0xb] ss:$12 sm:$0xc] %vm7_vm0, %v11_v4  }
  0x7e   :  { %101 = vst.msk [vmem:[%s247_s1 + $0x3] ss:$36 sm:$0x3] %vm7_vm0, %v27_v5   ;;  %102 = vst.msk [vmem:[%s247_s1 - $0x9] ss:$12 sm:$0xc] %vm7_vm0, %v27_v5  }
  0x80   :  { %v19_v6 = vpop.permute.xlu0 %18   ;;  %v35_v7 = vpop.permute.xlu1 %34  }
  0x81   :  { %99 = vst.msk [vmem:[%s247_s1 + $0x2] ss:$36 sm:$0x3] %vm7_vm0, %v19_v6   ;;  %100 = vst.msk [vmem:[%s247_s1 - $0xa] ss:$12 sm:$0xc] %vm7_vm0, %v19_v6  }
  0x82   :  { %103 = vst.msk [vmem:[%s247_s1 + $0x4] ss:$36 sm:$0x3] %vm7_vm0, %v35_v7   ;;  %104 = vst.msk [vmem:[%s247_s1 - $0x8] ss:$12 sm:$0xc] %vm7_vm0, %v35_v7  }
  0x84   :  { %v43_v8 = vpop.permute.xlu0 %42   ;;  %v51_v9 = vpop.permute.xlu1 %50  }
  0x85   :  { %105 = vst.msk [vmem:[%s247_s1 + $0x5] ss:$36 sm:$0x3] %vm7_vm0, %v43_v8   ;;  %106 = vst.msk [vmem:[%s247_s1 - $0x7] ss:$12 sm:$0xc] %vm7_vm0, %v43_v8  }
  0x86   :  { %107 = vst.msk [vmem:[%s247_s1 + $0x6] ss:$36 sm:$0x3] %vm7_vm0, %v51_v9   ;;  %108 = vst.msk [vmem:[%s247_s1 - $0x6] ss:$12 sm:$0xc] %vm7_vm0, %v51_v9  }
  0x88   :  { %v59_v10 = vpop.permute.xlu0 %58   ;;  %v67_v11 = vpop.permute.xlu1 %66  }
  0x89   :  { %109 = vst.msk [vmem:[%s247_s1 + $0x7] ss:$36 sm:$0x3] %vm7_vm0, %v59_v10   ;;  %110 = vst.msk [vmem:[%s247_s1 - $0x5] ss:$12 sm:$0xc] %vm7_vm0, %v59_v10  }
  0x8a   :  { %111 = vst.msk [vmem:[%s247_s1 + $0x20] ss:$-24 sm:$0x3] %vm7_vm0, %v67_v11   ;;  %112 = vst.msk [vmem:[%s247_s1 + $0x5c] ss:$-24 sm:$0xc] %vm7_vm0, %v67_v11  }
  0x8c   :  { %v75_v12 = vpop.permute.xlu0 %74   ;;  %v83_v13 = vpop.permute.xlu1 %82  }
  0x8d   :  { %113 = vst.msk [vmem:[%s247_s1 + $0x21] ss:$-24 sm:$0x3] %vm7_vm0, %v75_v12   ;;  %114 = vst.msk [vmem:[%s247_s1 + $0x5d] ss:$-24 sm:$0xc] %vm7_vm0, %v75_v12  }
  0x8e   :  { %115 = vst.msk [vmem:[%s247_s1 + $0x22] ss:$-24 sm:$0x3] %vm7_vm0, %v83_v13   ;;  %116 = vst.msk [vmem:[%s247_s1 + $0x5e] ss:$-24 sm:$0xc] %vm7_vm0, %v83_v13  }
  0x90   :  { %v91_v14 = vpop.permute.xlu0 %90  }
  0x91   :  { %117 = vst.msk [vmem:[%s247_s1 + $0x23] ss:$-24 sm:$0x3] %vm7_vm0, %v91_v14   ;;  %118 = vst.msk [vmem:[%s247_s1 + $0x5f] ss:$-24 sm:$0xc] %vm7_vm0, %v91_v14  }

// kernel: conv_tdf_net_forward.25
= control target key start
LH: loop header
LB: loop body
LE: loop exit
PB: predicated region body
PF: predicated region fallthrough
CT: control target
= control target key end

     0   :  { %s656_s15 = smov 0   ;;  %s658_s16 = smov 0   ;;  %s728_s0 = inlined_call_operand.vmem [shape: bf16[2,4,16,4], index: 0, kind: input, shape index: {}, may-alias: {0,1}]   ;;  %s729_s1 = inlined_call_operand.vmem [shape: bf16[2,4,16,4], index: 1, kind: input, shape index: {}, may-alias: {0,1}]   ;;  %s730_s2 = inlined_call_operand.vmem [shape: bf16[12,32], index: 2, kind: input, shape index: {}]   ;;  %s731_s3 = inlined_call_operand.vmem [shape: f32[12,1], index: 3, kind: input, shape index: {}]   ;;  %s732_s4 = inlined_call_operand.vmem [shape: bf16[2,2,12,4], index: 4, kind: output, shape index: {}]  }
   0x1   :  { %s660_s17 = smov 0   ;;  %s662_s18 = smov 0  }
   0x2   :  { %s664_s19 = smov 0  }
   0x3 LB: > { %s23_s20 = sadd.s32 1, %s618_s17  ;;  %s26_s21 = sadd.s32 1, %s622_s18  ;;  %s626_s19 = sphi %s664_s19, %s14_s19   ;;  %s622_s18 = sphi %s662_s18, %s736_s18   ;;  %s618_s17 = sphi %s660_s17, %s735_s17   ;;  %s614_s16 = sphi %s658_s16, %s734_s16   ;;  %s610_s15 = sphi %s656_s15, %s733_s15  }
   0x4   : > { %p24_p0 = scmp.ge.s32.totalorder %s23_s20, 2  ;;  %p508_p1 = scmp.ge.s32.totalorder %s626_s19, 1 }
   0x5   : > { %p210_p2 = scmp.lt.s32.totalorder %s626_s19, 5 }
   0x6   : > { %s738_s20 = smov (%p24_p0, %s23_s20), 0  ;;  %s740_s21 = smov (!%p24_p0, %s26_s21), %s622_s18 }
   0x7   : > { %p211_p3 = pnand %p508_p1, %p210_p2  ;;  %p28_p4 = scmp.ge.s32.totalorder %s740_s21, 2 }
   0x8   : > { %s509_s22 = sshll.u32 (!%p211_p3), %s610_s15, 1  ;;  %p257_p5 = scmp.lt.s32.totalorder (!%p211_p3), %s614_s16, 1  ;;  %v628_v0 = vmov (!%p211_p3), 0.0   ;;  %vm629_vm0 = vmmov (!%p211_p3), 0   ;;  %v308_v1 = vld [vmem:[%s731_s3] sm:$0xff] (!%p211_p3)  ;;  %v630_v2 = vmov (!%p211_p3), 0  }
   0x9   : > { %s742_s21 = smov (%p28_p4, %s740_s21), 0  ;;  %214 = sbr.rel (%p211_p3) target bundleno = 250 (0xfa), region = 36 }
   0xa   : > { %533 = vmatprep.subr.bf16.mxu0 (!%p211_p3), %v628_v0  ;;  %p259_p6 = scmp.lt.s32.totalorder (!%p211_p3), %s509_s22, 3  ;;  %s268_s23 = sadd.s32 (!%p211_p3), 1, %s509_s22  ;;  %537 = vmatprep.mubr.msk.bf16.mxu0 (!%p211_p3), %vm629_vm0, %v628_v0  ;;  %v309_v3 = vld [vmem:[%s731_s3 + $0x8] sm:$0xf] (!%p211_p3)  ;;  %v587_v6 = vld [vmem:[%s730_s2] sm:$0x3f] (!%p211_p3)  }
   0xb   : > { %584 = vset.pattern.permute.xlu0 (!%p211_p3), %v630_v2  ;;  %p271_p7 = scmp.lt.s32.totalorder (!%p211_p3), %s268_s23, 3  ;;  %vm325_vm1 = vcmask (!%p211_p3), 261120   ;;  %p282_p8 = scmp.lt.s32.totalorder (!%p211_p3), %s610_s15, 1  ;;  %vm380_vm2 = vcmask (!%p211_p3), 27648   ;;  %vm382_vm3 = vcmask (!%p211_p3), 25600  }
   0xc   : > { %312 = vperm.xlu0 (!%p211_p3), %584, %v308_v1  }
  0x10   : > { %s744_s16 = smov (!%p257_p5, %s614_s16), 1  ;;  %s746_s22 = smov (!%p259_p6, %s509_s22), 3  ;;  %317 = vperm.xlu0 %584, %v309_v3  }
  0x11   : > { %s511_s26 = sshll.u32 %s744_s16, 3  ;;  %s510_s27 = sshll.u32 %s746_s22, 1 }
  0x12   : > { %s263_s30 = sadd.s32 %s511_s26, %s510_s27  ;;  %s748_s23 = smov (!%p271_p7, %s268_s23), 3 }
  0x13   : > { %s512_s5 = sshll.u32 %s263_s30, 2  ;;  %s514_s9 = sshll.u32 %s748_s23, 1 }
  0x14   : > { %s265_s8 = scalar_lea.vmem %s728_s0, %s512_s5  ;;  %s275_s10 = sadd.s32 %s514_s9, %s511_s26 }
  0x15   : > { %v585_v4 = vld [vmem:[%s265_s8] sm:$0xff]   ;;  %s516_s11 = sshll.u32 %s275_s10, 2  ;;  %s750_s15 = smov (!%p282_p8, %s610_s15), 1 }
  0x16   : > { %534 = vmatpush3.bf16.msra.mxu0 %v585_v4  ;;  %s277_s14 = scalar_lea.vmem %s729_s1, %s516_s11  ;;  %s518_s25 = sshll.u32 %s744_s16, 2 }
  0x17   : > { %535 = vmatprep.subr.bf16.mxu0 %v628_v0  ;;  %v586_v5 = vld [vmem:[%s277_s14] sm:$0xff]   ;;  %s517_s23 = sshll.u32 %s750_s15, 1 }
  0x18   : > { %s286_s26 = sadd.s32 %s518_s25, %s517_s23 }
  0x19   : > { %s519_s27 = sshll.u32 %s286_s26, 2 }
  0x1a   : > { %536 = vmatpush3.bf16.msra.mxu0 %v586_v5  ;;  %s288_s30 = scalar_lea.vmem %s732_s4, %s519_s27 }
  0x1d   : > { %538 = vmatmul.mubr.msk.bf16.vlgmr.msra.gmra.mrb[0].mxu0 %vm325_vm1, %v587_v6 }
  0x8b   : > { %v313_v7 = vpop.permute.xlu0 %312 }
  0x8f   : > { %v318_v11 = vpop.permute.xlu0 %317 }
  0xf0   : > { %v363_v8 = vpop.f32.mrb[0].mxu0 }
  0xf1   : > { %v364_v9 = vadd.f32 %v363_v8, %v313_v7  ;;  %v539_v10 = vpop.f32.mrb[1].mxu0 }
  0xf2   : > { %v366_v12 = vpop.f32.mrb[2].mxu0 }
  0xf3   : > { %v370_v13 = vmax.f32 %v364_v9, 0.0  ;;  %v367_v14 = vadd.f32 %v366_v12, %v318_v11  ;;  %v540_v15 = vpop.f32.mrb[3].mxu0 }
  0xf5   : > { %v528_v16 = vpack.c.bf16 %v370_v13, %v370_v13  ;;  %v371_v17 = vmax.f32 %v367_v14, 0.0 }
  0xf7   : > { %381 = vst.msk [vmem:[%s288_s30] sm:$0xf] %vm380_vm2, %v528_v16  ;;  %v529_v18 = vpack.c.bf16 %v371_v17, %v371_v17 }
  0xf9   : > { %383 = vst.msk [vmem:[%s288_s30 + $0x4] sm:$0x3] %vm382_vm3, %v529_v18 }
  0xfa PF: > { %s14_s19 = sadd.s32 1, %s626_s19   ;;  %s733_s15 = smov %s618_s17 }
  0xfb   : > { %p11_p9 = scmp.ge.s32.totalorder %s14_s19, 6   ;;  %s734_s16 = smov %s622_s18 }
  0xfc   : > { %s735_s17 = smov %s738_s20  ;;  %s736_s18 = smov %s742_s21 }
  0xfd   :  { %13 = sbr.rel (!%p11_p9) target bundleno = 3 (0x3), region = 69 }

// kernel: tile.183
= control target key start
LH: loop header
LB: loop body
LE: loop exit
PB: predicated region body
PF: predicated region fallthrough
CT: control target
= control target key end

     0   :  { %s22_s0 = inlined_call_operand.vmem [shape: f32[8], index: 0, kind: input, shape index: {}]   ;;  %s23_s1 = inlined_call_operand.vmem [shape: f32[4,8], index: 1, kind: output, shape index: {}]  }
   0x1   :  { %v4_v0 = vld [vmem:[%s22_s0] ss:$0 sm:$0xff] }
   0x2   :  { %5 = vst [vmem:[%s23_s1] sm:$0xf] %v4_v0 }

// kernel: mul.176
= control target key start
LH: loop header
LB: loop body
LE: loop exit
PB: predicated region body
PF: predicated region fallthrough
CT: control target
= control target key end

     0   :  { %vm7_vm0 = vcmask 64512   ;;  %s37_s8 = smov 8   ;;  %s38_s9 = smov 16   ;;  %vm13_vm1 = vcmask 261312   ;;  %vm19_vm2 = vcmask 195712   ;;  %vm25_vm3 = vcmask 130112   ;;  %s55_s0 = inlined_call_operand.vmem [shape: f32[4,8], index: 0, kind: input, shape index: {}]   ;;  %s56_s1 = inlined_call_operand.vmem [shape: f32[32], index: 1, kind: output, shape index: {}]  }
   0x1   :  { %v4_v0 = vld [vmem:[%s55_s0] sm:$0xf]  ;;  %s36_s0 = smov 24  }
   0x2   :  { %5 = vst [vmem:[#allocation1] sm:$0xf] %v4_v0 }
   0x9   :  { %v10_v1 = vld [vmem:[#allocation1 + $0x3] sm:$0x1]   ;;  %v22_v2 = vld [vmem:[#allocation1 + $0x1] sm:$0x1]   ;;  %v6_v3 = vld [vmem:[#allocation1] sm:$0x1]  }
   0xa   :  { %11 = vrot.lane.b32.xlu0 %v10_v1, %s36_s0  ;;  %23 = vrot.lane.b32.xlu1 %v22_v2, %s37_s8  ;;  %v16_v4 = vld [vmem:[#allocation1 + $0x2] sm:$0x1]   ;;  %8 = vst.msk [vmem:[#allocation0] sm:$0x1] %vm7_vm0, %v6_v3  }
   0xe   :  { %17 = vrot.lane.b32.xlu0 %v16_v4, %s38_s9 }
  0x7c   :  { %v12_v5 = vpop.permute.xlu0 %11   ;;  %v24_v6 = vpop.permute.xlu1 %23  }
  0x7d   :  { %14 = vst.msk [vmem:[#allocation0] sm:$0x1] %vm13_vm1, %v12_v5  }
  0x80   :  { %v18_v7 = vpop.permute.xlu0 %17  }
  0x81   :  { %20 = vst.msk [vmem:[#allocation0] sm:$0x1] %vm19_vm2, %v18_v7  }
  0x82   :  { %26 = vst.msk [vmem:[#allocation0] sm:$0x1] %vm25_vm3, %v24_v6  }
  0x89   :  { %v30_v8 = vld [vmem:[#allocation0] sm:$0x1] }
  0x8a   :  { %32 = vst [vmem:[%s56_s1] sm:$0x1] %v30_v8 }

// kernel: conv_tdf_net_forward.26
= control target key start
LH: loop header
LB: loop body
LE: loop exit
PB: predicated region body
PF: predicated region fallthrough
CT: control target
= control target key end

     0   :  { %s758_s18 = smov 0   ;;  %s760_s19 = smov 0   ;;  %s850_s0 = inlined_call_operand.vmem [shape: bf16[2,4,16,6], index: 0, kind: input, shape index: {}, may-alias: {0,1,2}]   ;;  %s851_s1 = inlined_call_operand.vmem [shape: bf16[2,4,16,6], index: 1, kind: input, shape index: {}, may-alias: {0,1,2}]   ;;  %s852_s2 = inlined_call_operand.vmem [shape: bf16[2,4,16,6], index: 2, kind: input, shape index: {}, may-alias: {0,1,2}]   ;;  %s853_s3 = inlined_call_operand.vmem [shape: bf16[12,144], index: 3, kind: input, shape index: {}]   ;;  %s854_s4 = inlined_call_operand.vmem [shape: f32[12,1], index: 4, kind: input, shape index: {}]   ;;  %s855_s5 = inlined_call_operand.vmem [shape: bf16[2,2,12,4], index: 5, kind: output, shape index: {}]  }
   0x1   :  { %s762_s20 = smov 0   ;;  %s764_s21 = smov 0  }
   0x2   :  { %s766_s22 = smov 0  }
   0x3 LB: > { %s24_s23 = sadd.s32 1, %s715_s20  ;;  %s27_s24 = sadd.s32 1, %s719_s21  ;;  %s723_s22 = sphi %s766_s22, %s15_s22   ;;  %s719_s21 = sphi %s764_s21, %s859_s21   ;;  %s715_s20 = sphi %s762_s20, %s858_s20   ;;  %s711_s19 = sphi %s760_s19, %s857_s19   ;;  %s707_s18 = sphi %s758_s18, %s856_s18  }
   0x4   : > { %p25_p0 = scmp.ge.s32.totalorder %s24_s23, 2  ;;  %p609_p1 = scmp.ge.s32.totalorder %s723_s22, 1 }
   0x5   : > { %p247_p2 = scmp.lt.s32.totalorder %s723_s22, 5 }
   0x6   : > { %s861_s23 = smov (%p25_p0, %s24_s23), 0  ;;  %s863_s24 = smov (!%p25_p0, %s27_s24), %s719_s21 }
   0x7   : > { %p248_p3 = pnand %p609_p1, %p247_p2  ;;  %p29_p4 = scmp.ge.s32.totalorder %s863_s24, 2 }
   0x8   : > { %p303_p5 = scmp.lt.s32.totalorder (!%p248_p3), %s711_s19, 1  ;;  %p305_p6 = scmp.lt.s32.totalorder (!%p248_p3), %s707_s18, 3  ;;  %v725_v0 = vmov (!%p248_p3), 0   ;;  %v684_v4 = vld [vmem:[%s853_s3 + $0x4] ss:$8 sps:$4 sm:$0x3f] (!%p248_p3)  }
   0x9   : > { %s865_s24 = smov (%p29_p4, %s863_s24), 0  ;;  %251 = sbr.rel (%p248_p3) target bundleno = 391 (0x187), region = 40 }
   0xa   : > { %413 = vmatprep.subr.bf16.mxu0 (!%p248_p3), %v725_v0  ;;  %677 = vset.pattern.permute.xlu0 (!%p248_p3), %v725_v0  ;;  %s312_s27 = sadd.s32 (!%p248_p3), 1, %s707_s18  ;;  %s323_s30 = sadd.s32 (!%p248_p3), 2, %s707_s18  ;;  %vm409_vm0 = vcmask (!%p248_p3), 130048   ;;  %v388_v5 = vld [vmem:[%s854_s4] sm:$0xff] (!%p248_p3)  ;;  %v389_v6 = vld [vmem:[%s854_s4 + $0x8] sm:$0xf] (!%p248_p3) }
   0xb   : > { %678 = vset.pattern.permute.xlu1 (!%p248_p3), %v725_v0  ;;  %p315_p7 = scmp.lt.s32.totalorder (!%p248_p3), %s312_s27, 3  ;;  %p326_p8 = scmp.lt.s32.totalorder (!%p248_p3), %s323_s30, 3  ;;  %627 = vmatprep.mubr.msk.bf16.mxu0 (!%p248_p3), %vm409_vm0, %v684_v4  ;;  %v682_v13 = vld [vmem:[%s853_s3] ss:$8 sps:$4 sm:$0x3f] (!%p248_p3)   ;;  %vm464_vm1 = vcmask (!%p248_p3), 27648  }
   0xc   : > { %s726_s10 = smov (!%p248_p3), 127   ;;  %p336_p9 = scmp.lt.s32.totalorder (!%p248_p3), %s707_s18, 1  ;;  %vm466_vm2 = vcmask (!%p248_p3), 25600  }
  0x10   : > { %s867_s19 = smov (!%p303_p5, %s711_s19), 1  ;;  %s869_s27 = smov (!%p315_p7, %s312_s27), 3 }
  0x11   : > { %s306_s25 = scalar_select %p305_p6, %s707_s18, 3 }
  0x12   : > { %s611_s26 = sshll.u32 %s867_s19, 3  ;;  %s871_s30 = smov (!%p326_p8, %s323_s30), 3 }
  0x13   : > { %s610_s28 = sshll.u32 %s306_s25, 1  ;;  %s613_s11 = sshll.u32 %s869_s27, 1 }
  0x14   : > { %s309_s29 = sadd.s32 %s611_s26, %s610_s28  ;;  %s319_s12 = sadd.s32 %s613_s11, %s611_s26 }
  0x15   : > { %s612_s6 = sshll.u32 %s309_s29, 2  ;;  %s616_s13 = sshll.u32 %s871_s30, 1 }
  0x16   : > { %s311_s9 = scalar_lea.vmem %s850_s0, %s612_s6  ;;  %s615_s14 = sshll.u32 %s319_s12, 2 }
  0x17   : > { %v679_v1 = vld [vmem:[%s311_s9] sm:$0xff]   ;;  %s330_s15 = sadd.s32 %s616_s13, %s611_s26  ;;  %s321_s25 = scalar_lea.vmem %s851_s1, %s615_s14 }
  0x18   : > { %356 = vrot.lane.b32.xlu0 %v679_v1, %s726_s10  ;;  %414 = vmatpush1.bf16.msra.mxu0 %v679_v1  ;;  %s618_s28 = sshll.u32 %s330_s15, 2  ;;  %s727_s29 = smov 126   ;;  %v680_v2 = vld [vmem:[%s321_s25] sm:$0xff]  }
  0x19   : > { %415 = vmatprep.subr.bf16.mxu0 %v725_v0  ;;  %s332_s8 = scalar_lea.vmem %s852_s2, %s618_s28  ;;  %368 = vrot.lane.b32.xlu1 %v680_v2, %s726_s10  ;;  %s873_s18 = smov (!%p336_p9, %s707_s18), 1 }
  0x1a   : > { %v681_v3 = vld [vmem:[%s332_s8] sm:$0xff]   ;;  %s619_s14 = sshll.u32 %s873_s18, 1  ;;  %s620_s15 = sshll.u32 %s867_s19, 2 }
  0x1b   : > { %s340_s16 = sadd.s32 %s620_s15, %s619_s14 }
  0x1c   : > { %359 = vrot.lane.b32.xlu0 %v679_v1, %s727_s29  ;;  %s621_s17 = sshll.u32 %s340_s16, 2 }
  0x1d   : > { %371 = vrot.lane.b32.xlu1 %v680_v2, %s727_s29 }
  0x20   : > { %380 = vrot.lane.b32.xlu0 %v681_v3, %s726_s10 }
  0x21   : > { %383 = vrot.lane.b32.xlu1 %v681_v3, %s727_s29  ;;  %s342_s29 = scalar_lea.vmem %s855_s5, %s621_s17 }
  0x24   : > { %392 = vperm.xlu0 %677, %v388_v5  }
  0x25   : > { %397 = vperm.xlu1 %678, %v389_v6  }
  0x8a   : > { %v357_v7 = vpop.permute.xlu0 %356 }
  0x8b   : > { %416 = vmatpush1.bf16.msra.mxu0 %v357_v7  ;;  %v369_v9 = vpop.permute.xlu1 %368 }
  0x8c   : > { %417 = vmatprep.subr.bf16.mxu0 %v725_v0 }
  0x8e   : > { %v360_v8 = vpop.permute.xlu0 %359 }
  0x8f   : > { %418 = vmatpush1.bf16.msra.mxu0 %v360_v8  ;;  %v372_v10 = vpop.permute.xlu1 %371 }
  0x90   : > { %419 = vmatprep.subr.bf16.mxu0 %v725_v0 }
  0x92   : > { %v381_v11 = vpop.permute.xlu0 %380 }
  0x93   : > { %420 = vmatpush1.bf16.msra.mxu0 %v680_v2  ;;  %v384_v12 = vpop.permute.xlu1 %383 }
  0x94   : > { %421 = vmatprep.subr.bf16.mxu0 %v725_v0 }
  0x97   : > { %422 = vmatpush1.bf16.msra.mxu0 %v369_v9 }
  0x98   : > { %423 = vmatprep.subr.bf16.mxu0 %v725_v0 }
  0x9b   : > { %424 = vmatpush1.bf16.msra.mxu0 %v372_v10 }
  0x9c   : > { %425 = vmatprep.subr.bf16.mxu0 %v725_v0 }
  0x9f   : > { %426 = vmatpush1.bf16.msra.mxu0 %v681_v3 }
  0xa0   : > { %427 = vmatprep.subr.bf16.mxu0 %v725_v0 }
  0xa3   : > { %428 = vmatpush1.bf16.msra.mxu0 %v381_v11  ;;  %v393_v14 = vpop.permute.xlu0 %392 }
  0xa4   : > { %429 = vmatprep.subr.bf16.mxu0 %v725_v0  ;;  %v398_v16 = vpop.permute.xlu1 %397 }
  0xa7   : > { %430 = vmatpush1.bf16.msra.mxu0 %v384_v12 }
  0xaa   : > { %446 = vmatmul.mubr.bf16.vlgmr.msra.gmra.mrb[0].mxu0 %v682_v13 }
 0x17d   : > { %v447_v15 = vpop.f32.mrb[0].mxu0 }
 0x17e   : > { %v448_v17 = vadd.f32 %v447_v15, %v393_v14  ;;  %v449_v18 = vpop.f32.mrb[1].mxu0 }
 0x17f   : > { %v450_v19 = vpop.f32.mrb[2].mxu0 }
 0x180   : > { %v454_v20 = vmax.f32 %v448_v17, 0.0  ;;  %v451_v21 = vadd.f32 %v450_v19, %v398_v16  ;;  %v452_v22 = vpop.f32.mrb[3].mxu0 }
 0x182   : > { %v632_v23 = vpack.c.bf16 %v454_v20, %v454_v20  ;;  %v455_v24 = vmax.f32 %v451_v21, 0.0 }
 0x184   : > { %465 = vst.msk [vmem:[%s342_s29] sm:$0xf] %vm464_vm1, %v632_v23  ;;  %v633_v25 = vpack.c.bf16 %v455_v24, %v455_v24 }
 0x186   : > { %467 = vst.msk [vmem:[%s342_s29 + $0x4] sm:$0x3] %vm466_vm2, %v633_v25 }
 0x187 PF: > { %s15_s22 = sadd.s32 1, %s723_s22   ;;  %s856_s18 = smov %s715_s20 }
 0x188   : > { %p12_p10 = scmp.ge.s32.totalorder %s15_s22, 6   ;;  %s857_s19 = smov %s719_s21 }
 0x189   : > { %s858_s20 = smov %s861_s23  ;;  %s859_s21 = smov %s865_s24 }
 0x18a   :  { %14 = sbr.rel (!%p12_p10) target bundleno = 3 (0x3), region = 76 }

// kernel: tile.12
= control target key start
LH: loop header
LB: loop body
LE: loop exit
PB: predicated region body
PF: predicated region fallthrough
CT: control target
= control target key end

     0   :  { %s66_s8 = smov 125   ;;  %vm7_vm0 = vcmask 7168   ;;  %s67_s11 = smov 126   ;;  %s117_s0 = inlined_call_operand.vmem [shape: f32[4,8], index: 0, kind: input, shape index: {}]   ;;  %s118_s1 = inlined_call_operand.vmem [shape: f32[32,1], index: 1, kind: output, shape index: {}]  }
   0x1   :  { %v4_v0 = vld [vmem:[%s117_s0] sm:$0xf]  ;;  %s65_s0 = smov 127   ;;  %s68_s12 = smov 124  }
   0x2   :  { %5 = vst [vmem:[#allocation0] sm:$0xf] %v4_v0  ;;  %s69_s13 = smov 123   ;;  %s70_s14 = smov 122  }
   0x3   :  { %s71_s15 = smov 121  }
   0x9   :  { %v9_v1 = vld [vmem:[#allocation0] sm:$0xf]  }
   0xa   :  { %v21_v2 = vld [vmem:[#allocation0] sm:$0xf]   ;;  %10 = vrot.lane.b32.xlu0 %v9_v1, %s65_s0 }
   0xb   :  { %22 = vrot.lane.b32.xlu1 %v21_v2, %s66_s8  ;;  %v15_v3 = vld [vmem:[#allocation0] sm:$0xf]  }
   0xc   :  { %v27_v4 = vld [vmem:[#allocation0] sm:$0xf]  }
   0xd   :  { %v6_v5 = vld [vmem:[#allocation0] sm:$0xf]  }
   0xe   :  { %8 = vst.msk [vmem:[%s118_s1] ss:$8 sm:$0xf] %vm7_vm0, %v6_v5   ;;  %16 = vrot.lane.b32.xlu0 %v15_v3, %s67_s11  ;;  %v33_v6 = vld [vmem:[#allocation0] sm:$0xf]  }
   0xf   :  { %28 = vrot.lane.b32.xlu1 %v27_v4, %s68_s12  ;;  %v39_v7 = vld [vmem:[#allocation0] sm:$0xf]  }
  0x10   :  { %v45_v8 = vld [vmem:[#allocation0] sm:$0xf]  }
  0x12   :  { %34 = vrot.lane.b32.xlu0 %v33_v6, %s69_s13 }
  0x13   :  { %40 = vrot.lane.b32.xlu1 %v39_v7, %s70_s14 }
  0x16   :  { %46 = vrot.lane.b32.xlu0 %v45_v8, %s71_s15 }
  0x7c   :  { %v11_v9 = vpop.permute.xlu0 %10  }
  0x7d   :  { %v23_v10 = vpop.permute.xlu1 %22   ;;  %51 = vst.msk [vmem:[%s118_s1 + $0x1] ss:$8 sm:$0xf] %vm7_vm0, %v11_v9  }
  0x7e   :  { %53 = vst.msk [vmem:[%s118_s1 + $0x3] ss:$8 sm:$0xf] %vm7_vm0, %v23_v10  }
  0x80   :  { %v17_v11 = vpop.permute.xlu0 %16  }
  0x81   :  { %v29_v12 = vpop.permute.xlu1 %28   ;;  %52 = vst.msk [vmem:[%s118_s1 + $0x2] ss:$8 sm:$0xf] %vm7_vm0, %v17_v11  }
  0x82   :  { %54 = vst.msk [vmem:[%s118_s1 + $0x4] ss:$8 sm:$0xf] %vm7_vm0, %v29_v12  }
  0x84   :  { %v35_v13 = vpop.permute.xlu0 %34  }
  0x85   :  { %v41_v14 = vpop.permute.xlu1 %40   ;;  %55 = vst.msk [vmem:[%s118_s1 + $0x5] ss:$8 sm:$0xf] %vm7_vm0, %v35_v13  }
  0x86   :  { %56 = vst.msk [vmem:[%s118_s1 + $0x6] ss:$8 sm:$0xf] %vm7_vm0, %v41_v14  }
  0x88   :  { %v47_v15 = vpop.permute.xlu0 %46  }
  0x89   :  { %57 = vst.msk [vmem:[%s118_s1 + $0x7] ss:$8 sm:$0xf] %vm7_vm0, %v47_v15  }

// kernel: conv_tdf_net_forward.27
= control target key start
LH: loop header
LB: loop body
LE: loop exit
PB: predicated region body
PF: predicated region fallthrough
CT: control target
= control target key end

     0   :  { %vm74_vm0 = vcmask 1041408   ;;  %v456_v0 = vmov 0.0   ;;  %vm457_vm1 = vmmov 0   ;;  %vm64_vm2 = vcmask 31744   ;;  %s658_s1 = inlined_call_operand.vmem [shape: bf16[4,1], index: 1, kind: input, shape index: {}]   ;;  %s659_s0 = inlined_call_operand.vmem [shape: bf16[48,4], index: 0, kind: input, shape index: {}]   ;;  %s660_s3 = inlined_call_operand.<no memory space> [shape: f32[1,1], index: 3, kind: input, shape index: {}]   ;;  %s661_s2 = inlined_call_operand.vmem [shape: bf16[1,4], index: 2, kind: input, shape index: {}]   ;;  %s662_s7 = inlined_call_operand.vmem [shape: f32[48,1], index: 7, kind: input, shape index: {}]   ;;  %s663_s8 = inlined_call_operand.vmem [shape: f32[48,1], index: 8, kind: input, shape index: {}]   ;;  %s664_s5 = inlined_call_operand.vmem [shape: f32[48,1], index: 5, kind: input, shape index: {}]   ;;  %s665_s6 = inlined_call_operand.vmem [shape: f32[48,1], index: 6, kind: input, shape index: {}]   ;;  %s666_s4 = inlined_call_operand.vmem [shape: f32[1,4], index: 4, kind: input, shape index: {}]   ;;  %s667_s9 = inlined_call_operand.vmem [shape: bf16[48,4], index: 9, kind: output, shape index: {}]  }
   0x1   :  { %417 = vmatprep.subr.bf16.mxu0 %v456_v0  ;;  %v41_v1 = vld [vmem:[%s658_s1] sm:$0x3]  ;;  %419 = vmatprep.mubr.msk.bf16.mxu0 %vm457_vm1, %v456_v0  ;;  %v14_v3 = vstv %s660_s3  ;;  %v532_v5 = vld [vmem:[%s659_s0 + $0x8] sm:$0xff]   ;;  %v540_v6 = vld [vmem:[%s659_s0 + $0x10] sm:$0xff]   ;;  %vm186_vm3 = vcmask 1040384   ;;  %v458_v8 = vmov 0  }
   0x2   :  { %v518_v2 = vld [vmem:[%s659_s0] sm:$0xff]   ;;  %v76_v4 = vsel %vm74_vm0, %v41_v1, 0  ;;  %15 = vst [vmem:[#allocation2] sm:$0x1] %v14_v3  ;;  %431 = vmatprep.subr.bf16.mxu1 %v456_v0  ;;  %433 = vmatprep.mubr.msk.bf16.mxu1 %vm457_vm1, %v456_v0  ;;  %v188_v9 = vsel %vm186_vm3, 65535, %v458_v8  ;;  %v251_v11 = vld [vmem:[%s662_s7 + $0x10] sm:$0xff] }
   0x3   :  { %418 = vmatpush3.bf16.msra.mxu0 %v76_v4  ;;  %v168_v7 = vld [vmem:[%s661_s2] sm:$0x1]  ;;  %449 = vset.pattern.permute.xlu1 %v458_v8  ;;  %v252_v13 = vld [vmem:[%s662_s7 + $0x18] sm:$0xff]  ;;  %v250_v14 = vld [vmem:[%s662_s7 + $0x8] sm:$0xff]  ;;  %vm176_vm4 = vcmask 7168   ;;  %vm375_vm5 = vcmask 27648  }
   0x4   :  { %448 = vset.pattern.permute.xlu0 %v458_v8  ;;  %v190_v10 = vand.u32 %v188_v9, %v168_v7  ;;  %v249_v12 = vld [vmem:[%s662_s7] sm:$0xff]  ;;  %267 = vperm.xlu1 %449, %v251_v11   ;;  %v254_v15 = vld [vmem:[%s662_s7 + $0x28] sm:$0xff]  ;;  %v294_v19 = vld [vmem:[%s663_s8 + $0x18] sm:$0xff] }
   0x5   :  { %257 = vperm.xlu0 %448, %v249_v12   ;;  %v253_v16 = vld [vmem:[%s662_s7 + $0x20] sm:$0xff]  ;;  %v292_v17 = vld [vmem:[%s663_s8 + $0x8] sm:$0xff]  ;;  %v293_v20 = vld [vmem:[%s663_s8 + $0x10] sm:$0xff] }
   0x6   :  { %420 = vmatmul.mubr.msk.bf16.vlgmr.msra.gmra.mrb[0].mxu0 %vm64_vm2, %v518_v2  ;;  %432 = vmatpush3.bf16.msra.mxu1 %v190_v10  ;;  %v291_v18 = vld [vmem:[%s663_s8] sm:$0xff]  ;;  %v296_v21 = vld [vmem:[%s663_s8 + $0x28] sm:$0xff]  ;;  %v137_v39 = vld [vmem:[%s664_s5 + $0x10] sm:$0xff] }
   0x7   :  { %423 = vmatprep.mubr.msk.bf16.mxu0 %vm457_vm1, %v456_v0  ;;  %v295_v22 = vld [vmem:[%s663_s8 + $0x20] sm:$0xff]  ;;  %v136_v30 = vld [vmem:[%s664_s5 + $0x8] sm:$0xff]  ;;  %v149_v44 = vld [vmem:[%s665_s6 + $0x10] sm:$0xff] }
   0x8   :  { %272 = vperm.xlu1 %449, %v252_v13   ;;  %v135_v25 = vld [vmem:[%s664_s5] sm:$0xff]  ;;  %v148_v34 = vld [vmem:[%s665_s6 + $0x8] sm:$0xff]  ;;  %v138_v46 = vld [vmem:[%s664_s5 + $0x18] sm:$0xff] }
   0x9   :  { %262 = vperm.xlu0 %448, %v250_v14   ;;  %v386_v23 = vld [vmem:[#allocation2] ss:$0 sm:$0xff]  ;;  %v150_v51 = vld [vmem:[%s665_s6 + $0x18] sm:$0xff]  ;;  %v140_v63 = vld [vmem:[%s664_s5 + $0x28] sm:$0xff] }
   0xa   :  { %v147_v28 = vld [vmem:[%s665_s6] sm:$0xff]  ;;  %v152_v8 = vld [vmem:[%s665_s6 + $0x28] sm:$0xff] }
   0xb   :  { %v139_v56 = vld [vmem:[%s664_s5 + $0x20] sm:$0xff] }
   0xc   :  { %282 = vperm.xlu1 %449, %v254_v15   ;;  %v151_v61 = vld [vmem:[%s665_s6 + $0x20] sm:$0xff] }
   0xd   :  { %277 = vperm.xlu0 %448, %v253_v16  }
   0xe   :  { %424 = vmatmul.mubr.msk.bf16.gmra.mrb[4].mxu0 %vm64_vm2, %v532_v5 }
   0xf   :  { %427 = vmatprep.mubr.msk.bf16.mxu0 %vm457_vm1, %v456_v0 }
  0x10   :  { %304 = vperm.xlu1 %449, %v292_v17  }
  0x11   :  { %299 = vperm.xlu0 %448, %v291_v18  }
  0x14   :  { %314 = vperm.xlu1 %449, %v294_v19  }
  0x15   :  { %309 = vperm.xlu0 %448, %v293_v20   ;;  %v393_v20 = vld [vmem:[%s666_s4] ss:$0 sm:$0xff] }
  0x16   :  { %428 = vmatmul.mubr.msk.bf16.gmra.mrb[8].mxu0 %vm64_vm2, %v540_v6 }
  0x18   :  { %324 = vperm.xlu1 %449, %v296_v21  }
  0x19   :  { %319 = vperm.xlu0 %448, %v295_v22  }
  0x83   :  { %v268_v16 = vpop.permute.xlu1 %267 }
  0x84   :  { %v258_v15 = vpop.permute.xlu0 %257 }
  0x87   :  { %v273_v18 = vpop.permute.xlu1 %272 }
  0x88   :  { %v263_v17 = vpop.permute.xlu0 %262 }
  0x8b   :  { %v283_v21 = vpop.permute.xlu1 %282 }
  0x8c   :  { %v278_v19 = vpop.permute.xlu0 %277 }
  0xd9   :  { %v112_v24 = vpop.f32.mrb[0].mxu0 }
  0xda   :  { %v113_v26 = vadd.f32 %v386_v23, %v112_v24  ;;  %v421_v27 = vpop.f32.mrb[1].mxu0 }
  0xdb   :  { %v115_v29 = vpop.f32.mrb[2].mxu0 }
  0xdc   :  { %v141_v31 = vmul.f32 %v135_v25, %v113_v26  ;;  %v116_v32 = vadd.f32 %v386_v23, %v115_v29  ;;  %v422_v33 = vpop.f32.mrb[3].mxu0 }
  0xde   :  { %v153_v35 = vadd.f32 %v147_v28, %v141_v31  ;;  %v142_v36 = vmul.f32 %v136_v30, %v116_v32  ;;  %v300_v28 = vpop.permute.xlu0 %299  ;;  %v339_v30 = vunpack.c.l.bf16 %v518_v2  ;;  %v305_v32 = vpop.permute.xlu1 %304 }
  0xe0   :  { %v154_v37 = vadd.f32 %v148_v34, %v142_v36  ;;  %v159_v40 = vmax.f32 %v153_v35, 0.0  ;;  %v340_v35 = vunpack.c.h.bf16 %v518_v2 }
  0xe1   :  { %v120_v38 = vpop.f32.mrb[4].mxu0 }
  0xe2   :  { %v160_v41 = vmax.f32 %v154_v37, 0.0  ;;  %v121_v42 = vadd.f32 %v386_v23, %v120_v38  ;;  %v425_v43 = vpop.f32.mrb[5].mxu0 }
  0xe3   :  { %v123_v45 = vpop.f32.mrb[6].mxu0 }
  0xe4   :  { %v165_v47 = vpack.c.bf16 %v160_v41, %v159_v40  ;;  %v143_v48 = vmul.f32 %v137_v39, %v121_v42  ;;  %v124_v49 = vadd.f32 %v386_v23, %v123_v45  ;;  %v426_v50 = vpop.f32.mrb[7].mxu0 }
  0xe6   :  { %v155_v52 = vadd.f32 %v149_v44, %v143_v48  ;;  %v144_v53 = vmul.f32 %v138_v46, %v124_v49  ;;  %434 = vmatmul.mubr.msk.bf16.vlgmr.msra.gmra.mrb[0].mxu1 %vm176_vm4, %v165_v47  ;;  %v310_v47 = vpop.permute.xlu0 %309  ;;  %v341_v49 = vunpack.c.l.bf16 %v532_v5 }
  0xe7   :  { %437 = vmatprep.mubr.msk.bf16.mxu1 %vm457_vm1, %v456_v0 }
  0xe8   :  { %v156_v54 = vadd.f32 %v150_v51, %v144_v53  ;;  %v161_v57 = vmax.f32 %v155_v52, 0.0  ;;  %v315_v51 = vpop.permute.xlu1 %314 }
  0xe9   :  { %v128_v55 = vpop.f32.mrb[8].mxu0 }
  0xea   :  { %v162_v58 = vmax.f32 %v156_v54, 0.0  ;;  %v129_v59 = vadd.f32 %v386_v23, %v128_v55  ;;  %v429_v60 = vpop.f32.mrb[9].mxu0  ;;  %v342_v54 = vunpack.c.h.bf16 %v532_v5  ;;  %v343_v5 = vunpack.c.l.bf16 %v540_v6 }
  0xeb   :  { %v131_v62 = vpop.f32.mrb[10].mxu0 }
  0xec   :  { %v166_v1 = vpack.c.bf16 %v162_v58, %v161_v57  ;;  %v145_v3 = vmul.f32 %v139_v56, %v129_v59  ;;  %v132_v4 = vadd.f32 %v386_v23, %v131_v62  ;;  %v430_v7 = vpop.f32.mrb[11].mxu0 }
  0xee   :  { %v157_v9 = vadd.f32 %v151_v61, %v145_v3  ;;  %v146_v10 = vmul.f32 %v140_v63, %v132_v4  ;;  %438 = vmatmul.mubr.msk.bf16.gmra.mrb[4].mxu1 %vm176_vm4, %v166_v1  ;;  %v320_v4 = vpop.permute.xlu0 %319 }
  0xef   :  { %441 = vmatprep.mubr.msk.bf16.mxu1 %vm457_vm1, %v456_v0 }
  0xf0   :  { %v158_v11 = vadd.f32 %v152_v8, %v146_v10  ;;  %v163_v12 = vmax.f32 %v157_v9, 0.0  ;;  %v325_v10 = vpop.permute.xlu1 %324 }
  0xf2   :  { %v164_v13 = vmax.f32 %v158_v11, 0.0 }
  0xf4   :  { %v167_v14 = vpack.c.bf16 %v164_v13, %v163_v12  ;;  %v344_v13 = vunpack.c.h.bf16 %v540_v6 }
  0xf6   :  { %442 = vmatmul.mubr.msk.bf16.gmra.mrb[8].mxu1 %vm176_vm4, %v167_v14 }
 0x1b9   :  { %v226_v22 = vpop.f32.mrb[0].mxu1 }
 0x1ba   :  { %v227_v23 = vadd.f32 %v393_v20, %v226_v22  ;;  %v435_v24 = vpop.f32.mrb[1].mxu1 }
 0x1bb   :  { %v229_v0 = vpop.f32.mrb[2].mxu1 }
 0x1bc   :  { %v285_v25 = vmul.f32 %v258_v15, %v227_v23  ;;  %v230_v26 = vadd.f32 %v393_v20, %v229_v0  ;;  %v436_v27 = vpop.f32.mrb[3].mxu1 }
 0x1be   :  { %v327_v29 = vadd.f32 %v300_v28, %v285_v25  ;;  %v286_v31 = vmul.f32 %v263_v17, %v230_v26 }
 0x1c0   :  { %v333_v33 = vmax.f32 %v327_v29, 0.0  ;;  %v328_v34 = vadd.f32 %v305_v32, %v286_v31 }
 0x1c1   :  { %v234_v36 = vpop.f32.mrb[4].mxu1 }
 0x1c2   :  { %v345_v37 = vadd.f32 %v339_v30, %v333_v33  ;;  %v334_v38 = vmax.f32 %v328_v34, 0.0  ;;  %v235_v39 = vadd.f32 %v393_v20, %v234_v36  ;;  %v439_v40 = vpop.f32.mrb[5].mxu1 }
 0x1c3   :  { %v237_v41 = vpop.f32.mrb[6].mxu1 }
 0x1c4   :  { %v403_v42 = vpack.c.bf16 %v345_v37, %v345_v37  ;;  %v346_v43 = vadd.f32 %v340_v35, %v334_v38  ;;  %v287_v44 = vmul.f32 %v268_v16, %v235_v39  ;;  %v238_v45 = vadd.f32 %v393_v20, %v237_v41  ;;  %v440_v46 = vpop.f32.mrb[7].mxu1 }
 0x1c6   :  { %376 = vst.msk [vmem:[%s667_s9] sm:$0xf] %vm375_vm5, %v403_v42  ;;  %v404_v48 = vpack.c.bf16 %v346_v43, %v346_v43  ;;  %v329_v2 = vadd.f32 %v310_v47, %v287_v44  ;;  %v288_v50 = vmul.f32 %v273_v18, %v238_v45 }
 0x1c8   :  { %377 = vst.msk [vmem:[%s667_s9 + $0x4] sm:$0xf] %vm375_vm5, %v404_v48  ;;  %v335_v52 = vmax.f32 %v329_v2, 0.0  ;;  %v330_v53 = vadd.f32 %v315_v51, %v288_v50 }
 0x1c9   :  { %v242_v55 = vpop.f32.mrb[8].mxu1 }
 0x1ca   :  { %v347_v56 = vadd.f32 %v341_v49, %v335_v52  ;;  %v336_v57 = vmax.f32 %v330_v53, 0.0  ;;  %v243_v58 = vadd.f32 %v393_v20, %v242_v55  ;;  %v443_v59 = vpop.f32.mrb[9].mxu1 }
 0x1cb   :  { %v245_v60 = vpop.f32.mrb[10].mxu1 }
 0x1cc   :  { %v405_v61 = vpack.c.bf16 %v347_v56, %v347_v56  ;;  %v348_v62 = vadd.f32 %v342_v54, %v336_v57  ;;  %v289_v63 = vmul.f32 %v278_v19, %v243_v58  ;;  %v246_v1 = vadd.f32 %v393_v20, %v245_v60  ;;  %v444_v3 = vpop.f32.mrb[11].mxu1 }
 0x1ce   :  { %378 = vst.msk [vmem:[%s667_s9 + $0x8] sm:$0xf] %vm375_vm5, %v405_v61  ;;  %v406_v7 = vpack.c.bf16 %v348_v62, %v348_v62  ;;  %v331_v8 = vadd.f32 %v320_v4, %v289_v63  ;;  %v290_v9 = vmul.f32 %v283_v21, %v246_v1 }
 0x1d0   :  { %379 = vst.msk [vmem:[%s667_s9 + $0xc] sm:$0xf] %vm375_vm5, %v406_v7  ;;  %v337_v11 = vmax.f32 %v331_v8, 0.0  ;;  %v332_v12 = vadd.f32 %v325_v10, %v290_v9 }
 0x1d2   :  { %v349_v14 = vadd.f32 %v343_v5, %v337_v11  ;;  %v338_v15 = vmax.f32 %v332_v12, 0.0 }
 0x1d4   :  { %v407_v16 = vpack.c.bf16 %v349_v14, %v349_v14  ;;  %v350_v17 = vadd.f32 %v344_v13, %v338_v15 }
 0x1d6   :  { %380 = vst.msk [vmem:[%s667_s9 + $0x10] sm:$0xf] %vm375_vm5, %v407_v16  ;;  %v408_v18 = vpack.c.bf16 %v350_v17, %v350_v17 }
 0x1d8   :  { %381 = vst.msk [vmem:[%s667_s9 + $0x14] sm:$0xf] %vm375_vm5, %v408_v18 }

// kernel: tile.213
= control target key start
LH: loop header
LB: loop body
LE: loop exit
PB: predicated region body
PF: predicated region fallthrough
CT: control target
= control target key end

     0   :  { %s22_s0 = inlined_call_operand.vmem [shape: f32[4], index: 0, kind: input, shape index: {}]   ;;  %s23_s1 = inlined_call_operand.vmem [shape: f32[4,4], index: 1, kind: output, shape index: {}]  }
   0x1   :  { %v4_v0 = vld [vmem:[%s22_s0] ss:$0 sm:$0xff] }
   0x2   :  { %5 = vst [vmem:[%s23_s1] sm:$0xf] %v4_v0 }

// kernel: mul.190
= control target key start
LH: loop header
LB: loop body
LE: loop exit
PB: predicated region body
PF: predicated region fallthrough
CT: control target
= control target key end

     0   :  { %vm7_vm0 = vcmask 31744   ;;  %s37_s8 = smov 4   ;;  %s38_s9 = smov 8   ;;  %vm13_vm1 = vcmask 130144   ;;  %vm19_vm2 = vcmask 97344   ;;  %vm25_vm3 = vcmask 64544   ;;  %s55_s0 = inlined_call_operand.vmem [shape: f32[4,4], index: 0, kind: input, shape index: {}]   ;;  %s56_s1 = inlined_call_operand.vmem [shape: f32[16], index: 1, kind: output, shape index: {}]  }
   0x1   :  { %v4_v0 = vld [vmem:[%s55_s0] sm:$0xf]  ;;  %s36_s0 = smov 12  }
   0x2   :  { %5 = vst [vmem:[#allocation1] sm:$0xf] %v4_v0 }
   0x9   :  { %v10_v1 = vld [vmem:[#allocation1 + $0x3] sm:$0x1]   ;;  %v22_v2 = vld [vmem:[#allocation1 + $0x1] sm:$0x1]   ;;  %v6_v3 = vld [vmem:[#allocation1] sm:$0x1]  }
   0xa   :  { %11 = vrot.lane.b32.xlu0 %v10_v1, %s36_s0  ;;  %23 = vrot.lane.b32.xlu1 %v22_v2, %s37_s8  ;;  %v16_v4 = vld [vmem:[#allocation1 + $0x2] sm:$0x1]   ;;  %8 = vst.msk [vmem:[#allocation0] sm:$0x1] %vm7_vm0, %v6_v3  }
   0xe   :  { %17 = vrot.lane.b32.xlu0 %v16_v4, %s38_s9 }
  0x7c   :  { %v12_v5 = vpop.permute.xlu0 %11   ;;  %v24_v6 = vpop.permute.xlu1 %23  }
  0x7d   :  { %14 = vst.msk [vmem:[#allocation0] sm:$0x1] %vm13_vm1, %v12_v5  }
  0x80   :  { %v18_v7 = vpop.permute.xlu0 %17  }
  0x81   :  { %20 = vst.msk [vmem:[#allocation0] sm:$0x1] %vm19_vm2, %v18_v7  }
  0x82   :  { %26 = vst.msk [vmem:[#allocation0] sm:$0x1] %vm25_vm3, %v24_v6  }
  0x89   :  { %v30_v8 = vld [vmem:[#allocation0] sm:$0x1] }
  0x8a   :  { %32 = vst [vmem:[%s56_s1] sm:$0x1] %v30_v8 }

// kernel: tile.17
= control target key start
LH: loop header
LB: loop body
LE: loop exit
PB: predicated region body
PF: predicated region fallthrough
CT: control target
= control target key end

     0   :  { %s34_s8 = smov 125   ;;  %vm7_vm0 = vcmask 7168   ;;  %s35_s11 = smov 126   ;;  %s61_s0 = inlined_call_operand.vmem [shape: f32[4,4], index: 0, kind: input, shape index: {}]   ;;  %s62_s1 = inlined_call_operand.vmem [shape: f32[16,1], index: 1, kind: output, shape index: {}]  }
   0x1   :  { %v4_v0 = vld [vmem:[%s61_s0] sm:$0xf]  ;;  %s33_s0 = smov 127  }
   0x2   :  { %5 = vst [vmem:[#allocation0] sm:$0xf] %v4_v0 }
   0x9   :  { %v9_v1 = vld [vmem:[#allocation0] sm:$0xf]  }
   0xa   :  { %v21_v2 = vld [vmem:[#allocation0] sm:$0xf]   ;;  %10 = vrot.lane.b32.xlu0 %v9_v1, %s33_s0 }
   0xb   :  { %22 = vrot.lane.b32.xlu1 %v21_v2, %s34_s8  ;;  %v6_v3 = vld [vmem:[#allocation0] sm:$0xf]  }
   0xc   :  { %v15_v4 = vld [vmem:[#allocation0] sm:$0xf]   ;;  %8 = vst.msk [vmem:[%s62_s1] ss:$4 sm:$0xf] %vm7_vm0, %v6_v3  }
   0xe   :  { %16 = vrot.lane.b32.xlu0 %v15_v4, %s35_s11 }
  0x7c   :  { %v11_v5 = vpop.permute.xlu0 %10  }
  0x7d   :  { %v23_v6 = vpop.permute.xlu1 %22   ;;  %27 = vst.msk [vmem:[%s62_s1 + $0x1] ss:$4 sm:$0xf] %vm7_vm0, %v11_v5  }
  0x7e   :  { %29 = vst.msk [vmem:[%s62_s1 + $0x3] ss:$4 sm:$0xf] %vm7_vm0, %v23_v6  }
  0x80   :  { %v17_v7 = vpop.permute.xlu0 %16  }
  0x81   :  { %28 = vst.msk [vmem:[%s62_s1 + $0x2] ss:$4 sm:$0xf] %vm7_vm0, %v17_v7  }

// kernel: conv_tdf_net_forward.28
= control target key start
LH: loop header
LB: loop body
LE: loop exit
PB: predicated region body
PF: predicated region fallthrough
CT: control target
= control target key end

     0   :  { %s687_s15 = smov 0   ;;  %s689_s16 = smov 0   ;;  %s764_s0 = inlined_call_operand.vmem [shape: bf16[2,2,12,4], index: 0, kind: input, shape index: {}]   ;;  %s765_s1 = inlined_call_operand.vmem [shape: bf16[32,12], index: 1, kind: input, shape index: {}]   ;;  %s766_s2 = inlined_call_operand.vmem [shape: f32[32,1], index: 2, kind: input, shape index: {}]   ;;  %s767_s3 = inlined_call_operand.vmem [shape: bf16[2,2,32,4], index: 3, kind: input, shape index: {}]   ;;  %s768_s4 = inlined_call_operand.vmem [shape: bf16[2,2,32,4], index: 4, kind: output, shape index: {}]  }
   0x1   :  { %s691_s17 = smov 0   ;;  %s693_s18 = smov 0  }
   0x2   :  { %s695_s19 = smov 0  }
   0x3 LB: > { %s23_s20 = sadd.s32 1, %s651_s17  ;;  %s26_s21 = sadd.s32 1, %s655_s18  ;;  %s659_s19 = sphi %s695_s19, %s14_s19   ;;  %s655_s18 = sphi %s693_s18, %s772_s18   ;;  %s651_s17 = sphi %s691_s17, %s771_s17   ;;  %s647_s16 = sphi %s689_s16, %s770_s16   ;;  %s643_s15 = sphi %s687_s15, %s769_s15  }
   0x4   : > { %p24_p0 = scmp.ge.s32.totalorder %s23_s20, 2  ;;  %p531_p1 = scmp.ge.s32.totalorder %s659_s19, 1 }
   0x5   : > { %p198_p2 = scmp.lt.s32.totalorder %s659_s19, 5 }
   0x6   : > { %s774_s20 = smov (%p24_p0, %s23_s20), 0  ;;  %s776_s21 = smov (!%p24_p0, %s26_s21), %s655_s18 }
   0x7   : > { %p199_p3 = pnand %p531_p1, %p198_p2  ;;  %p28_p4 = scmp.ge.s32.totalorder %s776_s21, 2 }
   0x8   : > { %p241_p5 = scmp.lt.s32.totalorder (!%p199_p3), %s647_s16, 1  ;;  %p243_p6 = scmp.lt.s32.totalorder (!%p199_p3), %s643_s15, 1  ;;  %v619_v0 = vld [vmem:[%s765_s1] sm:$0xff] (!%p199_p3)   ;;  %vm314_vm0 = vcmask (!%p199_p3), 97280   ;;  %v277_v1 = vld [vmem:[%s766_s2 + $0x10] sm:$0xff] (!%p199_p3)  ;;  %v661_v3 = vmov (!%p199_p3), 0  }
   0x9   : > { %s778_s21 = smov (%p28_p4, %s776_s21), 0  ;;  %202 = sbr.rel (%p199_p3) target bundleno = 251 (0xfb), region = 36 }
   0xa   : > { %570 = vmatprep.mubr.msk.bf16.mxu0 (!%p199_p3), %vm314_vm0, %v619_v0  ;;  %v275_v2 = vld [vmem:[%s766_s2] sm:$0xff] (!%p199_p3)  ;;  %617 = vset.pattern.permute.xlu1 (!%p199_p3), %v661_v3  ;;  %v278_v4 = vld [vmem:[%s766_s2 + $0x18] sm:$0xff] (!%p199_p3)  ;;  %v276_v5 = vld [vmem:[%s766_s2 + $0x8] sm:$0xff] (!%p199_p3)  ;;  %vm321_vm1 = vcmask (!%p199_p3), 1045504   ;;  %vm406_vm2 = vcmask (!%p199_p3), 27648  }
   0xb   : > { %616 = vset.pattern.permute.xlu0 (!%p199_p3), %v661_v3  ;;  %291 = vperm.xlu1 (!%p199_p3), %617, %v277_v1   ;;  %v620_v8 = vld [vmem:[%s765_s1 + $0x8] sm:$0xff] (!%p199_p3)  }
   0xc   : > { %281 = vperm.xlu0 (!%p199_p3), %616, %v275_v2  }
   0xf   : > { %296 = vperm.xlu1 (!%p199_p3), %617, %v278_v4  }
  0x10   : > { %s780_s16 = smov (!%p241_p5, %s647_s16), 1  ;;  %s782_s15 = smov (!%p243_p6, %s643_s15), 1  ;;  %286 = vperm.xlu0 %616, %v276_v5  }
  0x11   : > { %s533_s28 = sshll.u32 %s780_s16, 2  ;;  %s536_s29 = sshll.u32 %s780_s16, 3 }
  0x12   : > { %s532_s30 = sshll.u32 %s782_s15, 1  ;;  %s535_s5 = sshll.u32 %s782_s15, 2 }
  0x13   : > { %s247_s10 = sadd.s32 %s533_s28, %s532_s30  ;;  %s733_s12 = sadd.s32 %s536_s29, %s535_s5 }
  0x14   : > { %s534_s11 = sshll.u32 %s247_s10, 2  ;;  %s537_s23 = sshll.u32 %s733_s12, 2 }
  0x15   : > { %s249_s16 = scalar_lea.vmem %s764_s0, %s534_s11  ;;  %s258_s26 = scalar_lea.vmem %s767_s3, %s537_s23 }
  0x16   : > { %v618_v6 = vld [vmem:[%s249_s16] sm:$0x3f]   ;;  %v564_v11 = vld [vmem:[%s258_s26 + $0x8] sm:$0xff]   ;;  %s267_s29 = scalar_lea.vmem %s768_s4, %s537_s23 }
  0x17   : > { %574 = vmatprep.subr.msk.bf16.mxu0 %vm321_vm1, %v618_v6  ;;  %v323_v7 = vsel %vm321_vm1, %v618_v6, 0  ;;  %v557_v12 = vld [vmem:[%s258_s26] sm:$0xff]   ;;  %v562_v15 = vunpack.c.l.bf16 %v564_v11  ;;  %v563_v24 = vunpack.c.h.bf16 %v564_v11 }
  0x18   : > { %569 = vmatpush3.bf16.msra.mxu0 %v323_v7  ;;  %v558_v19 = vunpack.c.l.bf16 %v557_v12  ;;  %v559_v28 = vunpack.c.h.bf16 %v557_v12 }
  0x1b   : > { %571 = vmatmul.mubr.msk.bf16.vlgmr.msra.gmra.mrb[0].mxu0 %vm314_vm0, %v620_v8 }
  0x8a   : > { %v292_v9 = vpop.permute.xlu1 %291 }
  0x8b   : > { %v282_v10 = vpop.permute.xlu0 %281 }
  0x8e   : > { %v297_v17 = vpop.permute.xlu1 %296 }
  0x8f   : > { %v287_v21 = vpop.permute.xlu0 %286 }
  0xee   : > { %v572_v13 = vpop.f32.mrb[0].mxu0 }
  0xef   : > { %v368_v14 = vadd.f32 %v572_v13, %v292_v9  ;;  %v359_v16 = vpop.f32.mrb[1].mxu0 }
  0xf0   : > { %v360_v18 = vadd.f32 %v359_v16, %v282_v10  ;;  %v573_v20 = vpop.f32.mrb[2].mxu0 }
  0xf1   : > { %v376_v22 = vmax.f32 %v368_v14, 0.0  ;;  %v371_v23 = vadd.f32 %v573_v20, %v297_v17  ;;  %v362_v25 = vpop.f32.mrb[3].mxu0 }
  0xf2   : > { %v374_v26 = vmax.f32 %v360_v18, 0.0  ;;  %v363_v27 = vadd.f32 %v362_v25, %v287_v21 }
  0xf3   : > { %v388_v29 = vmul.f32 %v562_v15, %v376_v22  ;;  %v377_v30 = vmax.f32 %v371_v23, 0.0 }
  0xf4   : > { %v386_v31 = vmul.f32 %v558_v19, %v374_v26  ;;  %v375_v32 = vmax.f32 %v363_v27, 0.0 }
  0xf5   : > { %v554_v33 = vpack.c.bf16 %v388_v29, %v388_v29  ;;  %v389_v34 = vmul.f32 %v563_v24, %v377_v30 }
  0xf6   : > { %v552_v35 = vpack.c.bf16 %v386_v31, %v386_v31  ;;  %v387_v36 = vmul.f32 %v559_v28, %v375_v32 }
  0xf7   : > { %409 = vst.msk [vmem:[%s267_s29 + $0x8] sm:$0xf] %vm406_vm2, %v554_v33  ;;  %v555_v37 = vpack.c.bf16 %v389_v34, %v389_v34 }
  0xf8   : > { %407 = vst.msk [vmem:[%s267_s29] sm:$0xf] %vm406_vm2, %v552_v35  ;;  %v553_v38 = vpack.c.bf16 %v387_v36, %v387_v36 }
  0xf9   : > { %410 = vst.msk [vmem:[%s267_s29 + $0xc] sm:$0xf] %vm406_vm2, %v555_v37 }
  0xfa   : > { %408 = vst.msk [vmem:[%s267_s29 + $0x4] sm:$0xf] %vm406_vm2, %v553_v38 }
  0xfb PF: > { %s14_s19 = sadd.s32 1, %s659_s19   ;;  %s769_s15 = smov %s651_s17 }
  0xfc   : > { %p11_p7 = scmp.ge.s32.totalorder %s14_s19, 6   ;;  %s770_s16 = smov %s655_s18 }
  0xfd   : > { %s771_s17 = smov %s774_s20  ;;  %s772_s18 = smov %s778_s21 }
  0xfe   :  { %13 = sbr.rel (!%p11_p7) target bundleno = 3 (0x3), region = 69 }

// kernel: conv_tdf_net_forward.31
= control target key start
LH: loop header
LB: loop body
LE: loop exit
PB: predicated region body
PF: predicated region fallthrough
CT: control target
= control target key end

     0   :  { %s613_s15 = smov 0   ;;  %s615_s16 = smov 0   ;;  %s676_s0 = inlined_call_operand.vmem [shape: bf16[2,4,8,8], index: 0, kind: input, shape index: {}]   ;;  %s677_s1 = inlined_call_operand.vmem [shape: bf16[16,8], index: 1, kind: input, shape index: {}]   ;;  %s678_s2 = inlined_call_operand.vmem [shape: f32[16,1], index: 2, kind: input, shape index: {}]   ;;  %s679_s3 = inlined_call_operand.vmem [shape: bf16[2,4,16,8], index: 3, kind: input, shape index: {}]   ;;  %s680_s4 = inlined_call_operand.vmem [shape: bf16[2,4,16,8], index: 4, kind: output, shape index: {}]  }
   0x1   :  { %s617_s17 = smov 0   ;;  %s619_s18 = smov 0  }
   0x2   :  { %s621_s19 = smov 0  }
   0x3 LB: > { %s23_s20 = sadd.s32 1, %s575_s17  ;;  %s26_s21 = sadd.s32 1, %s579_s18  ;;  %s583_s19 = sphi %s621_s19, %s14_s19   ;;  %s579_s18 = sphi %s619_s18, %s684_s18   ;;  %s575_s17 = sphi %s617_s17, %s683_s17   ;;  %s571_s16 = sphi %s615_s16, %s682_s16   ;;  %s567_s15 = sphi %s613_s15, %s681_s15  }
   0x4   : > { %p24_p0 = scmp.ge.s32.totalorder %s23_s20, 4  ;;  %p471_p1 = scmp.ge.s32.totalorder %s583_s19, 1 }
   0x5   : > { %p197_p2 = scmp.lt.s32.totalorder %s583_s19, 9 }
   0x6   : > { %s686_s20 = smov (%p24_p0, %s23_s20), 0  ;;  %s688_s21 = smov (!%p24_p0, %s26_s21), %s579_s18 }
   0x7   : > { %p198_p3 = pnand %p471_p1, %p197_p2  ;;  %p28_p4 = scmp.ge.s32.totalorder %s688_s21, 2 }
   0x8   : > { %p239_p5 = scmp.lt.s32.totalorder (!%p198_p3), %s571_s16, 1  ;;  %p241_p6 = scmp.lt.s32.totalorder (!%p198_p3), %s567_s15, 3  ;;  %v585_v0 = vmov (!%p198_p3), 0.0   ;;  %vm586_vm0 = vmmov (!%p198_p3), 0   ;;  %v587_v1 = vmov (!%p198_p3), 0   ;;  %v269_v2 = vld [vmem:[%s678_s2] sm:$0xff] (!%p198_p3) }
   0x9   : > { %s690_s21 = smov (%p28_p4, %s688_s21), 0  ;;  %201 = sbr.rel (%p198_p3) target bundleno = 249 (0xf9), region = 36 }
   0xa   : > { %494 = vmatprep.subr.bf16.mxu0 (!%p198_p3), %v585_v0  ;;  %496 = vmatprep.mubr.msk.bf16.mxu0 (!%p198_p3), %vm586_vm0, %v585_v0  ;;  %v270_v3 = vld [vmem:[%s678_s2 + $0x8] sm:$0xff] (!%p198_p3)  ;;  %vm290_vm1 = vcmask (!%p198_p3), 1043456   ;;  %v544_v6 = vld [vmem:[%s677_s1] sm:$0xff] (!%p198_p3)   ;;  %vm286_vm2 = vcmask (!%p198_p3), 64512   ;;  %vm351_vm3 = vcmask (!%p198_p3), 60416  }
   0xb   : > { %543 = vset.pattern.permute.xlu0 (!%p198_p3), %v587_v1 }
   0xc   : > { %273 = vperm.xlu0 (!%p198_p3), %543, %v269_v2  }
  0x10   : > { %s692_s16 = smov (!%p239_p5, %s571_s16), 1  ;;  %s694_s15 = smov (!%p241_p6, %s567_s15), 3  ;;  %278 = vperm.xlu0 %543, %v270_v3  }
  0x11   : > { %s472_s24 = sshll.u32 %s692_s16, 2  ;;  %s475_s25 = sshll.u32 %s692_s16, 3 }
  0x12   : > { %s244_s28 = sadd.s32 %s472_s24, %s694_s15  ;;  %s474_s29 = sshll.u32 %s694_s15, 1 }
  0x13   : > { %s473_s30 = sshll.u32 %s244_s28, 2  ;;  %s253_s5 = sadd.s32 %s475_s25, %s474_s29 }
  0x14   : > { %s246_s8 = scalar_lea.vmem %s676_s0, %s473_s30  ;;  %s476_s11 = sshll.u32 %s253_s5, 2 }
  0x15   : > { %v268_v4 = vld [vmem:[%s246_s8] sm:$0xf]  ;;  %s255_s14 = scalar_lea.vmem %s679_s3, %s476_s11  ;;  %s264_s22 = scalar_lea.vmem %s680_s4, %s476_s11 }
  0x16   : > { %v292_v5 = vsel %vm290_vm1, %v268_v4, 0  ;;  %v489_v8 = vld [vmem:[%s255_s14] sm:$0xff]  }
  0x17   : > { %495 = vmatpush3.bf16.msra.mxu0 %v292_v5  ;;  %v490_v11 = vunpack.c.l.bf16 %v489_v8  ;;  %v491_v17 = vunpack.c.h.bf16 %v489_v8 }
  0x1a   : > { %497 = vmatmul.mubr.msk.bf16.vlgmr.msra.gmra.mrb[0].mxu0 %vm286_vm2, %v544_v6 }
  0x8b   : > { %v274_v7 = vpop.permute.xlu0 %273 }
  0x8f   : > { %v279_v13 = vpop.permute.xlu0 %278 }
  0xed   : > { %v328_v9 = vpop.f32.mrb[0].mxu0 }
  0xee   : > { %v329_v10 = vadd.f32 %v328_v9, %v274_v7  ;;  %v498_v12 = vpop.f32.mrb[1].mxu0 }
  0xef   : > { %v331_v14 = vpop.f32.mrb[2].mxu0 }
  0xf0   : > { %v335_v15 = vmax.f32 %v329_v10, 0.0  ;;  %v332_v16 = vadd.f32 %v331_v14, %v279_v13  ;;  %v499_v18 = vpop.f32.mrb[3].mxu0 }
  0xf2   : > { %v341_v19 = vmul.f32 %v490_v11, %v335_v15  ;;  %v336_v20 = vmax.f32 %v332_v16, 0.0 }
  0xf4   : > { %v486_v21 = vpack.c.bf16 %v341_v19, %v341_v19  ;;  %v342_v22 = vmul.f32 %v491_v17, %v336_v20 }
  0xf6   : > { %352 = vst.msk [vmem:[%s264_s22] sm:$0xf] %vm351_vm3, %v486_v21  ;;  %v487_v23 = vpack.c.bf16 %v342_v22, %v342_v22 }
  0xf8   : > { %353 = vst.msk [vmem:[%s264_s22 + $0x4] sm:$0xf] %vm351_vm3, %v487_v23 }
  0xf9 PF: > { %s14_s19 = sadd.s32 1, %s583_s19   ;;  %s681_s15 = smov %s575_s17 }
  0xfa   : > { %p11_p7 = scmp.ge.s32.totalorder %s14_s19, 10   ;;  %s682_s16 = smov %s579_s18 }
  0xfb   : > { %s683_s17 = smov %s686_s20  ;;  %s684_s18 = smov %s690_s21 }
  0xfc   :  { %13 = sbr.rel (!%p11_p7) target bundleno = 3 (0x3), region = 69 }

// kernel: conv_tdf_net_forward.34
= control target key start
LH: loop header
LB: loop body
LE: loop exit
PB: predicated region body
PF: predicated region fallthrough
CT: control target
= control target key end

     0   :  { %s474_s12 = smov 0   ;;  %s476_s13 = smov 0   ;;  %s531_s0 = inlined_call_operand.vmem [shape: bf16[2,8,4,16], index: 0, kind: input, shape index: {}]   ;;  %s532_s1 = inlined_call_operand.vmem [shape: bf16[2,4], index: 1, kind: input, shape index: {}]   ;;  %s533_s2 = inlined_call_operand.vmem [shape: f32[2,1], index: 2, kind: input, shape index: {}]   ;;  %s534_s3 = inlined_call_operand.vmem [shape: f32[2,8,2,16], index: 3, kind: output, shape index: {}]  }
   0x1   :  { %s478_s14 = smov 0   ;;  %s480_s15 = smov 0  }
   0x2   :  { %s482_s16 = smov 0  }
   0x3 LB: > { %s22_s17 = sadd.s32 1, %s441_s14  ;;  %s25_s18 = sadd.s32 1, %s445_s15  ;;  %s449_s16 = sphi %s482_s16, %s13_s16   ;;  %s445_s15 = sphi %s480_s15, %s538_s15   ;;  %s441_s14 = sphi %s478_s14, %s537_s14   ;;  %s437_s13 = sphi %s476_s13, %s536_s13   ;;  %s433_s12 = sphi %s474_s12, %s535_s12  }
   0x4   : > { %p23_p0 = scmp.ge.s32.totalorder %s22_s17, 8  ;;  %p351_p1 = scmp.ge.s32.totalorder %s449_s16, 1 }
   0x5   : > { %p156_p2 = scmp.lt.s32.totalorder %s449_s16, 17 }
   0x6   : > { %s540_s17 = smov (%p23_p0, %s22_s17), 0  ;;  %s542_s18 = smov (!%p23_p0, %s25_s18), %s445_s15 }
   0x7   : > { %p157_p3 = pnand %p351_p1, %p156_p2  ;;  %p27_p4 = scmp.ge.s32.totalorder %s542_s18, 2 }
   0x8   : > { %p186_p5 = scmp.lt.s32.totalorder (!%p157_p3), %s437_s13, 1  ;;  %p188_p6 = scmp.lt.s32.totalorder (!%p157_p3), %s433_s12, 7  ;;  %v451_v0 = vmov (!%p157_p3), 0.0   ;;  %vm452_vm0 = vmmov (!%p157_p3), 0   ;;  %v205_v1 = vld [vmem:[%s533_s2] sm:$0x3] (!%p157_p3) }
   0x9   : > { %s544_s18 = smov (%p27_p4, %s542_s18), 0  ;;  %160 = sbr.rel (%p157_p3) target bundleno = 241 (0xf1), region = 32 }
   0xa   : > { %361 = vmatprep.subr.bf16.mxu0 (!%p157_p3), %v451_v0  ;;  %363 = vmatprep.mubr.msk.bf16.mxu0 (!%p157_p3), %vm452_vm0, %v451_v0  ;;  %v453_v2 = vmov (!%p157_p3), 0   ;;  %vm215_vm1 = vcmask (!%p157_p3), 1041408   ;;  %v204_v5 = vld [vmem:[%s532_s1] sm:$0x1] (!%p157_p3)  ;;  %vm211_vm2 = vcmask (!%p157_p3), 31744   ;;  %vm259_vm3 = vcmask (!%p157_p3), 123904  }
   0xb   : > { %410 = vset.pattern.permute.xlu0 (!%p157_p3), %v453_v2 }
   0xc   : > { %208 = vperm.xlu0 (!%p157_p3), %410, %v205_v1  }
  0x10   : > { %s546_s13 = smov (!%p186_p5, %s437_s13), 1  ;;  %s548_s12 = smov (!%p188_p6, %s433_s12), 7 }
  0x11   : > { %s352_s21 = sshll.u32 %s546_s13, 3 }
  0x12   : > { %s191_s22 = sadd.s32 %s352_s21, %s548_s12 }
  0x13   : > { %s353_s23 = sshll.u32 %s191_s22, 1 }
  0x14   : > { %s193_s26 = scalar_lea.vmem %s531_s0, %s353_s23  ;;  %s201_s4 = scalar_lea.vmem %s534_s3, %s353_s23 }
  0x15   : > { %v203_v3 = vld [vmem:[%s193_s26] sm:$0x3] }
  0x16   : > { %v217_v4 = vsel %vm215_vm1, %v203_v3, 0 }
  0x17   : > { %362 = vmatpush3.bf16.msra.mxu0 %v217_v4 }
  0x1a   : > { %364 = vmatmul.mubr.msk.bf16.vlgmr.msra.gmra.mrb[0].mxu0 %vm211_vm2, %v204_v5 }
  0x8b   : > { %v209_v6 = vpop.permute.xlu0 %208 }
  0xed   : > { %v253_v7 = vpop.f32.mrb[0].mxu0 }
  0xee   : > { %v254_v8 = vadd.f32 %v253_v7, %v209_v6  ;;  %v365_v9 = vpop.f32.mrb[1].mxu0 }
  0xef   : > { %v256_v10 = vpop.f32.mrb[2].mxu0 }
  0xf0   : > { %260 = vst.msk [vmem:[%s201_s4] sm:$0x3] %vm259_vm3, %v254_v8  ;;  %v366_v11 = vpop.f32.mrb[3].mxu0 }
  0xf1 PF: > { %s13_s16 = sadd.s32 1, %s449_s16   ;;  %s535_s12 = smov %s441_s14 }
  0xf2   : > { %p10_p7 = scmp.ge.s32.totalorder %s13_s16, 18   ;;  %s536_s13 = smov %s445_s15 }
  0xf3   : > { %s537_s14 = smov %s540_s17  ;;  %s538_s15 = smov %s544_s18 }
  0xf4   :  { %12 = sbr.rel (!%p10_p7) target bundleno = 3 (0x3), region = 62 }

// kernel: conv_tdf_net_forward.35
= control target key start
LH: loop header
LB: loop body
LE: loop exit
PB: predicated region body
PF: predicated region fallthrough
CT: control target
= control target key end

     0   :  { %vm27_vm0 = vcmask 277504   ;;  %vm15_vm1 = vcmask 261120   ;;  %v161_v3 = vmov 0.0   ;;  %vm34_vm2 = vcmask 1041408   ;;  %s212_s1 = inlined_call_operand.vmem [shape: f32[34,32], index: 1, kind: input, shape index: {}]   ;;  %s213_s0 = inlined_call_operand.vmem [shape: f32[16,34], index: 0, kind: input, shape index: {}]   ;;  %s214_s2 = inlined_call_operand.vmem [shape: f32[16,32], index: 2, kind: output, shape index: {}]  }
   0x1   :  { %v22_v0 = vld [vmem:[%s212_s1] sm:$0xff]  ;;  %v23_v1 = vld [vmem:[%s212_s1 + $0x8] sm:$0xff]  ;;  %v24_v2 = vld [vmem:[%s212_s1 + $0x10] sm:$0xff]  ;;  %17 = vst.msk [vmem:[#allocation2 + $0x8] sm:$0xff] %vm15_vm1, %v161_v3 }
   0x2   :  { %16 = vst.msk [vmem:[#allocation2] sm:$0xff] %vm15_vm1, %v161_v3  ;;  %v152_v4 = vpack.c.bf16 %v23_v1, %v22_v0  ;;  %v25_v5 = vld [vmem:[%s212_s1 + $0x18] sm:$0xff]  ;;  %v20_v6 = vld [vmem:[%s213_s0] sm:$0xff]  ;;  %v21_v9 = vld [vmem:[%s213_s0 + $0x8] sm:$0xff] }
   0x3   :  { %v156_v7 = vpack.c.bf16 %v25_v5, %v24_v2  ;;  %149 = vmatprep.mubr.msk.f32.mxu0 %vm27_vm0, %v20_v6  ;;  %v26_v8 = vld [vmem:[%s212_s1 + $0x20] sm:$0x3] }
   0x4   :  { %153 = vmatprep.subr.bf16.mxu0 %v152_v4 }
   0x5   :  { %155 = vmatpush3.bf16.msra.mxu0 %v152_v4 }
   0x6   :  { %157 = vmatprep.subr.bf16.mxu0 %v156_v7 }
   0x8   :  { %v19_v10 = vld [vmem:[#allocation2 + $0x8] sm:$0xff] }
   0x9   :  { %159 = vmatpush3.bf16.msra.mxu0 %v156_v7  ;;  %v18_v11 = vld [vmem:[#allocation2] sm:$0xff] }
   0xa   :  { %147 = vmatprep.subr.msk.mxu0 %vm34_vm2, %v26_v8 }
   0xd   :  { %148 = vmatpush3.msk.msra.mxu0 %vm34_vm2, %v26_v8 }
   0xe   :  { %150 = vmatmul.mubr.msk.f32.vlgmr.msra.gmra.mrb[0].mxu0 %vm27_vm0, %v21_v9 }
  0xe1   :  { %v151_v12 = vpop.f32.mrb[0].mxu0 }
  0xe2   :  { %v114_v13 = vadd.f32 %v151_v12, %v19_v10  ;;  %v104_v14 = vpop.f32.mrb[1].mxu0 }
  0xe3   :  { %v113_v15 = vadd.f32 %v104_v14, %v18_v11 }
  0xe4   :  { %117 = vst.msk [vmem:[#allocation2 + $0x8] sm:$0xff] %vm15_vm1, %v114_v13 }
  0xe5   :  { %116 = vst.msk [vmem:[#allocation2] sm:$0xff] %vm15_vm1, %v113_v15 }
  0xeb   :  { %v122_v16 = vld [vmem:[#allocation2 + $0x8] sm:$0xff] }
  0xec   :  { %124 = vst.msk [vmem:[%s214_s2 + $0x8] sm:$0xff] %vm15_vm1, %v122_v16  ;;  %v121_v17 = vld [vmem:[#allocation2] sm:$0xff] }
  0xed   :  { %123 = vst.msk [vmem:[%s214_s2] sm:$0xff] %vm15_vm1, %v121_v17 }

</bundles_post_ra>
